<compile_context>
chip_gen: v6e
topology: v6e:2x2x1
jax: 0.10.0
libtpu: 0.0.40
codegen_flags: <defaults>
</compile_context>

<pallas_src>
import math

import jax
import jax.numpy as jnp
import numpy as np
from jax.experimental import pallas as pl
from jax.experimental.pallas import tpu as pltpu

_SUB = 8                    # sublanes per box tile
_LANE = 128                 # lanes per box tile
_TILE = _SUB * _LANE        # boxes per grid step (each parameter = one (8,128) vreg)


def _corners(x, y, w, h, alpha):
    """CCW corners of the rotated BEV rectangle (matches box2corners_th)."""
    c = jnp.cos(alpha)
    s = jnp.sin(alpha)
    wc, ws = 0.5 * w * c, 0.5 * w * s
    hc, hs = 0.5 * h * c, 0.5 * h * s
    cx = (x + wc - hs, x - wc - hs, x - wc + hs, x + wc + hs)
    cy = (y + ws + hc, y - ws + hc, y - ws - hc, y + ws - hc)
    return cx, cy


def _halfplane_vals(px, py, qx, qy):
    """f[k][c] = cross(q_{k+1}-q_k, p_c - q_k); >= 0  <=>  corner c of P lies inside
    half-plane k of the CCW rectangle Q.  Each value is shared by the two edges
    touching that corner (16 evaluations instead of 32)."""
    f = []
    for k in range(4):
        kn = (k + 1) % 4
        ex = qx[kn] - qx[k]
        ey = qy[kn] - qy[k]
        f.append(tuple(ex * (py[c] - qy[k]) - ey * (px[c] - qx[k]) for c in range(4)))
    return f


def _clipped_edge_integral(px, py, f):
    """Sum over P's 4 edges of the Green's-theorem line integral (x dy - y dx)
    over the part of the edge that lies inside Q (whose half-plane values at P's
    corners are f[k][c]).  Branchless Cyrus-Beck clipping."""
    total = None
    for e in range(4):
        en = (e + 1) % 4
        ax, ay = px[e], py[e]
        dx, dy = px[en] - ax, py[en] - ay
        t0, t1 = None, None
        for k in range(4):                       # clip against half-plane k
            fa, fb = f[k][e], f[k][en]
            den = fb - fa
            dz = den == 0.0
            out_flat = dz & (fa < 0.0)           # parallel to boundary & fully outside
            tk = -fa / jnp.where(dz, 1.0, den)
            lo = jnp.where(den > 0.0, tk, 0.0)
            lo = jnp.where(out_flat, 2.0, lo)
            hi = jnp.where(den < 0.0, tk, 1.0)
            hi = jnp.where(out_flat, -1.0, hi)
            t0 = lo if t0 is None else jnp.maximum(t0, lo)
            t1 = hi if t1 is None else jnp.minimum(t1, hi)
        t0 = jnp.maximum(t0, 0.0)
        t1 = jnp.minimum(t1, 1.0)
        x0, y0 = ax + t0 * dx, ay + t0 * dy      # entry point
        x1, y1 = ax + t1 * dx, ay + t1 * dy      # exit point
        contrib = jnp.where(t1 > t0, x0 * y1 - y0 * x1, 0.0)
        total = contrib if total is None else total + contrib
    return total


def _rotated_iou_ratio_kernel(pred_ref, tgt_ref, out_ref):
    # pred_ref / tgt_ref: (7, 1, 8, 128); out_ref: (1, 8, 128) per-box ratios.
    def param(ref, k):
        return ref[k, 0, :, :]                   # (8, 128) dense tile of boxes

    x1, y1 = param(pred_ref, 0), param(pred_ref, 1)
    w1, h1, a1 = param(pred_ref, 3), param(pred_ref, 4), param(pred_ref, 6)
    x2, y2 = param(tgt_ref, 0), param(tgt_ref, 1)
    w2, h2, a2 = param(tgt_ref, 3), param(tgt_ref, 4), param(tgt_ref, 6)

    # Area is translation-invariant: recentre for better f32 conditioning.
    mx = 0.5 * (x1 + x2)
    my = 0.5 * (y1 + y2)
    c1x, c1y = _corners(x1 - mx, y1 - my, w1, h1, a1)
    c2x, c2y = _corners(x2 - mx, y2 - my, w2, h2, a2)

    # boundary(P ∩ Q) = (∂P ∩ Q) ∪ (∂Q ∩ P);  2*Area = ∮ (x dy - y dx)
    s2 = _clipped_edge_integral(c1x, c1y, _halfplane_vals(c1x, c1y, c2x, c2y))
    s2 = s2 + _clipped_edge_integral(c2x, c2y, _halfplane_vals(c2x, c2y, c1x, c1y))

    area1 = w1 * h1
    area2 = w2 * h2
    # Clamp guards the measure-zero exactly-collinear shared-edge configuration
    # and keeps unions (hence the log argument) strictly positive.
    inter_bev = jnp.clip(0.5 * s2, 0.0, jnp.minimum(area1, area2))

    z1, l1 = param(pred_ref, 2), param(pred_ref, 5)
    z2, l2 = param(tgt_ref, 2), param(tgt_ref, 5)
    z_top = jnp.minimum(z1 + 0.5 * l1, z2 + 0.5 * l2)
    z_bot = jnp.maximum(z1 - 0.5 * l1, z2 - 0.5 * l2)
    z_overlap = jnp.maximum(z_top - z_bot, 0.0)

    inter_3d = inter_bev * z_overlap             # == volume_intersect == ious3d*unions
    unions = area1 * l1 + area2 * l2 - inter_3d
    out_ref[0, :, :] = (inter_3d + 1.0) / (unions + 1.0)   # single full-tile store


def _rotated_iou_ratio_per_box(pred, target):
    """(volume_intersect + 1) / (unions + 1) per box, via the Pallas kernel."""
    pred = jnp.asarray(pred, jnp.float32)
    target = jnp.asarray(target, jnp.float32)
    n = pred.shape[0]
    n_tiles = max(1, (n + _TILE - 1) // _TILE)
    n_pad = n_tiles * _TILE

    # Pad with identical unit boxes (exact ratio 1); padded rows are sliced off.
    dummy = jnp.array([0.0, 0.0, 0.0, 1.0, 1.0, 1.0, 0.0], jnp.float32)
    pad = jnp.tile(dummy[None, :], (n_pad - n, 1))
    pred_p = jnp.concatenate([pred, pad], axis=0).T.reshape(7, n_tiles, _SUB, _LANE)
    tgt_p = jnp.concatenate([target, pad], axis=0).T.reshape(7, n_tiles, _SUB, _LANE)

    ratios = pl.pallas_call(
        _rotated_iou_ratio_kernel,
        out_shape=jax.ShapeDtypeStruct((n_tiles, _SUB, _LANE), jnp.float32),
        grid_spec=pltpu.PrefetchScalarGridSpec(
            num_scalar_prefetch=0,
            grid=(n_tiles,),
            in_specs=[
                pl.BlockSpec((7, 1, _SUB, _LANE), lambda i: (0, i, 0, 0)),
                pl.BlockSpec((7, 1, _SUB, _LANE), lambda i: (0, i, 0, 0)),
            ],
            out_specs=pl.BlockSpec((1, _SUB, _LANE), lambda i: (i, 0, 0)),
        ),
        compiler_params=pltpu.CompilerParams(
            dimension_semantics=("parallel",)),   # independent tiles -> both TCs
    )(pred_p, tgt_p)
    return ratios.reshape(n_pad)[:n]


def rotated_iou_loss(pred, target, weight=None, loss_type="iou"):
    """pred, target: (N, 7) rows [x, y, z, w, h, l, alpha]; weight: (N,) or None."""
    if loss_type in ("iou", "linear_iou"):
        ratio = _rotated_iou_ratio_per_box(pred, target)
        losses = -jnp.log(ratio) if loss_type == "iou" else 1.0 - ratio
    else:
        # TODO(synk): giou / diou branches (cal_giou_3d / cal_diou_3d) not ported.
        raise NotImplementedError(loss_type)
    loss_sum = jnp.sum(losses)
    if weight is None:
        return loss_sum
    w = jnp.asarray(weight, jnp.float32).reshape(losses.shape)
    return jnp.where(jnp.sum(w) > 0.0, jnp.sum(losses * w), loss_sum)


# ---------------------------------------------------------------------------
# Pure NumPy (float64) reference: Sutherland-Hodgman polygon clipping.
# ---------------------------------------------------------------------------
def _np_corners(b):
    x, y, w, h, al = b[0], b[1], b[3], b[4], b[6]
    c, s = math.cos(al), math.sin(al)
    lx = np.array([0.5 * w, -0.5 * w, -0.5 * w, 0.5 * w])
    ly = np.array([0.5 * h, 0.5 * h, -0.5 * h, -0.5 * h])
    return np.stack([x + lx * c - ly * s, y + lx * s + ly * c], axis=-1)


def _np_clip_area(p_poly, q_poly):
    poly = [tuple(v) for v in p_poly]
    for k in range(4):
        if not poly:
            return 0.0
        a, b = q_poly[k], q_poly[(k + 1) % 4]
        ex, ey = b[0] - a[0], b[1] - a[1]

        def fval(v):
            return ex * (v[1] - a[1]) - ey * (v[0] - a[0])

        def isect(u, v):
            fu, fv = fval(u), fval(v)
            t = fu / (fu - fv)
            return (u[0] + t * (v[0] - u[0]), u[1] + t * (v[1] - u[1]))

        out = []
        m = len(poly)
        for i in range(m):
            cur, nxt = poly[i], poly[(i + 1) % m]
            if fval(cur) >= 0.0:
                out.append(cur)
                if fval(nxt) < 0.0:
                    out.append(isect(cur, nxt))
            elif fval(nxt) >= 0.0:
                out.append(isect(cur, nxt))
        poly = out
    if len(poly) < 3:
        return 0.0
    area = 0.0
    for i in range(len(poly)):
        x0, y0 = poly[i]
        x1, y1 = poly[(i + 1) % len(poly)]
        area += x0 * y1 - y0 * x1
    return 0.5 * abs(area)


def _np_ref_losses(pred, target, loss_type="iou"):
    pred = np.asarray(pred, np.float64)
    target = np.asarray(target, np.float64)
    out = []
    for p, t in zip(pred, target):
        ia = _np_clip_area(_np_corners(p), _np_corners(t))
        z_top = min(p[2] + 0.5 * p[5], t[2] + 0.5 * t[5])
        z_bot = max(p[2] - 0.5 * p[5], t[2] - 0.5 * t[5])
        zov = max(z_top - z_bot, 0.0)
        inter3 = ia * zov
        u3 = p[3] * p[4] * p[5] + t[3] * t[4] * t[5] - inter3
        r = (inter3 + 1.0) / (u3 + 1.0)
        out.append(-math.log(r) if loss_type == "iou" else 1.0 - r)
    return np.array(out)


if __name__ == "__main__":
    key = jax.random.PRNGKey(0)
    n = 64
    kc, ks, ka, kdc, kds, kda, kw = jax.random.split(key, 7)

    centers = jax.random.uniform(kc, (n, 3), minval=-2.0, maxval=2.0)
    sizes = jax.random.uniform(ks, (n, 3), minval=0.8, maxval=2.0)
    angles = jax.random.uniform(ka, (n, 1), minval=-math.pi, maxval=math.pi)
    pred = jnp.concatenate([centers, sizes, angles], axis=-1).astype(jnp.float32)

    d_centers = centers + 0.3 * jax.random.normal(kdc, (n, 3))
    d_sizes = sizes * jax.random.uniform(kds, (n, 3), minval=0.8, maxval=1.25)
    d_angles = angles + 0.2 * jax.random.normal(kda, (n, 1))
    target = jnp.concatenate([d_centers, d_sizes, d_angles], axis=-1).astype(jnp.float32)

    weight = jax.random.uniform(kw, (n,), minval=0.0, maxval=1.0).astype(jnp.float32)

    per_box = jax.block_until_ready(-jnp.log(_rotated_iou_ratio_per_box(pred, target)))
    loss_w = jax.block_until_ready(rotated_iou_loss(pred, target, weight))
    loss_nw = jax.block_until_ready(rotated_iou_loss(pred, target))

    ref = _np_ref_losses(np.asarray(pred), np.asarray(target))
    np.testing.assert_allclose(np.asarray(per_box), ref, rtol=1e-3, atol=1e-3)
    np.testing.assert_allclose(float(loss_nw), float(ref.sum()), rtol=1e-3, atol=1e-3)
    np.testing.assert_allclose(float(loss_w), float((ref * np.asarray(weight)).sum()),
                               rtol=1e-3, atol=1e-3)
    assert bool(jnp.isfinite(loss_w)) and bool(jnp.isfinite(loss_nw))
    print("KERNEL_OK")
</pallas_src>

<mosaic_0001>
module attributes {stable_mosaic.version = 11 : i64} {
  func.func @_rotated_iou_ratio_kernel(%arg0: i32, %arg1: memref<7x1x8x128xf32, #tpu.memory_space<vmem>>, %arg2: memref<7x1x8x128xf32, #tpu.memory_space<vmem>>, %arg3: memref<1x8x128xf32, #tpu.memory_space<vmem>>) attributes {dimension_semantics = [#tpu.dimension_semantics<parallel>], iteration_bounds = array<i64: 1>, scalar_prefetch = 0 : i64, scratch_operands = 0 : i64, tpu.core_type = #tpu.core_type<tc>, window_params = [{transform_indices = @transform_0, window_bounds = array<i64: 7, 1, 8, 128>}, {transform_indices = @transform_1, window_bounds = array<i64: 7, 1, 8, 128>}, {transform_indices = @transform_2, window_bounds = array<i64: 1, 8, 128>}]} {
    %c0 = arith.constant 0 : index
    %c0_0 = arith.constant 0 : index
    %c0_1 = arith.constant 0 : index
    %c0_2 = arith.constant 0 : index
    %0 = vector.load %arg1[%c0, %c0_0, %c0_1, %c0_2] : memref<7x1x8x128xf32, #tpu.memory_space<vmem>>, vector<1x1x8x128xf32>
    %1 = vector.shape_cast %0 : vector<1x1x8x128xf32> to vector<8x128xf32>
    %c1 = arith.constant 1 : index
    %c0_3 = arith.constant 0 : index
    %c0_4 = arith.constant 0 : index
    %c0_5 = arith.constant 0 : index
    %2 = vector.load %arg1[%c1, %c0_3, %c0_4, %c0_5] : memref<7x1x8x128xf32, #tpu.memory_space<vmem>>, vector<1x1x8x128xf32>
    %3 = vector.shape_cast %2 : vector<1x1x8x128xf32> to vector<8x128xf32>
    %c3 = arith.constant 3 : index
    %c0_6 = arith.constant 0 : index
    %c0_7 = arith.constant 0 : index
    %c0_8 = arith.constant 0 : index
    %4 = vector.load %arg1[%c3, %c0_6, %c0_7, %c0_8] : memref<7x1x8x128xf32, #tpu.memory_space<vmem>>, vector<1x1x8x128xf32>
    %5 = vector.shape_cast %4 : vector<1x1x8x128xf32> to vector<8x128xf32>
    %c4 = arith.constant 4 : index
    %c0_9 = arith.constant 0 : index
    %c0_10 = arith.constant 0 : index
    %c0_11 = arith.constant 0 : index
    %6 = vector.load %arg1[%c4, %c0_9, %c0_10, %c0_11] : memref<7x1x8x128xf32, #tpu.memory_space<vmem>>, vector<1x1x8x128xf32>
    %7 = vector.shape_cast %6 : vector<1x1x8x128xf32> to vector<8x128xf32>
    %c6 = arith.constant 6 : index
    %c0_12 = arith.constant 0 : index
    %c0_13 = arith.constant 0 : index
    %c0_14 = arith.constant 0 : index
    %8 = vector.load %arg1[%c6, %c0_12, %c0_13, %c0_14] : memref<7x1x8x128xf32, #tpu.memory_space<vmem>>, vector<1x1x8x128xf32>
    %9 = vector.shape_cast %8 : vector<1x1x8x128xf32> to vector<8x128xf32>
    %c0_15 = arith.constant 0 : index
    %c0_16 = arith.constant 0 : index
    %c0_17 = arith.constant 0 : index
    %c0_18 = arith.constant 0 : index
    %10 = vector.load %arg2[%c0_15, %c0_16, %c0_17, %c0_18] : memref<7x1x8x128xf32, #tpu.memory_space<vmem>>, vector<1x1x8x128xf32>
    %11 = vector.shape_cast %10 : vector<1x1x8x128xf32> to vector<8x128xf32>
    %c1_19 = arith.constant 1 : index
    %c0_20 = arith.constant 0 : index
    %c0_21 = arith.constant 0 : index
    %c0_22 = arith.constant 0 : index
    %12 = vector.load %arg2[%c1_19, %c0_20, %c0_21, %c0_22] : memref<7x1x8x128xf32, #tpu.memory_space<vmem>>, vector<1x1x8x128xf32>
    %13 = vector.shape_cast %12 : vector<1x1x8x128xf32> to vector<8x128xf32>
    %c3_23 = arith.constant 3 : index
    %c0_24 = arith.constant 0 : index
    %c0_25 = arith.constant 0 : index
    %c0_26 = arith.constant 0 : index
    %14 = vector.load %arg2[%c3_23, %c0_24, %c0_25, %c0_26] : memref<7x1x8x128xf32, #tpu.memory_space<vmem>>, vector<1x1x8x128xf32>
    %15 = vector.shape_cast %14 : vector<1x1x8x128xf32> to vector<8x128xf32>
    %c4_27 = arith.constant 4 : index
    %c0_28 = arith.constant 0 : index
    %c0_29 = arith.constant 0 : index
    %c0_30 = arith.constant 0 : index
    %16 = vector.load %arg2[%c4_27, %c0_28, %c0_29, %c0_30] : memref<7x1x8x128xf32, #tpu.memory_space<vmem>>, vector<1x1x8x128xf32>
    %17 = vector.shape_cast %16 : vector<1x1x8x128xf32> to vector<8x128xf32>
    %c6_31 = arith.constant 6 : index
    %c0_32 = arith.constant 0 : index
    %c0_33 = arith.constant 0 : index
    %c0_34 = arith.constant 0 : index
    %18 = vector.load %arg2[%c6_31, %c0_32, %c0_33, %c0_34] : memref<7x1x8x128xf32, #tpu.memory_space<vmem>>, vector<1x1x8x128xf32>
    %19 = vector.shape_cast %18 : vector<1x1x8x128xf32> to vector<8x128xf32>
    %20 = arith.addf %1, %11 : vector<8x128xf32>
    %cst = arith.constant 5.000000e-01 : f32
    %21 = vector.broadcast %cst : f32 to vector<8x128xf32>
    %22 = arith.mulf %21, %20 : vector<8x128xf32>
    %23 = arith.addf %3, %13 : vector<8x128xf32>
    %cst_35 = arith.constant 5.000000e-01 : f32
    %24 = vector.broadcast %cst_35 : f32 to vector<8x128xf32>
    %25 = arith.mulf %24, %23 : vector<8x128xf32>
    %26 = arith.subf %1, %22 : vector<8x128xf32>
    %27 = arith.subf %3, %25 : vector<8x128xf32>
    %28 = math.cos %9 : vector<8x128xf32>
    %29 = math.sin %9 : vector<8x128xf32>
    %cst_36 = arith.constant 5.000000e-01 : f32
    %30 = vector.broadcast %cst_36 : f32 to vector<8x128xf32>
    %31 = arith.mulf %30, %5 : vector<8x128xf32>
    %32 = arith.mulf %31, %28 : vector<8x128xf32>
    %cst_37 = arith.constant 5.000000e-01 : f32
    %33 = vector.broadcast %cst_37 : f32 to vector<8x128xf32>
    %34 = arith.mulf %33, %5 : vector<8x128xf32>
    %35 = arith.mulf %34, %29 : vector<8x128xf32>
    %cst_38 = arith.constant 5.000000e-01 : f32
    %36 = vector.broadcast %cst_38 : f32 to vector<8x128xf32>
    %37 = arith.mulf %36, %7 : vector<8x128xf32>
    %38 = arith.mulf %37, %28 : vector<8x128xf32>
    %cst_39 = arith.constant 5.000000e-01 : f32
    %39 = vector.broadcast %cst_39 : f32 to vector<8x128xf32>
    %40 = arith.mulf %39, %7 : vector<8x128xf32>
    %41 = arith.mulf %40, %29 : vector<8x128xf32>
    %42 = arith.addf %26, %32 : vector<8x128xf32>
    %43 = arith.subf %42, %41 : vector<8x128xf32>
    %44 = arith.subf %26, %32 : vector<8x128xf32>
    %45 = arith.subf %44, %41 : vector<8x128xf32>
    %46 = arith.subf %26, %32 : vector<8x128xf32>
    %47 = arith.addf %46, %41 : vector<8x128xf32>
    %48 = arith.addf %26, %32 : vector<8x128xf32>
    %49 = arith.addf %48, %41 : vector<8x128xf32>
    %50 = arith.addf %27, %35 : vector<8x128xf32>
    %51 = arith.addf %50, %38 : vector<8x128xf32>
    %52 = arith.subf %27, %35 : vector<8x128xf32>
    %53 = arith.addf %52, %38 : vector<8x128xf32>
    %54 = arith.subf %27, %35 : vector<8x128xf32>
    %55 = arith.subf %54, %38 : vector<8x128xf32>
    %56 = arith.addf %27, %35 : vector<8x128xf32>
    %57 = arith.subf %56, %38 : vector<8x128xf32>
    %58 = arith.subf %11, %22 : vector<8x128xf32>
    %59 = arith.subf %13, %25 : vector<8x128xf32>
    %60 = math.cos %19 : vector<8x128xf32>
    %61 = math.sin %19 : vector<8x128xf32>
    %cst_40 = arith.constant 5.000000e-01 : f32
    %62 = vector.broadcast %cst_40 : f32 to vector<8x128xf32>
    %63 = arith.mulf %62, %15 : vector<8x128xf32>
    %64 = arith.mulf %63, %60 : vector<8x128xf32>
    %cst_41 = arith.constant 5.000000e-01 : f32
    %65 = vector.broadcast %cst_41 : f32 to vector<8x128xf32>
    %66 = arith.mulf %65, %15 : vector<8x128xf32>
    %67 = arith.mulf %66, %61 : vector<8x128xf32>
    %cst_42 = arith.constant 5.000000e-01 : f32
    %68 = vector.broadcast %cst_42 : f32 to vector<8x128xf32>
    %69 = arith.mulf %68, %17 : vector<8x128xf32>
    %70 = arith.mulf %69, %60 : vector<8x128xf32>
    %cst_43 = arith.constant 5.000000e-01 : f32
    %71 = vector.broadcast %cst_43 : f32 to vector<8x128xf32>
    %72 = arith.mulf %71, %17 : vector<8x128xf32>
    %73 = arith.mulf %72, %61 : vector<8x128xf32>
    %74 = arith.addf %58, %64 : vector<8x128xf32>
    %75 = arith.subf %74, %73 : vector<8x128xf32>
    %76 = arith.subf %58, %64 : vector<8x128xf32>
    %77 = arith.subf %76, %73 : vector<8x128xf32>
    %78 = arith.subf %58, %64 : vector<8x128xf32>
    %79 = arith.addf %78, %73 : vector<8x128xf32>
    %80 = arith.addf %58, %64 : vector<8x128xf32>
    %81 = arith.addf %80, %73 : vector<8x128xf32>
    %82 = arith.addf %59, %67 : vector<8x128xf32>
    %83 = arith.addf %82, %70 : vector<8x128xf32>
    %84 = arith.subf %59, %67 : vector<8x128xf32>
    %85 = arith.addf %84, %70 : vector<8x128xf32>
    %86 = arith.subf %59, %67 : vector<8x128xf32>
    %87 = arith.subf %86, %70 : vector<8x128xf32>
    %88 = arith.addf %59, %67 : vector<8x128xf32>
    %89 = arith.subf %88, %70 : vector<8x128xf32>
    %90 = arith.subf %77, %75 : vector<8x128xf32>
    %91 = arith.subf %85, %83 : vector<8x128xf32>
    %92 = arith.subf %51, %83 : vector<8x128xf32>
    %93 = arith.mulf %90, %92 : vector<8x128xf32>
    %94 = arith.subf %43, %75 : vector<8x128xf32>
    %95 = arith.mulf %91, %94 : vector<8x128xf32>
    %96 = arith.subf %93, %95 : vector<8x128xf32>
    %97 = arith.subf %53, %83 : vector<8x128xf32>
    %98 = arith.mulf %90, %97 : vector<8x128xf32>
    %99 = arith.subf %45, %75 : vector<8x128xf32>
    %100 = arith.mulf %91, %99 : vector<8x128xf32>
    %101 = arith.subf %98, %100 : vector<8x128xf32>
    %102 = arith.subf %55, %83 : vector<8x128xf32>
    %103 = arith.mulf %90, %102 : vector<8x128xf32>
    %104 = arith.subf %47, %75 : vector<8x128xf32>
    %105 = arith.mulf %91, %104 : vector<8x128xf32>
    %106 = arith.subf %103, %105 : vector<8x128xf32>
    %107 = arith.subf %57, %83 : vector<8x128xf32>
    %108 = arith.mulf %90, %107 : vector<8x128xf32>
    %109 = arith.subf %49, %75 : vector<8x128xf32>
    %110 = arith.mulf %91, %109 : vector<8x128xf32>
    %111 = arith.subf %108, %110 : vector<8x128xf32>
    %112 = arith.subf %79, %77 : vector<8x128xf32>
    %113 = arith.subf %87, %85 : vector<8x128xf32>
    %114 = arith.subf %51, %85 : vector<8x128xf32>
    %115 = arith.mulf %112, %114 : vector<8x128xf32>
    %116 = arith.subf %43, %77 : vector<8x128xf32>
    %117 = arith.mulf %113, %116 : vector<8x128xf32>
    %118 = arith.subf %115, %117 : vector<8x128xf32>
    %119 = arith.subf %53, %85 : vector<8x128xf32>
    %120 = arith.mulf %112, %119 : vector<8x128xf32>
    %121 = arith.subf %45, %77 : vector<8x128xf32>
    %122 = arith.mulf %113, %121 : vector<8x128xf32>
    %123 = arith.subf %120, %122 : vector<8x128xf32>
    %124 = arith.subf %55, %85 : vector<8x128xf32>
    %125 = arith.mulf %112, %124 : vector<8x128xf32>
    %126 = arith.subf %47, %77 : vector<8x128xf32>
    %127 = arith.mulf %113, %126 : vector<8x128xf32>
    %128 = arith.subf %125, %127 : vector<8x128xf32>
    %129 = arith.subf %57, %85 : vector<8x128xf32>
    %130 = arith.mulf %112, %129 : vector<8x128xf32>
    %131 = arith.subf %49, %77 : vector<8x128xf32>
    %132 = arith.mulf %113, %131 : vector<8x128xf32>
    %133 = arith.subf %130, %132 : vector<8x128xf32>
    %134 = arith.subf %81, %79 : vector<8x128xf32>
    %135 = arith.subf %89, %87 : vector<8x128xf32>
    %136 = arith.subf %51, %87 : vector<8x128xf32>
    %137 = arith.mulf %134, %136 : vector<8x128xf32>
    %138 = arith.subf %43, %79 : vector<8x128xf32>
    %139 = arith.mulf %135, %138 : vector<8x128xf32>
    %140 = arith.subf %137, %139 : vector<8x128xf32>
    %141 = arith.subf %53, %87 : vector<8x128xf32>
    %142 = arith.mulf %134, %141 : vector<8x128xf32>
    %143 = arith.subf %45, %79 : vector<8x128xf32>
    %144 = arith.mulf %135, %143 : vector<8x128xf32>
    %145 = arith.subf %142, %144 : vector<8x128xf32>
    %146 = arith.subf %55, %87 : vector<8x128xf32>
    %147 = arith.mulf %134, %146 : vector<8x128xf32>
    %148 = arith.subf %47, %79 : vector<8x128xf32>
    %149 = arith.mulf %135, %148 : vector<8x128xf32>
    %150 = arith.subf %147, %149 : vector<8x128xf32>
    %151 = arith.subf %57, %87 : vector<8x128xf32>
    %152 = arith.mulf %134, %151 : vector<8x128xf32>
    %153 = arith.subf %49, %79 : vector<8x128xf32>
    %154 = arith.mulf %135, %153 : vector<8x128xf32>
    %155 = arith.subf %152, %154 : vector<8x128xf32>
    %156 = arith.subf %75, %81 : vector<8x128xf32>
    %157 = arith.subf %83, %89 : vector<8x128xf32>
    %158 = arith.subf %51, %89 : vector<8x128xf32>
    %159 = arith.mulf %156, %158 : vector<8x128xf32>
    %160 = arith.subf %43, %81 : vector<8x128xf32>
    %161 = arith.mulf %157, %160 : vector<8x128xf32>
    %162 = arith.subf %159, %161 : vector<8x128xf32>
    %163 = arith.subf %53, %89 : vector<8x128xf32>
    %164 = arith.mulf %156, %163 : vector<8x128xf32>
    %165 = arith.subf %45, %81 : vector<8x128xf32>
    %166 = arith.mulf %157, %165 : vector<8x128xf32>
    %167 = arith.subf %164, %166 : vector<8x128xf32>
    %168 = arith.subf %55, %89 : vector<8x128xf32>
    %169 = arith.mulf %156, %168 : vector<8x128xf32>
    %170 = arith.subf %47, %81 : vector<8x128xf32>
    %171 = arith.mulf %157, %170 : vector<8x128xf32>
    %172 = arith.subf %169, %171 : vector<8x128xf32>
    %173 = arith.subf %57, %89 : vector<8x128xf32>
    %174 = arith.mulf %156, %173 : vector<8x128xf32>
    %175 = arith.subf %49, %81 : vector<8x128xf32>
    %176 = arith.mulf %157, %175 : vector<8x128xf32>
    %177 = arith.subf %174, %176 : vector<8x128xf32>
    %178 = arith.subf %45, %43 : vector<8x128xf32>
    %179 = arith.subf %53, %51 : vector<8x128xf32>
    %180 = arith.subf %101, %96 : vector<8x128xf32>
    %cst_44 = arith.constant 0.000000e+00 : f32
    %181 = vector.broadcast %cst_44 : f32 to vector<8x128xf32>
    %182 = arith.cmpf oeq, %180, %181 : vector<8x128xf32>
    %cst_45 = arith.constant 0.000000e+00 : f32
    %183 = vector.broadcast %cst_45 : f32 to vector<8x128xf32>
    %184 = arith.cmpf olt, %96, %183 : vector<8x128xf32>
    %185 = arith.andi %182, %184 : vector<8x128xi1>
    %cst_46 = arith.constant 0.000000e+00 : f32
    %186 = vector.broadcast %cst_46 : f32 to vector<8x128xf32>
    %187 = arith.subf %186, %96 : vector<8x128xf32>
    %cst_47 = arith.constant 1.000000e+00 : f32
    %188 = vector.broadcast %cst_47 : f32 to vector<8x128xf32>
    %189 = arith.select %182, %188, %180 : vector<8x128xi1>, vector<8x128xf32>
    %190 = arith.divf %187, %189 : vector<8x128xf32>
    %cst_48 = arith.constant 0.000000e+00 : f32
    %191 = vector.broadcast %cst_48 : f32 to vector<8x128xf32>
    %192 = arith.cmpf ogt, %180, %191 : vector<8x128xf32>
    %cst_49 = arith.constant 0.000000e+00 : f32
    %193 = vector.broadcast %cst_49 : f32 to vector<8x128xf32>
    %194 = arith.select %192, %190, %193 : vector<8x128xi1>, vector<8x128xf32>
    %cst_50 = arith.constant 2.000000e+00 : f32
    %195 = vector.broadcast %cst_50 : f32 to vector<8x128xf32>
    %196 = arith.select %185, %195, %194 : vector<8x128xi1>, vector<8x128xf32>
    %cst_51 = arith.constant 0.000000e+00 : f32
    %197 = vector.broadcast %cst_51 : f32 to vector<8x128xf32>
    %198 = arith.cmpf olt, %180, %197 : vector<8x128xf32>
    %cst_52 = arith.constant 1.000000e+00 : f32
    %199 = vector.broadcast %cst_52 : f32 to vector<8x128xf32>
    %200 = arith.select %198, %190, %199 : vector<8x128xi1>, vector<8x128xf32>
    %cst_53 = arith.constant -1.000000e+00 : f32
    %201 = vector.broadcast %cst_53 : f32 to vector<8x128xf32>
    %202 = arith.select %185, %201, %200 : vector<8x128xi1>, vector<8x128xf32>
    %203 = arith.subf %123, %118 : vector<8x128xf32>
    %cst_54 = arith.constant 0.000000e+00 : f32
    %204 = vector.broadcast %cst_54 : f32 to vector<8x128xf32>
    %205 = arith.cmpf oeq, %203, %204 : vector<8x128xf32>
    %cst_55 = arith.constant 0.000000e+00 : f32
    %206 = vector.broadcast %cst_55 : f32 to vector<8x128xf32>
    %207 = arith.cmpf olt, %118, %206 : vector<8x128xf32>
    %208 = arith.andi %205, %207 : vector<8x128xi1>
    %cst_56 = arith.constant 0.000000e+00 : f32
    %209 = vector.broadcast %cst_56 : f32 to vector<8x128xf32>
    %210 = arith.subf %209, %118 : vector<8x128xf32>
    %cst_57 = arith.constant 1.000000e+00 : f32
    %211 = vector.broadcast %cst_57 : f32 to vector<8x128xf32>
    %212 = arith.select %205, %211, %203 : vector<8x128xi1>, vector<8x128xf32>
    %213 = arith.divf %210, %212 : vector<8x128xf32>
    %cst_58 = arith.constant 0.000000e+00 : f32
    %214 = vector.broadcast %cst_58 : f32 to vector<8x128xf32>
    %215 = arith.cmpf ogt, %203, %214 : vector<8x128xf32>
    %cst_59 = arith.constant 0.000000e+00 : f32
    %216 = vector.broadcast %cst_59 : f32 to vector<8x128xf32>
    %217 = arith.select %215, %213, %216 : vector<8x128xi1>, vector<8x128xf32>
    %cst_60 = arith.constant 2.000000e+00 : f32
    %218 = vector.broadcast %cst_60 : f32 to vector<8x128xf32>
    %219 = arith.select %208, %218, %217 : vector<8x128xi1>, vector<8x128xf32>
    %cst_61 = arith.constant 0.000000e+00 : f32
    %220 = vector.broadcast %cst_61 : f32 to vector<8x128xf32>
    %221 = arith.cmpf olt, %203, %220 : vector<8x128xf32>
    %cst_62 = arith.constant 1.000000e+00 : f32
    %222 = vector.broadcast %cst_62 : f32 to vector<8x128xf32>
    %223 = arith.select %221, %213, %222 : vector<8x128xi1>, vector<8x128xf32>
    %cst_63 = arith.constant -1.000000e+00 : f32
    %224 = vector.broadcast %cst_63 : f32 to vector<8x128xf32>
    %225 = arith.select %208, %224, %223 : vector<8x128xi1>, vector<8x128xf32>
    %226 = arith.maximumf %196, %219 : vector<8x128xf32>
    %227 = arith.minimumf %202, %225 : vector<8x128xf32>
    %228 = arith.subf %145, %140 : vector<8x128xf32>
    %cst_64 = arith.constant 0.000000e+00 : f32
    %229 = vector.broadcast %cst_64 : f32 to vector<8x128xf32>
    %230 = arith.cmpf oeq, %228, %229 : vector<8x128xf32>
    %cst_65 = arith.constant 0.000000e+00 : f32
    %231 = vector.broadcast %cst_65 : f32 to vector<8x128xf32>
    %232 = arith.cmpf olt, %140, %231 : vector<8x128xf32>
    %233 = arith.andi %230, %232 : vector<8x128xi1>
    %cst_66 = arith.constant 0.000000e+00 : f32
    %234 = vector.broadcast %cst_66 : f32 to vector<8x128xf32>
    %235 = arith.subf %234, %140 : vector<8x128xf32>
    %cst_67 = arith.constant 1.000000e+00 : f32
    %236 = vector.broadcast %cst_67 : f32 to vector<8x128xf32>
    %237 = arith.select %230, %236, %228 : vector<8x128xi1>, vector<8x128xf32>
    %238 = arith.divf %235, %237 : vector<8x128xf32>
    %cst_68 = arith.constant 0.000000e+00 : f32
    %239 = vector.broadcast %cst_68 : f32 to vector<8x128xf32>
    %240 = arith.cmpf ogt, %228, %239 : vector<8x128xf32>
    %cst_69 = arith.constant 0.000000e+00 : f32
    %241 = vector.broadcast %cst_69 : f32 to vector<8x128xf32>
    %242 = arith.select %240, %238, %241 : vector<8x128xi1>, vector<8x128xf32>
    %cst_70 = arith.constant 2.000000e+00 : f32
    %243 = vector.broadcast %cst_70 : f32 to vector<8x128xf32>
    %244 = arith.select %233, %243, %242 : vector<8x128xi1>, vector<8x128xf32>
    %cst_71 = arith.constant 0.000000e+00 : f32
    %245 = vector.broadcast %cst_71 : f32 to vector<8x128xf32>
    %246 = arith.cmpf olt, %228, %245 : vector<8x128xf32>
    %cst_72 = arith.constant 1.000000e+00 : f32
    %247 = vector.broadcast %cst_72 : f32 to vector<8x128xf32>
    %248 = arith.select %246, %238, %247 : vector<8x128xi1>, vector<8x128xf32>
    %cst_73 = arith.constant -1.000000e+00 : f32
    %249 = vector.broadcast %cst_73 : f32 to vector<8x128xf32>
    %250 = arith.select %233, %249, %248 : vector<8x128xi1>, vector<8x128xf32>
    %251 = arith.maximumf %226, %244 : vector<8x128xf32>
    %252 = arith.minimumf %227, %250 : vector<8x128xf32>
    %253 = arith.subf %167, %162 : vector<8x128xf32>
    %cst_74 = arith.constant 0.000000e+00 : f32
    %254 = vector.broadcast %cst_74 : f32 to vector<8x128xf32>
    %255 = arith.cmpf oeq, %253, %254 : vector<8x128xf32>
    %cst_75 = arith.constant 0.000000e+00 : f32
    %256 = vector.broadcast %cst_75 : f32 to vector<8x128xf32>
    %257 = arith.cmpf olt, %162, %256 : vector<8x128xf32>
    %258 = arith.andi %255, %257 : vector<8x128xi1>
    %cst_76 = arith.constant 0.000000e+00 : f32
    %259 = vector.broadcast %cst_76 : f32 to vector<8x128xf32>
    %260 = arith.subf %259, %162 : vector<8x128xf32>
    %cst_77 = arith.constant 1.000000e+00 : f32
    %261 = vector.broadcast %cst_77 : f32 to vector<8x128xf32>
    %262 = arith.select %255, %261, %253 : vector<8x128xi1>, vector<8x128xf32>
    %263 = arith.divf %260, %262 : vector<8x128xf32>
    %cst_78 = arith.constant 0.000000e+00 : f32
    %264 = vector.broadcast %cst_78 : f32 to vector<8x128xf32>
    %265 = arith.cmpf ogt, %253, %264 : vector<8x128xf32>
    %cst_79 = arith.constant 0.000000e+00 : f32
    %266 = vector.broadcast %cst_79 : f32 to vector<8x128xf32>
    %267 = arith.select %265, %263, %266 : vector<8x128xi1>, vector<8x128xf32>
    %cst_80 = arith.constant 2.000000e+00 : f32
    %268 = vector.broadcast %cst_80 : f32 to vector<8x128xf32>
    %269 = arith.select %258, %268, %267 : vector<8x128xi1>, vector<8x128xf32>
    %cst_81 = arith.constant 0.000000e+00 : f32
    %270 = vector.broadcast %cst_81 : f32 to vector<8x128xf32>
    %271 = arith.cmpf olt, %253, %270 : vector<8x128xf32>
    %cst_82 = arith.constant 1.000000e+00 : f32
    %272 = vector.broadcast %cst_82 : f32 to vector<8x128xf32>
    %273 = arith.select %271, %263, %272 : vector<8x128xi1>, vector<8x128xf32>
    %cst_83 = arith.constant -1.000000e+00 : f32
    %274 = vector.broadcast %cst_83 : f32 to vector<8x128xf32>
    %275 = arith.select %258, %274, %273 : vector<8x128xi1>, vector<8x128xf32>
    %276 = arith.maximumf %251, %269 : vector<8x128xf32>
    %277 = arith.minimumf %252, %275 : vector<8x128xf32>
    %cst_84 = arith.constant 0.000000e+00 : f32
    %278 = vector.broadcast %cst_84 : f32 to vector<8x128xf32>
    %279 = arith.maximumf %276, %278 : vector<8x128xf32>
    %cst_85 = arith.constant 1.000000e+00 : f32
    %280 = vector.broadcast %cst_85 : f32 to vector<8x128xf32>
    %281 = arith.minimumf %277, %280 : vector<8x128xf32>
    %282 = arith.mulf %279, %178 : vector<8x128xf32>
    %283 = arith.addf %43, %282 : vector<8x128xf32>
    %284 = arith.mulf %279, %179 : vector<8x128xf32>
    %285 = arith.addf %51, %284 : vector<8x128xf32>
    %286 = arith.mulf %281, %178 : vector<8x128xf32>
    %287 = arith.addf %43, %286 : vector<8x128xf32>
    %288 = arith.mulf %281, %179 : vector<8x128xf32>
    %289 = arith.addf %51, %288 : vector<8x128xf32>
    %290 = arith.cmpf ogt, %281, %279 : vector<8x128xf32>
    %291 = arith.mulf %283, %289 : vector<8x128xf32>
    %292 = arith.mulf %285, %287 : vector<8x128xf32>
    %293 = arith.subf %291, %292 : vector<8x128xf32>
    %cst_86 = arith.constant 0.000000e+00 : f32
    %294 = vector.broadcast %cst_86 : f32 to vector<8x128xf32>
    %295 = arith.select %290, %293, %294 : vector<8x128xi1>, vector<8x128xf32>
    %296 = arith.subf %47, %45 : vector<8x128xf32>
    %297 = arith.subf %55, %53 : vector<8x128xf32>
    %298 = arith.subf %106, %101 : vector<8x128xf32>
    %cst_87 = arith.constant 0.000000e+00 : f32
    %299 = vector.broadcast %cst_87 : f32 to vector<8x128xf32>
    %300 = arith.cmpf oeq, %298, %299 : vector<8x128xf32>
    %cst_88 = arith.constant 0.000000e+00 : f32
    %301 = vector.broadcast %cst_88 : f32 to vector<8x128xf32>
    %302 = arith.cmpf olt, %101, %301 : vector<8x128xf32>
    %303 = arith.andi %300, %302 : vector<8x128xi1>
    %cst_89 = arith.constant 0.000000e+00 : f32
    %304 = vector.broadcast %cst_89 : f32 to vector<8x128xf32>
    %305 = arith.subf %304, %101 : vector<8x128xf32>
    %cst_90 = arith.constant 1.000000e+00 : f32
    %306 = vector.broadcast %cst_90 : f32 to vector<8x128xf32>
    %307 = arith.select %300, %306, %298 : vector<8x128xi1>, vector<8x128xf32>
    %308 = arith.divf %305, %307 : vector<8x128xf32>
    %cst_91 = arith.constant 0.000000e+00 : f32
    %309 = vector.broadcast %cst_91 : f32 to vector<8x128xf32>
    %310 = arith.cmpf ogt, %298, %309 : vector<8x128xf32>
    %cst_92 = arith.constant 0.000000e+00 : f32
    %311 = vector.broadcast %cst_92 : f32 to vector<8x128xf32>
    %312 = arith.select %310, %308, %311 : vector<8x128xi1>, vector<8x128xf32>
    %cst_93 = arith.constant 2.000000e+00 : f32
    %313 = vector.broadcast %cst_93 : f32 to vector<8x128xf32>
    %314 = arith.select %303, %313, %312 : vector<8x128xi1>, vector<8x128xf32>
    %cst_94 = arith.constant 0.000000e+00 : f32
    %315 = vector.broadcast %cst_94 : f32 to vector<8x128xf32>
    %316 = arith.cmpf olt, %298, %315 : vector<8x128xf32>
    %cst_95 = arith.constant 1.000000e+00 : f32
    %317 = vector.broadcast %cst_95 : f32 to vector<8x128xf32>
    %318 = arith.select %316, %308, %317 : vector<8x128xi1>, vector<8x128xf32>
    %cst_96 = arith.constant -1.000000e+00 : f32
    %319 = vector.broadcast %cst_96 : f32 to vector<8x128xf32>
    %320 = arith.select %303, %319, %318 : vector<8x128xi1>, vector<8x128xf32>
    %321 = arith.subf %128, %123 : vector<8x128xf32>
    %cst_97 = arith.constant 0.000000e+00 : f32
    %322 = vector.broadcast %cst_97 : f32 to vector<8x128xf32>
    %323 = arith.cmpf oeq, %321, %322 : vector<8x128xf32>
    %cst_98 = arith.constant 0.000000e+00 : f32
    %324 = vector.broadcast %cst_98 : f32 to vector<8x128xf32>
    %325 = arith.cmpf olt, %123, %324 : vector<8x128xf32>
    %326 = arith.andi %323, %325 : vector<8x128xi1>
    %cst_99 = arith.constant 0.000000e+00 : f32
    %327 = vector.broadcast %cst_99 : f32 to vector<8x128xf32>
    %328 = arith.subf %327, %123 : vector<8x128xf32>
    %cst_100 = arith.constant 1.000000e+00 : f32
    %329 = vector.broadcast %cst_100 : f32 to vector<8x128xf32>
    %330 = arith.select %323, %329, %321 : vector<8x128xi1>, vector<8x128xf32>
    %331 = arith.divf %328, %330 : vector<8x128xf32>
    %cst_101 = arith.constant 0.000000e+00 : f32
    %332 = vector.broadcast %cst_101 : f32 to vector<8x128xf32>
    %333 = arith.cmpf ogt, %321, %332 : vector<8x128xf32>
    %cst_102 = arith.constant 0.000000e+00 : f32
    %334 = vector.broadcast %cst_102 : f32 to vector<8x128xf32>
    %335 = arith.select %333, %331, %334 : vector<8x128xi1>, vector<8x128xf32>
    %cst_103 = arith.constant 2.000000e+00 : f32
    %336 = vector.broadcast %cst_103 : f32 to vector<8x128xf32>
    %337 = arith.select %326, %336, %335 : vector<8x128xi1>, vector<8x128xf32>
    %cst_104 = arith.constant 0.000000e+00 : f32
    %338 = vector.broadcast %cst_104 : f32 to vector<8x128xf32>
    %339 = arith.cmpf olt, %321, %338 : vector<8x128xf32>
    %cst_105 = arith.constant 1.000000e+00 : f32
    %340 = vector.broadcast %cst_105 : f32 to vector<8x128xf32>
    %341 = arith.select %339, %331, %340 : vector<8x128xi1>, vector<8x128xf32>
    %cst_106 = arith.constant -1.000000e+00 : f32
    %342 = vector.broadcast %cst_106 : f32 to vector<8x128xf32>
    %343 = arith.select %326, %342, %341 : vector<8x128xi1>, vector<8x128xf32>
    %344 = arith.maximumf %314, %337 : vector<8x128xf32>
    %345 = arith.minimumf %320, %343 : vector<8x128xf32>
    %346 = arith.subf %150, %145 : vector<8x128xf32>
    %cst_107 = arith.constant 0.000000e+00 : f32
    %347 = vector.broadcast %cst_107 : f32 to vector<8x128xf32>
    %348 = arith.cmpf oeq, %346, %347 : vector<8x128xf32>
    %cst_108 = arith.constant 0.000000e+00 : f32
    %349 = vector.broadcast %cst_108 : f32 to vector<8x128xf32>
    %350 = arith.cmpf olt, %145, %349 : vector<8x128xf32>
    %351 = arith.andi %348, %350 : vector<8x128xi1>
    %cst_109 = arith.constant 0.000000e+00 : f32
    %352 = vector.broadcast %cst_109 : f32 to vector<8x128xf32>
    %353 = arith.subf %352, %145 : vector<8x128xf32>
    %cst_110 = arith.constant 1.000000e+00 : f32
    %354 = vector.broadcast %cst_110 : f32 to vector<8x128xf32>
    %355 = arith.select %348, %354, %346 : vector<8x128xi1>, vector<8x128xf32>
    %356 = arith.divf %353, %355 : vector<8x128xf32>
    %cst_111 = arith.constant 0.000000e+00 : f32
    %357 = vector.broadcast %cst_111 : f32 to vector<8x128xf32>
    %358 = arith.cmpf ogt, %346, %357 : vector<8x128xf32>
    %cst_112 = arith.constant 0.000000e+00 : f32
    %359 = vector.broadcast %cst_112 : f32 to vector<8x128xf32>
    %360 = arith.select %358, %356, %359 : vector<8x128xi1>, vector<8x128xf32>
    %cst_113 = arith.constant 2.000000e+00 : f32
    %361 = vector.broadcast %cst_113 : f32 to vector<8x128xf32>
    %362 = arith.select %351, %361, %360 : vector<8x128xi1>, vector<8x128xf32>
    %cst_114 = arith.constant 0.000000e+00 : f32
    %363 = vector.broadcast %cst_114 : f32 to vector<8x128xf32>
    %364 = arith.cmpf olt, %346, %363 : vector<8x128xf32>
    %cst_115 = arith.constant 1.000000e+00 : f32
    %365 = vector.broadcast %cst_115 : f32 to vector<8x128xf32>
    %366 = arith.select %364, %356, %365 : vector<8x128xi1>, vector<8x128xf32>
    %cst_116 = arith.constant -1.000000e+00 : f32
    %367 = vector.broadcast %cst_116 : f32 to vector<8x128xf32>
    %368 = arith.select %351, %367, %366 : vector<8x128xi1>, vector<8x128xf32>
    %369 = arith.maximumf %344, %362 : vector<8x128xf32>
    %370 = arith.minimumf %345, %368 : vector<8x128xf32>
    %371 = arith.subf %172, %167 : vector<8x128xf32>
    %cst_117 = arith.constant 0.000000e+00 : f32
    %372 = vector.broadcast %cst_117 : f32 to vector<8x128xf32>
    %373 = arith.cmpf oeq, %371, %372 : vector<8x128xf32>
    %cst_118 = arith.constant 0.000000e+00 : f32
    %374 = vector.broadcast %cst_118 : f32 to vector<8x128xf32>
    %375 = arith.cmpf olt, %167, %374 : vector<8x128xf32>
    %376 = arith.andi %373, %375 : vector<8x128xi1>
    %cst_119 = arith.constant 0.000000e+00 : f32
    %377 = vector.broadcast %cst_119 : f32 to vector<8x128xf32>
    %378 = arith.subf %377, %167 : vector<8x128xf32>
    %cst_120 = arith.constant 1.000000e+00 : f32
    %379 = vector.broadcast %cst_120 : f32 to vector<8x128xf32>
    %380 = arith.select %373, %379, %371 : vector<8x128xi1>, vector<8x128xf32>
    %381 = arith.divf %378, %380 : vector<8x128xf32>
    %cst_121 = arith.constant 0.000000e+00 : f32
    %382 = vector.broadcast %cst_121 : f32 to vector<8x128xf32>
    %383 = arith.cmpf ogt, %371, %382 : vector<8x128xf32>
    %cst_122 = arith.constant 0.000000e+00 : f32
    %384 = vector.broadcast %cst_122 : f32 to vector<8x128xf32>
    %385 = arith.select %383, %381, %384 : vector<8x128xi1>, vector<8x128xf32>
    %cst_123 = arith.constant 2.000000e+00 : f32
    %386 = vector.broadcast %cst_123 : f32 to vector<8x128xf32>
    %387 = arith.select %376, %386, %385 : vector<8x128xi1>, vector<8x128xf32>
    %cst_124 = arith.constant 0.000000e+00 : f32
    %388 = vector.broadcast %cst_124 : f32 to vector<8x128xf32>
    %389 = arith.cmpf olt, %371, %388 : vector<8x128xf32>
    %cst_125 = arith.constant 1.000000e+00 : f32
    %390 = vector.broadcast %cst_125 : f32 to vector<8x128xf32>
    %391 = arith.select %389, %381, %390 : vector<8x128xi1>, vector<8x128xf32>
    %cst_126 = arith.constant -1.000000e+00 : f32
    %392 = vector.broadcast %cst_126 : f32 to vector<8x128xf32>
    %393 = arith.select %376, %392, %391 : vector<8x128xi1>, vector<8x128xf32>
    %394 = arith.maximumf %369, %387 : vector<8x128xf32>
    %395 = arith.minimumf %370, %393 : vector<8x128xf32>
    %cst_127 = arith.constant 0.000000e+00 : f32
    %396 = vector.broadcast %cst_127 : f32 to vector<8x128xf32>
    %397 = arith.maximumf %394, %396 : vector<8x128xf32>
    %cst_128 = arith.constant 1.000000e+00 : f32
    %398 = vector.broadcast %cst_128 : f32 to vector<8x128xf32>
    %399 = arith.minimumf %395, %398 : vector<8x128xf32>
    %400 = arith.mulf %397, %296 : vector<8x128xf32>
    %401 = arith.addf %45, %400 : vector<8x128xf32>
    %402 = arith.mulf %397, %297 : vector<8x128xf32>
    %403 = arith.addf %53, %402 : vector<8x128xf32>
    %404 = arith.mulf %399, %296 : vector<8x128xf32>
    %405 = arith.addf %45, %404 : vector<8x128xf32>
    %406 = arith.mulf %399, %297 : vector<8x128xf32>
    %407 = arith.addf %53, %406 : vector<8x128xf32>
    %408 = arith.cmpf ogt, %399, %397 : vector<8x128xf32>
    %409 = arith.mulf %401, %407 : vector<8x128xf32>
    %410 = arith.mulf %403, %405 : vector<8x128xf32>
    %411 = arith.subf %409, %410 : vector<8x128xf32>
    %cst_129 = arith.constant 0.000000e+00 : f32
    %412 = vector.broadcast %cst_129 : f32 to vector<8x128xf32>
    %413 = arith.select %408, %411, %412 : vector<8x128xi1>, vector<8x128xf32>
    %414 = arith.addf %295, %413 : vector<8x128xf32>
    %415 = arith.subf %49, %47 : vector<8x128xf32>
    %416 = arith.subf %57, %55 : vector<8x128xf32>
    %417 = arith.subf %111, %106 : vector<8x128xf32>
    %cst_130 = arith.constant 0.000000e+00 : f32
    %418 = vector.broadcast %cst_130 : f32 to vector<8x128xf32>
    %419 = arith.cmpf oeq, %417, %418 : vector<8x128xf32>
    %cst_131 = arith.constant 0.000000e+00 : f32
    %420 = vector.broadcast %cst_131 : f32 to vector<8x128xf32>
    %421 = arith.cmpf olt, %106, %420 : vector<8x128xf32>
    %422 = arith.andi %419, %421 : vector<8x128xi1>
    %cst_132 = arith.constant 0.000000e+00 : f32
    %423 = vector.broadcast %cst_132 : f32 to vector<8x128xf32>
    %424 = arith.subf %423, %106 : vector<8x128xf32>
    %cst_133 = arith.constant 1.000000e+00 : f32
    %425 = vector.broadcast %cst_133 : f32 to vector<8x128xf32>
    %426 = arith.select %419, %425, %417 : vector<8x128xi1>, vector<8x128xf32>
    %427 = arith.divf %424, %426 : vector<8x128xf32>
    %cst_134 = arith.constant 0.000000e+00 : f32
    %428 = vector.broadcast %cst_134 : f32 to vector<8x128xf32>
    %429 = arith.cmpf ogt, %417, %428 : vector<8x128xf32>
    %cst_135 = arith.constant 0.000000e+00 : f32
    %430 = vector.broadcast %cst_135 : f32 to vector<8x128xf32>
    %431 = arith.select %429, %427, %430 : vector<8x128xi1>, vector<8x128xf32>
    %cst_136 = arith.constant 2.000000e+00 : f32
    %432 = vector.broadcast %cst_136 : f32 to vector<8x128xf32>
    %433 = arith.select %422, %432, %431 : vector<8x128xi1>, vector<8x128xf32>
    %cst_137 = arith.constant 0.000000e+00 : f32
    %434 = vector.broadcast %cst_137 : f32 to vector<8x128xf32>
    %435 = arith.cmpf olt, %417, %434 : vector<8x128xf32>
    %cst_138 = arith.constant 1.000000e+00 : f32
    %436 = vector.broadcast %cst_138 : f32 to vector<8x128xf32>
    %437 = arith.select %435, %427, %436 : vector<8x128xi1>, vector<8x128xf32>
    %cst_139 = arith.constant -1.000000e+00 : f32
    %438 = vector.broadcast %cst_139 : f32 to vector<8x128xf32>
    %439 = arith.select %422, %438, %437 : vector<8x128xi1>, vector<8x128xf32>
    %440 = arith.subf %133, %128 : vector<8x128xf32>
    %cst_140 = arith.constant 0.000000e+00 : f32
    %441 = vector.broadcast %cst_140 : f32 to vector<8x128xf32>
    %442 = arith.cmpf oeq, %440, %441 : vector<8x128xf32>
    %cst_141 = arith.constant 0.000000e+00 : f32
    %443 = vector.broadcast %cst_141 : f32 to vector<8x128xf32>
    %444 = arith.cmpf olt, %128, %443 : vector<8x128xf32>
    %445 = arith.andi %442, %444 : vector<8x128xi1>
    %cst_142 = arith.constant 0.000000e+00 : f32
    %446 = vector.broadcast %cst_142 : f32 to vector<8x128xf32>
    %447 = arith.subf %446, %128 : vector<8x128xf32>
    %cst_143 = arith.constant 1.000000e+00 : f32
    %448 = vector.broadcast %cst_143 : f32 to vector<8x128xf32>
    %449 = arith.select %442, %448, %440 : vector<8x128xi1>, vector<8x128xf32>
    %450 = arith.divf %447, %449 : vector<8x128xf32>
    %cst_144 = arith.constant 0.000000e+00 : f32
    %451 = vector.broadcast %cst_144 : f32 to vector<8x128xf32>
    %452 = arith.cmpf ogt, %440, %451 : vector<8x128xf32>
    %cst_145 = arith.constant 0.000000e+00 : f32
    %453 = vector.broadcast %cst_145 : f32 to vector<8x128xf32>
    %454 = arith.select %452, %450, %453 : vector<8x128xi1>, vector<8x128xf32>
    %cst_146 = arith.constant 2.000000e+00 : f32
    %455 = vector.broadcast %cst_146 : f32 to vector<8x128xf32>
    %456 = arith.select %445, %455, %454 : vector<8x128xi1>, vector<8x128xf32>
    %cst_147 = arith.constant 0.000000e+00 : f32
    %457 = vector.broadcast %cst_147 : f32 to vector<8x128xf32>
    %458 = arith.cmpf olt, %440, %457 : vector<8x128xf32>
    %cst_148 = arith.constant 1.000000e+00 : f32
    %459 = vector.broadcast %cst_148 : f32 to vector<8x128xf32>
    %460 = arith.select %458, %450, %459 : vector<8x128xi1>, vector<8x128xf32>
    %cst_149 = arith.constant -1.000000e+00 : f32
    %461 = vector.broadcast %cst_149 : f32 to vector<8x128xf32>
    %462 = arith.select %445, %461, %460 : vector<8x128xi1>, vector<8x128xf32>
    %463 = arith.maximumf %433, %456 : vector<8x128xf32>
    %464 = arith.minimumf %439, %462 : vector<8x128xf32>
    %465 = arith.subf %155, %150 : vector<8x128xf32>
    %cst_150 = arith.constant 0.000000e+00 : f32
    %466 = vector.broadcast %cst_150 : f32 to vector<8x128xf32>
    %467 = arith.cmpf oeq, %465, %466 : vector<8x128xf32>
    %cst_151 = arith.constant 0.000000e+00 : f32
    %468 = vector.broadcast %cst_151 : f32 to vector<8x128xf32>
    %469 = arith.cmpf olt, %150, %468 : vector<8x128xf32>
    %470 = arith.andi %467, %469 : vector<8x128xi1>
    %cst_152 = arith.constant 0.000000e+00 : f32
    %471 = vector.broadcast %cst_152 : f32 to vector<8x128xf32>
    %472 = arith.subf %471, %150 : vector<8x128xf32>
    %cst_153 = arith.constant 1.000000e+00 : f32
    %473 = vector.broadcast %cst_153 : f32 to vector<8x128xf32>
    %474 = arith.select %467, %473, %465 : vector<8x128xi1>, vector<8x128xf32>
    %475 = arith.divf %472, %474 : vector<8x128xf32>
    %cst_154 = arith.constant 0.000000e+00 : f32
    %476 = vector.broadcast %cst_154 : f32 to vector<8x128xf32>
    %477 = arith.cmpf ogt, %465, %476 : vector<8x128xf32>
    %cst_155 = arith.constant 0.000000e+00 : f32
    %478 = vector.broadcast %cst_155 : f32 to vector<8x128xf32>
    %479 = arith.select %477, %475, %478 : vector<8x128xi1>, vector<8x128xf32>
    %cst_156 = arith.constant 2.000000e+00 : f32
    %480 = vector.broadcast %cst_156 : f32 to vector<8x128xf32>
    %481 = arith.select %470, %480, %479 : vector<8x128xi1>, vector<8x128xf32>
    %cst_157 = arith.constant 0.000000e+00 : f32
    %482 = vector.broadcast %cst_157 : f32 to vector<8x128xf32>
    %483 = arith.cmpf olt, %465, %482 : vector<8x128xf32>
    %cst_158 = arith.constant 1.000000e+00 : f32
    %484 = vector.broadcast %cst_158 : f32 to vector<8x128xf32>
    %485 = arith.select %483, %475, %484 : vector<8x128xi1>, vector<8x128xf32>
    %cst_159 = arith.constant -1.000000e+00 : f32
    %486 = vector.broadcast %cst_159 : f32 to vector<8x128xf32>
    %487 = arith.select %470, %486, %485 : vector<8x128xi1>, vector<8x128xf32>
    %488 = arith.maximumf %463, %481 : vector<8x128xf32>
    %489 = arith.minimumf %464, %487 : vector<8x128xf32>
    %490 = arith.subf %177, %172 : vector<8x128xf32>
    %cst_160 = arith.constant 0.000000e+00 : f32
    %491 = vector.broadcast %cst_160 : f32 to vector<8x128xf32>
    %492 = arith.cmpf oeq, %490, %491 : vector<8x128xf32>
    %cst_161 = arith.constant 0.000000e+00 : f32
    %493 = vector.broadcast %cst_161 : f32 to vector<8x128xf32>
    %494 = arith.cmpf olt, %172, %493 : vector<8x128xf32>
    %495 = arith.andi %492, %494 : vector<8x128xi1>
    %cst_162 = arith.constant 0.000000e+00 : f32
    %496 = vector.broadcast %cst_162 : f32 to vector<8x128xf32>
    %497 = arith.subf %496, %172 : vector<8x128xf32>
    %cst_163 = arith.constant 1.000000e+00 : f32
    %498 = vector.broadcast %cst_163 : f32 to vector<8x128xf32>
    %499 = arith.select %492, %498, %490 : vector<8x128xi1>, vector<8x128xf32>
    %500 = arith.divf %497, %499 : vector<8x128xf32>
    %cst_164 = arith.constant 0.000000e+00 : f32
    %501 = vector.broadcast %cst_164 : f32 to vector<8x128xf32>
    %502 = arith.cmpf ogt, %490, %501 : vector<8x128xf32>
    %cst_165 = arith.constant 0.000000e+00 : f32
    %503 = vector.broadcast %cst_165 : f32 to vector<8x128xf32>
    %504 = arith.select %502, %500, %503 : vector<8x128xi1>, vector<8x128xf32>
    %cst_166 = arith.constant 2.000000e+00 : f32
    %505 = vector.broadcast %cst_166 : f32 to vector<8x128xf32>
    %506 = arith.select %495, %505, %504 : vector<8x128xi1>, vector<8x128xf32>
    %cst_167 = arith.constant 0.000000e+00 : f32
    %507 = vector.broadcast %cst_167 : f32 to vector<8x128xf32>
    %508 = arith.cmpf olt, %490, %507 : vector<8x128xf32>
    %cst_168 = arith.constant 1.000000e+00 : f32
    %509 = vector.broadcast %cst_168 : f32 to vector<8x128xf32>
    %510 = arith.select %508, %500, %509 : vector<8x128xi1>, vector<8x128xf32>
    %cst_169 = arith.constant -1.000000e+00 : f32
    %511 = vector.broadcast %cst_169 : f32 to vector<8x128xf32>
    %512 = arith.select %495, %511, %510 : vector<8x128xi1>, vector<8x128xf32>
    %513 = arith.maximumf %488, %506 : vector<8x128xf32>
    %514 = arith.minimumf %489, %512 : vector<8x128xf32>
    %cst_170 = arith.constant 0.000000e+00 : f32
    %515 = vector.broadcast %cst_170 : f32 to vector<8x128xf32>
    %516 = arith.maximumf %513, %515 : vector<8x128xf32>
    %cst_171 = arith.constant 1.000000e+00 : f32
    %517 = vector.broadcast %cst_171 : f32 to vector<8x128xf32>
    %518 = arith.minimumf %514, %517 : vector<8x128xf32>
    %519 = arith.mulf %516, %415 : vector<8x128xf32>
    %520 = arith.addf %47, %519 : vector<8x128xf32>
    %521 = arith.mulf %516, %416 : vector<8x128xf32>
    %522 = arith.addf %55, %521 : vector<8x128xf32>
    %523 = arith.mulf %518, %415 : vector<8x128xf32>
    %524 = arith.addf %47, %523 : vector<8x128xf32>
    %525 = arith.mulf %518, %416 : vector<8x128xf32>
    %526 = arith.addf %55, %525 : vector<8x128xf32>
    %527 = arith.cmpf ogt, %518, %516 : vector<8x128xf32>
    %528 = arith.mulf %520, %526 : vector<8x128xf32>
    %529 = arith.mulf %522, %524 : vector<8x128xf32>
    %530 = arith.subf %528, %529 : vector<8x128xf32>
    %cst_172 = arith.constant 0.000000e+00 : f32
    %531 = vector.broadcast %cst_172 : f32 to vector<8x128xf32>
    %532 = arith.select %527, %530, %531 : vector<8x128xi1>, vector<8x128xf32>
    %533 = arith.addf %414, %532 : vector<8x128xf32>
    %534 = arith.subf %43, %49 : vector<8x128xf32>
    %535 = arith.subf %51, %57 : vector<8x128xf32>
    %536 = arith.subf %96, %111 : vector<8x128xf32>
    %cst_173 = arith.constant 0.000000e+00 : f32
    %537 = vector.broadcast %cst_173 : f32 to vector<8x128xf32>
    %538 = arith.cmpf oeq, %536, %537 : vector<8x128xf32>
    %cst_174 = arith.constant 0.000000e+00 : f32
    %539 = vector.broadcast %cst_174 : f32 to vector<8x128xf32>
    %540 = arith.cmpf olt, %111, %539 : vector<8x128xf32>
    %541 = arith.andi %538, %540 : vector<8x128xi1>
    %cst_175 = arith.constant 0.000000e+00 : f32
    %542 = vector.broadcast %cst_175 : f32 to vector<8x128xf32>
    %543 = arith.subf %542, %111 : vector<8x128xf32>
    %cst_176 = arith.constant 1.000000e+00 : f32
    %544 = vector.broadcast %cst_176 : f32 to vector<8x128xf32>
    %545 = arith.select %538, %544, %536 : vector<8x128xi1>, vector<8x128xf32>
    %546 = arith.divf %543, %545 : vector<8x128xf32>
    %cst_177 = arith.constant 0.000000e+00 : f32
    %547 = vector.broadcast %cst_177 : f32 to vector<8x128xf32>
    %548 = arith.cmpf ogt, %536, %547 : vector<8x128xf32>
    %cst_178 = arith.constant 0.000000e+00 : f32
    %549 = vector.broadcast %cst_178 : f32 to vector<8x128xf32>
    %550 = arith.select %548, %546, %549 : vector<8x128xi1>, vector<8x128xf32>
    %cst_179 = arith.constant 2.000000e+00 : f32
    %551 = vector.broadcast %cst_179 : f32 to vector<8x128xf32>
    %552 = arith.select %541, %551, %550 : vector<8x128xi1>, vector<8x128xf32>
    %cst_180 = arith.constant 0.000000e+00 : f32
    %553 = vector.broadcast %cst_180 : f32 to vector<8x128xf32>
    %554 = arith.cmpf olt, %536, %553 : vector<8x128xf32>
    %cst_181 = arith.constant 1.000000e+00 : f32
    %555 = vector.broadcast %cst_181 : f32 to vector<8x128xf32>
    %556 = arith.select %554, %546, %555 : vector<8x128xi1>, vector<8x128xf32>
    %cst_182 = arith.constant -1.000000e+00 : f32
    %557 = vector.broadcast %cst_182 : f32 to vector<8x128xf32>
    %558 = arith.select %541, %557, %556 : vector<8x128xi1>, vector<8x128xf32>
    %559 = arith.subf %118, %133 : vector<8x128xf32>
    %cst_183 = arith.constant 0.000000e+00 : f32
    %560 = vector.broadcast %cst_183 : f32 to vector<8x128xf32>
    %561 = arith.cmpf oeq, %559, %560 : vector<8x128xf32>
    %cst_184 = arith.constant 0.000000e+00 : f32
    %562 = vector.broadcast %cst_184 : f32 to vector<8x128xf32>
    %563 = arith.cmpf olt, %133, %562 : vector<8x128xf32>
    %564 = arith.andi %561, %563 : vector<8x128xi1>
    %cst_185 = arith.constant 0.000000e+00 : f32
    %565 = vector.broadcast %cst_185 : f32 to vector<8x128xf32>
    %566 = arith.subf %565, %133 : vector<8x128xf32>
    %cst_186 = arith.constant 1.000000e+00 : f32
    %567 = vector.broadcast %cst_186 : f32 to vector<8x128xf32>
    %568 = arith.select %561, %567, %559 : vector<8x128xi1>, vector<8x128xf32>
    %569 = arith.divf %566, %568 : vector<8x128xf32>
    %cst_187 = arith.constant 0.000000e+00 : f32
    %570 = vector.broadcast %cst_187 : f32 to vector<8x128xf32>
    %571 = arith.cmpf ogt, %559, %570 : vector<8x128xf32>
    %cst_188 = arith.constant 0.000000e+00 : f32
    %572 = vector.broadcast %cst_188 : f32 to vector<8x128xf32>
    %573 = arith.select %571, %569, %572 : vector<8x128xi1>, vector<8x128xf32>
    %cst_189 = arith.constant 2.000000e+00 : f32
    %574 = vector.broadcast %cst_189 : f32 to vector<8x128xf32>
    %575 = arith.select %564, %574, %573 : vector<8x128xi1>, vector<8x128xf32>
    %cst_190 = arith.constant 0.000000e+00 : f32
    %576 = vector.broadcast %cst_190 : f32 to vector<8x128xf32>
    %577 = arith.cmpf olt, %559, %576 : vector<8x128xf32>
    %cst_191 = arith.constant 1.000000e+00 : f32
    %578 = vector.broadcast %cst_191 : f32 to vector<8x128xf32>
    %579 = arith.select %577, %569, %578 : vector<8x128xi1>, vector<8x128xf32>
    %cst_192 = arith.constant -1.000000e+00 : f32
    %580 = vector.broadcast %cst_192 : f32 to vector<8x128xf32>
    %581 = arith.select %564, %580, %579 : vector<8x128xi1>, vector<8x128xf32>
    %582 = arith.maximumf %552, %575 : vector<8x128xf32>
    %583 = arith.minimumf %558, %581 : vector<8x128xf32>
    %584 = arith.subf %140, %155 : vector<8x128xf32>
    %cst_193 = arith.constant 0.000000e+00 : f32
    %585 = vector.broadcast %cst_193 : f32 to vector<8x128xf32>
    %586 = arith.cmpf oeq, %584, %585 : vector<8x128xf32>
    %cst_194 = arith.constant 0.000000e+00 : f32
    %587 = vector.broadcast %cst_194 : f32 to vector<8x128xf32>
    %588 = arith.cmpf olt, %155, %587 : vector<8x128xf32>
    %589 = arith.andi %586, %588 : vector<8x128xi1>
    %cst_195 = arith.constant 0.000000e+00 : f32
    %590 = vector.broadcast %cst_195 : f32 to vector<8x128xf32>
    %591 = arith.subf %590, %155 : vector<8x128xf32>
    %cst_196 = arith.constant 1.000000e+00 : f32
    %592 = vector.broadcast %cst_196 : f32 to vector<8x128xf32>
    %593 = arith.select %586, %592, %584 : vector<8x128xi1>, vector<8x128xf32>
    %594 = arith.divf %591, %593 : vector<8x128xf32>
    %cst_197 = arith.constant 0.000000e+00 : f32
    %595 = vector.broadcast %cst_197 : f32 to vector<8x128xf32>
    %596 = arith.cmpf ogt, %584, %595 : vector<8x128xf32>
    %cst_198 = arith.constant 0.000000e+00 : f32
    %597 = vector.broadcast %cst_198 : f32 to vector<8x128xf32>
    %598 = arith.select %596, %594, %597 : vector<8x128xi1>, vector<8x128xf32>
    %cst_199 = arith.constant 2.000000e+00 : f32
    %599 = vector.broadcast %cst_199 : f32 to vector<8x128xf32>
    %600 = arith.select %589, %599, %598 : vector<8x128xi1>, vector<8x128xf32>
    %cst_200 = arith.constant 0.000000e+00 : f32
    %601 = vector.broadcast %cst_200 : f32 to vector<8x128xf32>
    %602 = arith.cmpf olt, %584, %601 : vector<8x128xf32>
    %cst_201 = arith.constant 1.000000e+00 : f32
    %603 = vector.broadcast %cst_201 : f32 to vector<8x128xf32>
    %604 = arith.select %602, %594, %603 : vector<8x128xi1>, vector<8x128xf32>
    %cst_202 = arith.constant -1.000000e+00 : f32
    %605 = vector.broadcast %cst_202 : f32 to vector<8x128xf32>
    %606 = arith.select %589, %605, %604 : vector<8x128xi1>, vector<8x128xf32>
    %607 = arith.maximumf %582, %600 : vector<8x128xf32>
    %608 = arith.minimumf %583, %606 : vector<8x128xf32>
    %609 = arith.subf %162, %177 : vector<8x128xf32>
    %cst_203 = arith.constant 0.000000e+00 : f32
    %610 = vector.broadcast %cst_203 : f32 to vector<8x128xf32>
    %611 = arith.cmpf oeq, %609, %610 : vector<8x128xf32>
    %cst_204 = arith.constant 0.000000e+00 : f32
    %612 = vector.broadcast %cst_204 : f32 to vector<8x128xf32>
    %613 = arith.cmpf olt, %177, %612 : vector<8x128xf32>
    %614 = arith.andi %611, %613 : vector<8x128xi1>
    %cst_205 = arith.constant 0.000000e+00 : f32
    %615 = vector.broadcast %cst_205 : f32 to vector<8x128xf32>
    %616 = arith.subf %615, %177 : vector<8x128xf32>
    %cst_206 = arith.constant 1.000000e+00 : f32
    %617 = vector.broadcast %cst_206 : f32 to vector<8x128xf32>
    %618 = arith.select %611, %617, %609 : vector<8x128xi1>, vector<8x128xf32>
    %619 = arith.divf %616, %618 : vector<8x128xf32>
    %cst_207 = arith.constant 0.000000e+00 : f32
    %620 = vector.broadcast %cst_207 : f32 to vector<8x128xf32>
    %621 = arith.cmpf ogt, %609, %620 : vector<8x128xf32>
    %cst_208 = arith.constant 0.000000e+00 : f32
    %622 = vector.broadcast %cst_208 : f32 to vector<8x128xf32>
    %623 = arith.select %621, %619, %622 : vector<8x128xi1>, vector<8x128xf32>
    %cst_209 = arith.constant 2.000000e+00 : f32
    %624 = vector.broadcast %cst_209 : f32 to vector<8x128xf32>
    %625 = arith.select %614, %624, %623 : vector<8x128xi1>, vector<8x128xf32>
    %cst_210 = arith.constant 0.000000e+00 : f32
    %626 = vector.broadcast %cst_210 : f32 to vector<8x128xf32>
    %627 = arith.cmpf olt, %609, %626 : vector<8x128xf32>
    %cst_211 = arith.constant 1.000000e+00 : f32
    %628 = vector.broadcast %cst_211 : f32 to vector<8x128xf32>
    %629 = arith.select %627, %619, %628 : vector<8x128xi1>, vector<8x128xf32>
    %cst_212 = arith.constant -1.000000e+00 : f32
    %630 = vector.broadcast %cst_212 : f32 to vector<8x128xf32>
    %631 = arith.select %614, %630, %629 : vector<8x128xi1>, vector<8x128xf32>
    %632 = arith.maximumf %607, %625 : vector<8x128xf32>
    %633 = arith.minimumf %608, %631 : vector<8x128xf32>
    %cst_213 = arith.constant 0.000000e+00 : f32
    %634 = vector.broadcast %cst_213 : f32 to vector<8x128xf32>
    %635 = arith.maximumf %632, %634 : vector<8x128xf32>
    %cst_214 = arith.constant 1.000000e+00 : f32
    %636 = vector.broadcast %cst_214 : f32 to vector<8x128xf32>
    %637 = arith.minimumf %633, %636 : vector<8x128xf32>
    %638 = arith.mulf %635, %534 : vector<8x128xf32>
    %639 = arith.addf %49, %638 : vector<8x128xf32>
    %640 = arith.mulf %635, %535 : vector<8x128xf32>
    %641 = arith.addf %57, %640 : vector<8x128xf32>
    %642 = arith.mulf %637, %534 : vector<8x128xf32>
    %643 = arith.addf %49, %642 : vector<8x128xf32>
    %644 = arith.mulf %637, %535 : vector<8x128xf32>
    %645 = arith.addf %57, %644 : vector<8x128xf32>
    %646 = arith.cmpf ogt, %637, %635 : vector<8x128xf32>
    %647 = arith.mulf %639, %645 : vector<8x128xf32>
    %648 = arith.mulf %641, %643 : vector<8x128xf32>
    %649 = arith.subf %647, %648 : vector<8x128xf32>
    %cst_215 = arith.constant 0.000000e+00 : f32
    %650 = vector.broadcast %cst_215 : f32 to vector<8x128xf32>
    %651 = arith.select %646, %649, %650 : vector<8x128xi1>, vector<8x128xf32>
    %652 = arith.addf %533, %651 : vector<8x128xf32>
    %653 = arith.subf %45, %43 : vector<8x128xf32>
    %654 = arith.subf %53, %51 : vector<8x128xf32>
    %655 = arith.subf %83, %51 : vector<8x128xf32>
    %656 = arith.mulf %653, %655 : vector<8x128xf32>
    %657 = arith.subf %75, %43 : vector<8x128xf32>
    %658 = arith.mulf %654, %657 : vector<8x128xf32>
    %659 = arith.subf %656, %658 : vector<8x128xf32>
    %660 = arith.subf %85, %51 : vector<8x128xf32>
    %661 = arith.mulf %653, %660 : vector<8x128xf32>
    %662 = arith.subf %77, %43 : vector<8x128xf32>
    %663 = arith.mulf %654, %662 : vector<8x128xf32>
    %664 = arith.subf %661, %663 : vector<8x128xf32>
    %665 = arith.subf %87, %51 : vector<8x128xf32>
    %666 = arith.mulf %653, %665 : vector<8x128xf32>
    %667 = arith.subf %79, %43 : vector<8x128xf32>
    %668 = arith.mulf %654, %667 : vector<8x128xf32>
    %669 = arith.subf %666, %668 : vector<8x128xf32>
    %670 = arith.subf %89, %51 : vector<8x128xf32>
    %671 = arith.mulf %653, %670 : vector<8x128xf32>
    %672 = arith.subf %81, %43 : vector<8x128xf32>
    %673 = arith.mulf %654, %672 : vector<8x128xf32>
    %674 = arith.subf %671, %673 : vector<8x128xf32>
    %675 = arith.subf %47, %45 : vector<8x128xf32>
    %676 = arith.subf %55, %53 : vector<8x128xf32>
    %677 = arith.subf %83, %53 : vector<8x128xf32>
    %678 = arith.mulf %675, %677 : vector<8x128xf32>
    %679 = arith.subf %75, %45 : vector<8x128xf32>
    %680 = arith.mulf %676, %679 : vector<8x128xf32>
    %681 = arith.subf %678, %680 : vector<8x128xf32>
    %682 = arith.subf %85, %53 : vector<8x128xf32>
    %683 = arith.mulf %675, %682 : vector<8x128xf32>
    %684 = arith.subf %77, %45 : vector<8x128xf32>
    %685 = arith.mulf %676, %684 : vector<8x128xf32>
    %686 = arith.subf %683, %685 : vector<8x128xf32>
    %687 = arith.subf %87, %53 : vector<8x128xf32>
    %688 = arith.mulf %675, %687 : vector<8x128xf32>
    %689 = arith.subf %79, %45 : vector<8x128xf32>
    %690 = arith.mulf %676, %689 : vector<8x128xf32>
    %691 = arith.subf %688, %690 : vector<8x128xf32>
    %692 = arith.subf %89, %53 : vector<8x128xf32>
    %693 = arith.mulf %675, %692 : vector<8x128xf32>
    %694 = arith.subf %81, %45 : vector<8x128xf32>
    %695 = arith.mulf %676, %694 : vector<8x128xf32>
    %696 = arith.subf %693, %695 : vector<8x128xf32>
    %697 = arith.subf %49, %47 : vector<8x128xf32>
    %698 = arith.subf %57, %55 : vector<8x128xf32>
    %699 = arith.subf %83, %55 : vector<8x128xf32>
    %700 = arith.mulf %697, %699 : vector<8x128xf32>
    %701 = arith.subf %75, %47 : vector<8x128xf32>
    %702 = arith.mulf %698, %701 : vector<8x128xf32>
    %703 = arith.subf %700, %702 : vector<8x128xf32>
    %704 = arith.subf %85, %55 : vector<8x128xf32>
    %705 = arith.mulf %697, %704 : vector<8x128xf32>
    %706 = arith.subf %77, %47 : vector<8x128xf32>
    %707 = arith.mulf %698, %706 : vector<8x128xf32>
    %708 = arith.subf %705, %707 : vector<8x128xf32>
    %709 = arith.subf %87, %55 : vector<8x128xf32>
    %710 = arith.mulf %697, %709 : vector<8x128xf32>
    %711 = arith.subf %79, %47 : vector<8x128xf32>
    %712 = arith.mulf %698, %711 : vector<8x128xf32>
    %713 = arith.subf %710, %712 : vector<8x128xf32>
    %714 = arith.subf %89, %55 : vector<8x128xf32>
    %715 = arith.mulf %697, %714 : vector<8x128xf32>
    %716 = arith.subf %81, %47 : vector<8x128xf32>
    %717 = arith.mulf %698, %716 : vector<8x128xf32>
    %718 = arith.subf %715, %717 : vector<8x128xf32>
    %719 = arith.subf %43, %49 : vector<8x128xf32>
    %720 = arith.subf %51, %57 : vector<8x128xf32>
    %721 = arith.subf %83, %57 : vector<8x128xf32>
    %722 = arith.mulf %719, %721 : vector<8x128xf32>
    %723 = arith.subf %75, %49 : vector<8x128xf32>
    %724 = arith.mulf %720, %723 : vector<8x128xf32>
    %725 = arith.subf %722, %724 : vector<8x128xf32>
    %726 = arith.subf %85, %57 : vector<8x128xf32>
    %727 = arith.mulf %719, %726 : vector<8x128xf32>
    %728 = arith.subf %77, %49 : vector<8x128xf32>
    %729 = arith.mulf %720, %728 : vector<8x128xf32>
    %730 = arith.subf %727, %729 : vector<8x128xf32>
    %731 = arith.subf %87, %57 : vector<8x128xf32>
    %732 = arith.mulf %719, %731 : vector<8x128xf32>
    %733 = arith.subf %79, %49 : vector<8x128xf32>
    %734 = arith.mulf %720, %733 : vector<8x128xf32>
    %735 = arith.subf %732, %734 : vector<8x128xf32>
    %736 = arith.subf %89, %57 : vector<8x128xf32>
    %737 = arith.mulf %719, %736 : vector<8x128xf32>
    %738 = arith.subf %81, %49 : vector<8x128xf32>
    %739 = arith.mulf %720, %738 : vector<8x128xf32>
    %740 = arith.subf %737, %739 : vector<8x128xf32>
    %741 = arith.subf %77, %75 : vector<8x128xf32>
    %742 = arith.subf %85, %83 : vector<8x128xf32>
    %743 = arith.subf %664, %659 : vector<8x128xf32>
    %cst_216 = arith.constant 0.000000e+00 : f32
    %744 = vector.broadcast %cst_216 : f32 to vector<8x128xf32>
    %745 = arith.cmpf oeq, %743, %744 : vector<8x128xf32>
    %cst_217 = arith.constant 0.000000e+00 : f32
    %746 = vector.broadcast %cst_217 : f32 to vector<8x128xf32>
    %747 = arith.cmpf olt, %659, %746 : vector<8x128xf32>
    %748 = arith.andi %745, %747 : vector<8x128xi1>
    %cst_218 = arith.constant 0.000000e+00 : f32
    %749 = vector.broadcast %cst_218 : f32 to vector<8x128xf32>
    %750 = arith.subf %749, %659 : vector<8x128xf32>
    %cst_219 = arith.constant 1.000000e+00 : f32
    %751 = vector.broadcast %cst_219 : f32 to vector<8x128xf32>
    %752 = arith.select %745, %751, %743 : vector<8x128xi1>, vector<8x128xf32>
    %753 = arith.divf %750, %752 : vector<8x128xf32>
    %cst_220 = arith.constant 0.000000e+00 : f32
    %754 = vector.broadcast %cst_220 : f32 to vector<8x128xf32>
    %755 = arith.cmpf ogt, %743, %754 : vector<8x128xf32>
    %cst_221 = arith.constant 0.000000e+00 : f32
    %756 = vector.broadcast %cst_221 : f32 to vector<8x128xf32>
    %757 = arith.select %755, %753, %756 : vector<8x128xi1>, vector<8x128xf32>
    %cst_222 = arith.constant 2.000000e+00 : f32
    %758 = vector.broadcast %cst_222 : f32 to vector<8x128xf32>
    %759 = arith.select %748, %758, %757 : vector<8x128xi1>, vector<8x128xf32>
    %cst_223 = arith.constant 0.000000e+00 : f32
    %760 = vector.broadcast %cst_223 : f32 to vector<8x128xf32>
    %761 = arith.cmpf olt, %743, %760 : vector<8x128xf32>
    %cst_224 = arith.constant 1.000000e+00 : f32
    %762 = vector.broadcast %cst_224 : f32 to vector<8x128xf32>
    %763 = arith.select %761, %753, %762 : vector<8x128xi1>, vector<8x128xf32>
    %cst_225 = arith.constant -1.000000e+00 : f32
    %764 = vector.broadcast %cst_225 : f32 to vector<8x128xf32>
    %765 = arith.select %748, %764, %763 : vector<8x128xi1>, vector<8x128xf32>
    %766 = arith.subf %686, %681 : vector<8x128xf32>
    %cst_226 = arith.constant 0.000000e+00 : f32
    %767 = vector.broadcast %cst_226 : f32 to vector<8x128xf32>
    %768 = arith.cmpf oeq, %766, %767 : vector<8x128xf32>
    %cst_227 = arith.constant 0.000000e+00 : f32
    %769 = vector.broadcast %cst_227 : f32 to vector<8x128xf32>
    %770 = arith.cmpf olt, %681, %769 : vector<8x128xf32>
    %771 = arith.andi %768, %770 : vector<8x128xi1>
    %cst_228 = arith.constant 0.000000e+00 : f32
    %772 = vector.broadcast %cst_228 : f32 to vector<8x128xf32>
    %773 = arith.subf %772, %681 : vector<8x128xf32>
    %cst_229 = arith.constant 1.000000e+00 : f32
    %774 = vector.broadcast %cst_229 : f32 to vector<8x128xf32>
    %775 = arith.select %768, %774, %766 : vector<8x128xi1>, vector<8x128xf32>
    %776 = arith.divf %773, %775 : vector<8x128xf32>
    %cst_230 = arith.constant 0.000000e+00 : f32
    %777 = vector.broadcast %cst_230 : f32 to vector<8x128xf32>
    %778 = arith.cmpf ogt, %766, %777 : vector<8x128xf32>
    %cst_231 = arith.constant 0.000000e+00 : f32
    %779 = vector.broadcast %cst_231 : f32 to vector<8x128xf32>
    %780 = arith.select %778, %776, %779 : vector<8x128xi1>, vector<8x128xf32>
    %cst_232 = arith.constant 2.000000e+00 : f32
    %781 = vector.broadcast %cst_232 : f32 to vector<8x128xf32>
    %782 = arith.select %771, %781, %780 : vector<8x128xi1>, vector<8x128xf32>
    %cst_233 = arith.constant 0.000000e+00 : f32
    %783 = vector.broadcast %cst_233 : f32 to vector<8x128xf32>
    %784 = arith.cmpf olt, %766, %783 : vector<8x128xf32>
    %cst_234 = arith.constant 1.000000e+00 : f32
    %785 = vector.broadcast %cst_234 : f32 to vector<8x128xf32>
    %786 = arith.select %784, %776, %785 : vector<8x128xi1>, vector<8x128xf32>
    %cst_235 = arith.constant -1.000000e+00 : f32
    %787 = vector.broadcast %cst_235 : f32 to vector<8x128xf32>
    %788 = arith.select %771, %787, %786 : vector<8x128xi1>, vector<8x128xf32>
    %789 = arith.maximumf %759, %782 : vector<8x128xf32>
    %790 = arith.minimumf %765, %788 : vector<8x128xf32>
    %791 = arith.subf %708, %703 : vector<8x128xf32>
    %cst_236 = arith.constant 0.000000e+00 : f32
    %792 = vector.broadcast %cst_236 : f32 to vector<8x128xf32>
    %793 = arith.cmpf oeq, %791, %792 : vector<8x128xf32>
    %cst_237 = arith.constant 0.000000e+00 : f32
    %794 = vector.broadcast %cst_237 : f32 to vector<8x128xf32>
    %795 = arith.cmpf olt, %703, %794 : vector<8x128xf32>
    %796 = arith.andi %793, %795 : vector<8x128xi1>
    %cst_238 = arith.constant 0.000000e+00 : f32
    %797 = vector.broadcast %cst_238 : f32 to vector<8x128xf32>
    %798 = arith.subf %797, %703 : vector<8x128xf32>
    %cst_239 = arith.constant 1.000000e+00 : f32
    %799 = vector.broadcast %cst_239 : f32 to vector<8x128xf32>
    %800 = arith.select %793, %799, %791 : vector<8x128xi1>, vector<8x128xf32>
    %801 = arith.divf %798, %800 : vector<8x128xf32>
    %cst_240 = arith.constant 0.000000e+00 : f32
    %802 = vector.broadcast %cst_240 : f32 to vector<8x128xf32>
    %803 = arith.cmpf ogt, %791, %802 : vector<8x128xf32>
    %cst_241 = arith.constant 0.000000e+00 : f32
    %804 = vector.broadcast %cst_241 : f32 to vector<8x128xf32>
    %805 = arith.select %803, %801, %804 : vector<8x128xi1>, vector<8x128xf32>
    %cst_242 = arith.constant 2.000000e+00 : f32
    %806 = vector.broadcast %cst_242 : f32 to vector<8x128xf32>
    %807 = arith.select %796, %806, %805 : vector<8x128xi1>, vector<8x128xf32>
    %cst_243 = arith.constant 0.000000e+00 : f32
    %808 = vector.broadcast %cst_243 : f32 to vector<8x128xf32>
    %809 = arith.cmpf olt, %791, %808 : vector<8x128xf32>
    %cst_244 = arith.constant 1.000000e+00 : f32
    %810 = vector.broadcast %cst_244 : f32 to vector<8x128xf32>
    %811 = arith.select %809, %801, %810 : vector<8x128xi1>, vector<8x128xf32>
    %cst_245 = arith.constant -1.000000e+00 : f32
    %812 = vector.broadcast %cst_245 : f32 to vector<8x128xf32>
    %813 = arith.select %796, %812, %811 : vector<8x128xi1>, vector<8x128xf32>
    %814 = arith.maximumf %789, %807 : vector<8x128xf32>
    %815 = arith.minimumf %790, %813 : vector<8x128xf32>
    %816 = arith.subf %730, %725 : vector<8x128xf32>
    %cst_246 = arith.constant 0.000000e+00 : f32
    %817 = vector.broadcast %cst_246 : f32 to vector<8x128xf32>
    %818 = arith.cmpf oeq, %816, %817 : vector<8x128xf32>
    %cst_247 = arith.constant 0.000000e+00 : f32
    %819 = vector.broadcast %cst_247 : f32 to vector<8x128xf32>
    %820 = arith.cmpf olt, %725, %819 : vector<8x128xf32>
    %821 = arith.andi %818, %820 : vector<8x128xi1>
    %cst_248 = arith.constant 0.000000e+00 : f32
    %822 = vector.broadcast %cst_248 : f32 to vector<8x128xf32>
    %823 = arith.subf %822, %725 : vector<8x128xf32>
    %cst_249 = arith.constant 1.000000e+00 : f32
    %824 = vector.broadcast %cst_249 : f32 to vector<8x128xf32>
    %825 = arith.select %818, %824, %816 : vector<8x128xi1>, vector<8x128xf32>
    %826 = arith.divf %823, %825 : vector<8x128xf32>
    %cst_250 = arith.constant 0.000000e+00 : f32
    %827 = vector.broadcast %cst_250 : f32 to vector<8x128xf32>
    %828 = arith.cmpf ogt, %816, %827 : vector<8x128xf32>
    %cst_251 = arith.constant 0.000000e+00 : f32
    %829 = vector.broadcast %cst_251 : f32 to vector<8x128xf32>
    %830 = arith.select %828, %826, %829 : vector<8x128xi1>, vector<8x128xf32>
    %cst_252 = arith.constant 2.000000e+00 : f32
    %831 = vector.broadcast %cst_252 : f32 to vector<8x128xf32>
    %832 = arith.select %821, %831, %830 : vector<8x128xi1>, vector<8x128xf32>
    %cst_253 = arith.constant 0.000000e+00 : f32
    %833 = vector.broadcast %cst_253 : f32 to vector<8x128xf32>
    %834 = arith.cmpf olt, %816, %833 : vector<8x128xf32>
    %cst_254 = arith.constant 1.000000e+00 : f32
    %835 = vector.broadcast %cst_254 : f32 to vector<8x128xf32>
    %836 = arith.select %834, %826, %835 : vector<8x128xi1>, vector<8x128xf32>
    %cst_255 = arith.constant -1.000000e+00 : f32
    %837 = vector.broadcast %cst_255 : f32 to vector<8x128xf32>
    %838 = arith.select %821, %837, %836 : vector<8x128xi1>, vector<8x128xf32>
    %839 = arith.maximumf %814, %832 : vector<8x128xf32>
    %840 = arith.minimumf %815, %838 : vector<8x128xf32>
    %cst_256 = arith.constant 0.000000e+00 : f32
    %841 = vector.broadcast %cst_256 : f32 to vector<8x128xf32>
    %842 = arith.maximumf %839, %841 : vector<8x128xf32>
    %cst_257 = arith.constant 1.000000e+00 : f32
    %843 = vector.broadcast %cst_257 : f32 to vector<8x128xf32>
    %844 = arith.minimumf %840, %843 : vector<8x128xf32>
    %845 = arith.mulf %842, %741 : vector<8x128xf32>
    %846 = arith.addf %75, %845 : vector<8x128xf32>
    %847 = arith.mulf %842, %742 : vector<8x128xf32>
    %848 = arith.addf %83, %847 : vector<8x128xf32>
    %849 = arith.mulf %844, %741 : vector<8x128xf32>
    %850 = arith.addf %75, %849 : vector<8x128xf32>
    %851 = arith.mulf %844, %742 : vector<8x128xf32>
    %852 = arith.addf %83, %851 : vector<8x128xf32>
    %853 = arith.cmpf ogt, %844, %842 : vector<8x128xf32>
    %854 = arith.mulf %846, %852 : vector<8x128xf32>
    %855 = arith.mulf %848, %850 : vector<8x128xf32>
    %856 = arith.subf %854, %855 : vector<8x128xf32>
    %cst_258 = arith.constant 0.000000e+00 : f32
    %857 = vector.broadcast %cst_258 : f32 to vector<8x128xf32>
    %858 = arith.select %853, %856, %857 : vector<8x128xi1>, vector<8x128xf32>
    %859 = arith.subf %79, %77 : vector<8x128xf32>
    %860 = arith.subf %87, %85 : vector<8x128xf32>
    %861 = arith.subf %669, %664 : vector<8x128xf32>
    %cst_259 = arith.constant 0.000000e+00 : f32
    %862 = vector.broadcast %cst_259 : f32 to vector<8x128xf32>
    %863 = arith.cmpf oeq, %861, %862 : vector<8x128xf32>
    %cst_260 = arith.constant 0.000000e+00 : f32
    %864 = vector.broadcast %cst_260 : f32 to vector<8x128xf32>
    %865 = arith.cmpf olt, %664, %864 : vector<8x128xf32>
    %866 = arith.andi %863, %865 : vector<8x128xi1>
    %cst_261 = arith.constant 0.000000e+00 : f32
    %867 = vector.broadcast %cst_261 : f32 to vector<8x128xf32>
    %868 = arith.subf %867, %664 : vector<8x128xf32>
    %cst_262 = arith.constant 1.000000e+00 : f32
    %869 = vector.broadcast %cst_262 : f32 to vector<8x128xf32>
    %870 = arith.select %863, %869, %861 : vector<8x128xi1>, vector<8x128xf32>
    %871 = arith.divf %868, %870 : vector<8x128xf32>
    %cst_263 = arith.constant 0.000000e+00 : f32
    %872 = vector.broadcast %cst_263 : f32 to vector<8x128xf32>
    %873 = arith.cmpf ogt, %861, %872 : vector<8x128xf32>
    %cst_264 = arith.constant 0.000000e+00 : f32
    %874 = vector.broadcast %cst_264 : f32 to vector<8x128xf32>
    %875 = arith.select %873, %871, %874 : vector<8x128xi1>, vector<8x128xf32>
    %cst_265 = arith.constant 2.000000e+00 : f32
    %876 = vector.broadcast %cst_265 : f32 to vector<8x128xf32>
    %877 = arith.select %866, %876, %875 : vector<8x128xi1>, vector<8x128xf32>
    %cst_266 = arith.constant 0.000000e+00 : f32
    %878 = vector.broadcast %cst_266 : f32 to vector<8x128xf32>
    %879 = arith.cmpf olt, %861, %878 : vector<8x128xf32>
    %cst_267 = arith.constant 1.000000e+00 : f32
    %880 = vector.broadcast %cst_267 : f32 to vector<8x128xf32>
    %881 = arith.select %879, %871, %880 : vector<8x128xi1>, vector<8x128xf32>
    %cst_268 = arith.constant -1.000000e+00 : f32
    %882 = vector.broadcast %cst_268 : f32 to vector<8x128xf32>
    %883 = arith.select %866, %882, %881 : vector<8x128xi1>, vector<8x128xf32>
    %884 = arith.subf %691, %686 : vector<8x128xf32>
    %cst_269 = arith.constant 0.000000e+00 : f32
    %885 = vector.broadcast %cst_269 : f32 to vector<8x128xf32>
    %886 = arith.cmpf oeq, %884, %885 : vector<8x128xf32>
    %cst_270 = arith.constant 0.000000e+00 : f32
    %887 = vector.broadcast %cst_270 : f32 to vector<8x128xf32>
    %888 = arith.cmpf olt, %686, %887 : vector<8x128xf32>
    %889 = arith.andi %886, %888 : vector<8x128xi1>
    %cst_271 = arith.constant 0.000000e+00 : f32
    %890 = vector.broadcast %cst_271 : f32 to vector<8x128xf32>
    %891 = arith.subf %890, %686 : vector<8x128xf32>
    %cst_272 = arith.constant 1.000000e+00 : f32
    %892 = vector.broadcast %cst_272 : f32 to vector<8x128xf32>
    %893 = arith.select %886, %892, %884 : vector<8x128xi1>, vector<8x128xf32>
    %894 = arith.divf %891, %893 : vector<8x128xf32>
    %cst_273 = arith.constant 0.000000e+00 : f32
    %895 = vector.broadcast %cst_273 : f32 to vector<8x128xf32>
    %896 = arith.cmpf ogt, %884, %895 : vector<8x128xf32>
    %cst_274 = arith.constant 0.000000e+00 : f32
    %897 = vector.broadcast %cst_274 : f32 to vector<8x128xf32>
    %898 = arith.select %896, %894, %897 : vector<8x128xi1>, vector<8x128xf32>
    %cst_275 = arith.constant 2.000000e+00 : f32
    %899 = vector.broadcast %cst_275 : f32 to vector<8x128xf32>
    %900 = arith.select %889, %899, %898 : vector<8x128xi1>, vector<8x128xf32>
    %cst_276 = arith.constant 0.000000e+00 : f32
    %901 = vector.broadcast %cst_276 : f32 to vector<8x128xf32>
    %902 = arith.cmpf olt, %884, %901 : vector<8x128xf32>
    %cst_277 = arith.constant 1.000000e+00 : f32
    %903 = vector.broadcast %cst_277 : f32 to vector<8x128xf32>
    %904 = arith.select %902, %894, %903 : vector<8x128xi1>, vector<8x128xf32>
    %cst_278 = arith.constant -1.000000e+00 : f32
    %905 = vector.broadcast %cst_278 : f32 to vector<8x128xf32>
    %906 = arith.select %889, %905, %904 : vector<8x128xi1>, vector<8x128xf32>
    %907 = arith.maximumf %877, %900 : vector<8x128xf32>
    %908 = arith.minimumf %883, %906 : vector<8x128xf32>
    %909 = arith.subf %713, %708 : vector<8x128xf32>
    %cst_279 = arith.constant 0.000000e+00 : f32
    %910 = vector.broadcast %cst_279 : f32 to vector<8x128xf32>
    %911 = arith.cmpf oeq, %909, %910 : vector<8x128xf32>
    %cst_280 = arith.constant 0.000000e+00 : f32
    %912 = vector.broadcast %cst_280 : f32 to vector<8x128xf32>
    %913 = arith.cmpf olt, %708, %912 : vector<8x128xf32>
    %914 = arith.andi %911, %913 : vector<8x128xi1>
    %cst_281 = arith.constant 0.000000e+00 : f32
    %915 = vector.broadcast %cst_281 : f32 to vector<8x128xf32>
    %916 = arith.subf %915, %708 : vector<8x128xf32>
    %cst_282 = arith.constant 1.000000e+00 : f32
    %917 = vector.broadcast %cst_282 : f32 to vector<8x128xf32>
    %918 = arith.select %911, %917, %909 : vector<8x128xi1>, vector<8x128xf32>
    %919 = arith.divf %916, %918 : vector<8x128xf32>
    %cst_283 = arith.constant 0.000000e+00 : f32
    %920 = vector.broadcast %cst_283 : f32 to vector<8x128xf32>
    %921 = arith.cmpf ogt, %909, %920 : vector<8x128xf32>
    %cst_284 = arith.constant 0.000000e+00 : f32
    %922 = vector.broadcast %cst_284 : f32 to vector<8x128xf32>
    %923 = arith.select %921, %919, %922 : vector<8x128xi1>, vector<8x128xf32>
    %cst_285 = arith.constant 2.000000e+00 : f32
    %924 = vector.broadcast %cst_285 : f32 to vector<8x128xf32>
    %925 = arith.select %914, %924, %923 : vector<8x128xi1>, vector<8x128xf32>
    %cst_286 = arith.constant 0.000000e+00 : f32
    %926 = vector.broadcast %cst_286 : f32 to vector<8x128xf32>
    %927 = arith.cmpf olt, %909, %926 : vector<8x128xf32>
    %cst_287 = arith.constant 1.000000e+00 : f32
    %928 = vector.broadcast %cst_287 : f32 to vector<8x128xf32>
    %929 = arith.select %927, %919, %928 : vector<8x128xi1>, vector<8x128xf32>
    %cst_288 = arith.constant -1.000000e+00 : f32
    %930 = vector.broadcast %cst_288 : f32 to vector<8x128xf32>
    %931 = arith.select %914, %930, %929 : vector<8x128xi1>, vector<8x128xf32>
    %932 = arith.maximumf %907, %925 : vector<8x128xf32>
    %933 = arith.minimumf %908, %931 : vector<8x128xf32>
    %934 = arith.subf %735, %730 : vector<8x128xf32>
    %cst_289 = arith.constant 0.000000e+00 : f32
    %935 = vector.broadcast %cst_289 : f32 to vector<8x128xf32>
    %936 = arith.cmpf oeq, %934, %935 : vector<8x128xf32>
    %cst_290 = arith.constant 0.000000e+00 : f32
    %937 = vector.broadcast %cst_290 : f32 to vector<8x128xf32>
    %938 = arith.cmpf olt, %730, %937 : vector<8x128xf32>
    %939 = arith.andi %936, %938 : vector<8x128xi1>
    %cst_291 = arith.constant 0.000000e+00 : f32
    %940 = vector.broadcast %cst_291 : f32 to vector<8x128xf32>
    %941 = arith.subf %940, %730 : vector<8x128xf32>
    %cst_292 = arith.constant 1.000000e+00 : f32
    %942 = vector.broadcast %cst_292 : f32 to vector<8x128xf32>
    %943 = arith.select %936, %942, %934 : vector<8x128xi1>, vector<8x128xf32>
    %944 = arith.divf %941, %943 : vector<8x128xf32>
    %cst_293 = arith.constant 0.000000e+00 : f32
    %945 = vector.broadcast %cst_293 : f32 to vector<8x128xf32>
    %946 = arith.cmpf ogt, %934, %945 : vector<8x128xf32>
    %cst_294 = arith.constant 0.000000e+00 : f32
    %947 = vector.broadcast %cst_294 : f32 to vector<8x128xf32>
    %948 = arith.select %946, %944, %947 : vector<8x128xi1>, vector<8x128xf32>
    %cst_295 = arith.constant 2.000000e+00 : f32
    %949 = vector.broadcast %cst_295 : f32 to vector<8x128xf32>
    %950 = arith.select %939, %949, %948 : vector<8x128xi1>, vector<8x128xf32>
    %cst_296 = arith.constant 0.000000e+00 : f32
    %951 = vector.broadcast %cst_296 : f32 to vector<8x128xf32>
    %952 = arith.cmpf olt, %934, %951 : vector<8x128xf32>
    %cst_297 = arith.constant 1.000000e+00 : f32
    %953 = vector.broadcast %cst_297 : f32 to vector<8x128xf32>
    %954 = arith.select %952, %944, %953 : vector<8x128xi1>, vector<8x128xf32>
    %cst_298 = arith.constant -1.000000e+00 : f32
    %955 = vector.broadcast %cst_298 : f32 to vector<8x128xf32>
    %956 = arith.select %939, %955, %954 : vector<8x128xi1>, vector<8x128xf32>
    %957 = arith.maximumf %932, %950 : vector<8x128xf32>
    %958 = arith.minimumf %933, %956 : vector<8x128xf32>
    %cst_299 = arith.constant 0.000000e+00 : f32
    %959 = vector.broadcast %cst_299 : f32 to vector<8x128xf32>
    %960 = arith.maximumf %957, %959 : vector<8x128xf32>
    %cst_300 = arith.constant 1.000000e+00 : f32
    %961 = vector.broadcast %cst_300 : f32 to vector<8x128xf32>
    %962 = arith.minimumf %958, %961 : vector<8x128xf32>
    %963 = arith.mulf %960, %859 : vector<8x128xf32>
    %964 = arith.addf %77, %963 : vector<8x128xf32>
    %965 = arith.mulf %960, %860 : vector<8x128xf32>
    %966 = arith.addf %85, %965 : vector<8x128xf32>
    %967 = arith.mulf %962, %859 : vector<8x128xf32>
    %968 = arith.addf %77, %967 : vector<8x128xf32>
    %969 = arith.mulf %962, %860 : vector<8x128xf32>
    %970 = arith.addf %85, %969 : vector<8x128xf32>
    %971 = arith.cmpf ogt, %962, %960 : vector<8x128xf32>
    %972 = arith.mulf %964, %970 : vector<8x128xf32>
    %973 = arith.mulf %966, %968 : vector<8x128xf32>
    %974 = arith.subf %972, %973 : vector<8x128xf32>
    %cst_301 = arith.constant 0.000000e+00 : f32
    %975 = vector.broadcast %cst_301 : f32 to vector<8x128xf32>
    %976 = arith.select %971, %974, %975 : vector<8x128xi1>, vector<8x128xf32>
    %977 = arith.addf %858, %976 : vector<8x128xf32>
    %978 = arith.subf %81, %79 : vector<8x128xf32>
    %979 = arith.subf %89, %87 : vector<8x128xf32>
    %980 = arith.subf %674, %669 : vector<8x128xf32>
    %cst_302 = arith.constant 0.000000e+00 : f32
    %981 = vector.broadcast %cst_302 : f32 to vector<8x128xf32>
    %982 = arith.cmpf oeq, %980, %981 : vector<8x128xf32>
    %cst_303 = arith.constant 0.000000e+00 : f32
    %983 = vector.broadcast %cst_303 : f32 to vector<8x128xf32>
    %984 = arith.cmpf olt, %669, %983 : vector<8x128xf32>
    %985 = arith.andi %982, %984 : vector<8x128xi1>
    %cst_304 = arith.constant 0.000000e+00 : f32
    %986 = vector.broadcast %cst_304 : f32 to vector<8x128xf32>
    %987 = arith.subf %986, %669 : vector<8x128xf32>
    %cst_305 = arith.constant 1.000000e+00 : f32
    %988 = vector.broadcast %cst_305 : f32 to vector<8x128xf32>
    %989 = arith.select %982, %988, %980 : vector<8x128xi1>, vector<8x128xf32>
    %990 = arith.divf %987, %989 : vector<8x128xf32>
    %cst_306 = arith.constant 0.000000e+00 : f32
    %991 = vector.broadcast %cst_306 : f32 to vector<8x128xf32>
    %992 = arith.cmpf ogt, %980, %991 : vector<8x128xf32>
    %cst_307 = arith.constant 0.000000e+00 : f32
    %993 = vector.broadcast %cst_307 : f32 to vector<8x128xf32>
    %994 = arith.select %992, %990, %993 : vector<8x128xi1>, vector<8x128xf32>
    %cst_308 = arith.constant 2.000000e+00 : f32
    %995 = vector.broadcast %cst_308 : f32 to vector<8x128xf32>
    %996 = arith.select %985, %995, %994 : vector<8x128xi1>, vector<8x128xf32>
    %cst_309 = arith.constant 0.000000e+00 : f32
    %997 = vector.broadcast %cst_309 : f32 to vector<8x128xf32>
    %998 = arith.cmpf olt, %980, %997 : vector<8x128xf32>
    %cst_310 = arith.constant 1.000000e+00 : f32
    %999 = vector.broadcast %cst_310 : f32 to vector<8x128xf32>
    %1000 = arith.select %998, %990, %999 : vector<8x128xi1>, vector<8x128xf32>
    %cst_311 = arith.constant -1.000000e+00 : f32
    %1001 = vector.broadcast %cst_311 : f32 to vector<8x128xf32>
    %1002 = arith.select %985, %1001, %1000 : vector<8x128xi1>, vector<8x128xf32>
    %1003 = arith.subf %696, %691 : vector<8x128xf32>
    %cst_312 = arith.constant 0.000000e+00 : f32
    %1004 = vector.broadcast %cst_312 : f32 to vector<8x128xf32>
    %1005 = arith.cmpf oeq, %1003, %1004 : vector<8x128xf32>
    %cst_313 = arith.constant 0.000000e+00 : f32
    %1006 = vector.broadcast %cst_313 : f32 to vector<8x128xf32>
    %1007 = arith.cmpf olt, %691, %1006 : vector<8x128xf32>
    %1008 = arith.andi %1005, %1007 : vector<8x128xi1>
    %cst_314 = arith.constant 0.000000e+00 : f32
    %1009 = vector.broadcast %cst_314 : f32 to vector<8x128xf32>
    %1010 = arith.subf %1009, %691 : vector<8x128xf32>
    %cst_315 = arith.constant 1.000000e+00 : f32
    %1011 = vector.broadcast %cst_315 : f32 to vector<8x128xf32>
    %1012 = arith.select %1005, %1011, %1003 : vector<8x128xi1>, vector<8x128xf32>
    %1013 = arith.divf %1010, %1012 : vector<8x128xf32>
    %cst_316 = arith.constant 0.000000e+00 : f32
    %1014 = vector.broadcast %cst_316 : f32 to vector<8x128xf32>
    %1015 = arith.cmpf ogt, %1003, %1014 : vector<8x128xf32>
    %cst_317 = arith.constant 0.000000e+00 : f32
    %1016 = vector.broadcast %cst_317 : f32 to vector<8x128xf32>
    %1017 = arith.select %1015, %1013, %1016 : vector<8x128xi1>, vector<8x128xf32>
    %cst_318 = arith.constant 2.000000e+00 : f32
    %1018 = vector.broadcast %cst_318 : f32 to vector<8x128xf32>
    %1019 = arith.select %1008, %1018, %1017 : vector<8x128xi1>, vector<8x128xf32>
    %cst_319 = arith.constant 0.000000e+00 : f32
    %1020 = vector.broadcast %cst_319 : f32 to vector<8x128xf32>
    %1021 = arith.cmpf olt, %1003, %1020 : vector<8x128xf32>
    %cst_320 = arith.constant 1.000000e+00 : f32
    %1022 = vector.broadcast %cst_320 : f32 to vector<8x128xf32>
    %1023 = arith.select %1021, %1013, %1022 : vector<8x128xi1>, vector<8x128xf32>
    %cst_321 = arith.constant -1.000000e+00 : f32
    %1024 = vector.broadcast %cst_321 : f32 to vector<8x128xf32>
    %1025 = arith.select %1008, %1024, %1023 : vector<8x128xi1>, vector<8x128xf32>
    %1026 = arith.maximumf %996, %1019 : vector<8x128xf32>
    %1027 = arith.minimumf %1002, %1025 : vector<8x128xf32>
    %1028 = arith.subf %718, %713 : vector<8x128xf32>
    %cst_322 = arith.constant 0.000000e+00 : f32
    %1029 = vector.broadcast %cst_322 : f32 to vector<8x128xf32>
    %1030 = arith.cmpf oeq, %1028, %1029 : vector<8x128xf32>
    %cst_323 = arith.constant 0.000000e+00 : f32
    %1031 = vector.broadcast %cst_323 : f32 to vector<8x128xf32>
    %1032 = arith.cmpf olt, %713, %1031 : vector<8x128xf32>
    %1033 = arith.andi %1030, %1032 : vector<8x128xi1>
    %cst_324 = arith.constant 0.000000e+00 : f32
    %1034 = vector.broadcast %cst_324 : f32 to vector<8x128xf32>
    %1035 = arith.subf %1034, %713 : vector<8x128xf32>
    %cst_325 = arith.constant 1.000000e+00 : f32
    %1036 = vector.broadcast %cst_325 : f32 to vector<8x128xf32>
    %1037 = arith.select %1030, %1036, %1028 : vector<8x128xi1>, vector<8x128xf32>
    %1038 = arith.divf %1035, %1037 : vector<8x128xf32>
    %cst_326 = arith.constant 0.000000e+00 : f32
    %1039 = vector.broadcast %cst_326 : f32 to vector<8x128xf32>
    %1040 = arith.cmpf ogt, %1028, %1039 : vector<8x128xf32>
    %cst_327 = arith.constant 0.000000e+00 : f32
    %1041 = vector.broadcast %cst_327 : f32 to vector<8x128xf32>
    %1042 = arith.select %1040, %1038, %1041 : vector<8x128xi1>, vector<8x128xf32>
    %cst_328 = arith.constant 2.000000e+00 : f32
    %1043 = vector.broadcast %cst_328 : f32 to vector<8x128xf32>
    %1044 = arith.select %1033, %1043, %1042 : vector<8x128xi1>, vector<8x128xf32>
    %cst_329 = arith.constant 0.000000e+00 : f32
    %1045 = vector.broadcast %cst_329 : f32 to vector<8x128xf32>
    %1046 = arith.cmpf olt, %1028, %1045 : vector<8x128xf32>
    %cst_330 = arith.constant 1.000000e+00 : f32
    %1047 = vector.broadcast %cst_330 : f32 to vector<8x128xf32>
    %1048 = arith.select %1046, %1038, %1047 : vector<8x128xi1>, vector<8x128xf32>
    %cst_331 = arith.constant -1.000000e+00 : f32
    %1049 = vector.broadcast %cst_331 : f32 to vector<8x128xf32>
    %1050 = arith.select %1033, %1049, %1048 : vector<8x128xi1>, vector<8x128xf32>
    %1051 = arith.maximumf %1026, %1044 : vector<8x128xf32>
    %1052 = arith.minimumf %1027, %1050 : vector<8x128xf32>
    %1053 = arith.subf %740, %735 : vector<8x128xf32>
    %cst_332 = arith.constant 0.000000e+00 : f32
    %1054 = vector.broadcast %cst_332 : f32 to vector<8x128xf32>
    %1055 = arith.cmpf oeq, %1053, %1054 : vector<8x128xf32>
    %cst_333 = arith.constant 0.000000e+00 : f32
    %1056 = vector.broadcast %cst_333 : f32 to vector<8x128xf32>
    %1057 = arith.cmpf olt, %735, %1056 : vector<8x128xf32>
    %1058 = arith.andi %1055, %1057 : vector<8x128xi1>
    %cst_334 = arith.constant 0.000000e+00 : f32
    %1059 = vector.broadcast %cst_334 : f32 to vector<8x128xf32>
    %1060 = arith.subf %1059, %735 : vector<8x128xf32>
    %cst_335 = arith.constant 1.000000e+00 : f32
    %1061 = vector.broadcast %cst_335 : f32 to vector<8x128xf32>
    %1062 = arith.select %1055, %1061, %1053 : vector<8x128xi1>, vector<8x128xf32>
    %1063 = arith.divf %1060, %1062 : vector<8x128xf32>
    %cst_336 = arith.constant 0.000000e+00 : f32
    %1064 = vector.broadcast %cst_336 : f32 to vector<8x128xf32>
    %1065 = arith.cmpf ogt, %1053, %1064 : vector<8x128xf32>
    %cst_337 = arith.constant 0.000000e+00 : f32
    %1066 = vector.broadcast %cst_337 : f32 to vector<8x128xf32>
    %1067 = arith.select %1065, %1063, %1066 : vector<8x128xi1>, vector<8x128xf32>
    %cst_338 = arith.constant 2.000000e+00 : f32
    %1068 = vector.broadcast %cst_338 : f32 to vector<8x128xf32>
    %1069 = arith.select %1058, %1068, %1067 : vector<8x128xi1>, vector<8x128xf32>
    %cst_339 = arith.constant 0.000000e+00 : f32
    %1070 = vector.broadcast %cst_339 : f32 to vector<8x128xf32>
    %1071 = arith.cmpf olt, %1053, %1070 : vector<8x128xf32>
    %cst_340 = arith.constant 1.000000e+00 : f32
    %1072 = vector.broadcast %cst_340 : f32 to vector<8x128xf32>
    %1073 = arith.select %1071, %1063, %1072 : vector<8x128xi1>, vector<8x128xf32>
    %cst_341 = arith.constant -1.000000e+00 : f32
    %1074 = vector.broadcast %cst_341 : f32 to vector<8x128xf32>
    %1075 = arith.select %1058, %1074, %1073 : vector<8x128xi1>, vector<8x128xf32>
    %1076 = arith.maximumf %1051, %1069 : vector<8x128xf32>
    %1077 = arith.minimumf %1052, %1075 : vector<8x128xf32>
    %cst_342 = arith.constant 0.000000e+00 : f32
    %1078 = vector.broadcast %cst_342 : f32 to vector<8x128xf32>
    %1079 = arith.maximumf %1076, %1078 : vector<8x128xf32>
    %cst_343 = arith.constant 1.000000e+00 : f32
    %1080 = vector.broadcast %cst_343 : f32 to vector<8x128xf32>
    %1081 = arith.minimumf %1077, %1080 : vector<8x128xf32>
    %1082 = arith.mulf %1079, %978 : vector<8x128xf32>
    %1083 = arith.addf %79, %1082 : vector<8x128xf32>
    %1084 = arith.mulf %1079, %979 : vector<8x128xf32>
    %1085 = arith.addf %87, %1084 : vector<8x128xf32>
    %1086 = arith.mulf %1081, %978 : vector<8x128xf32>
    %1087 = arith.addf %79, %1086 : vector<8x128xf32>
    %1088 = arith.mulf %1081, %979 : vector<8x128xf32>
    %1089 = arith.addf %87, %1088 : vector<8x128xf32>
    %1090 = arith.cmpf ogt, %1081, %1079 : vector<8x128xf32>
    %1091 = arith.mulf %1083, %1089 : vector<8x128xf32>
    %1092 = arith.mulf %1085, %1087 : vector<8x128xf32>
    %1093 = arith.subf %1091, %1092 : vector<8x128xf32>
    %cst_344 = arith.constant 0.000000e+00 : f32
    %1094 = vector.broadcast %cst_344 : f32 to vector<8x128xf32>
    %1095 = arith.select %1090, %1093, %1094 : vector<8x128xi1>, vector<8x128xf32>
    %1096 = arith.addf %977, %1095 : vector<8x128xf32>
    %1097 = arith.subf %75, %81 : vector<8x128xf32>
    %1098 = arith.subf %83, %89 : vector<8x128xf32>
    %1099 = arith.subf %659, %674 : vector<8x128xf32>
    %cst_345 = arith.constant 0.000000e+00 : f32
    %1100 = vector.broadcast %cst_345 : f32 to vector<8x128xf32>
    %1101 = arith.cmpf oeq, %1099, %1100 : vector<8x128xf32>
    %cst_346 = arith.constant 0.000000e+00 : f32
    %1102 = vector.broadcast %cst_346 : f32 to vector<8x128xf32>
    %1103 = arith.cmpf olt, %674, %1102 : vector<8x128xf32>
    %1104 = arith.andi %1101, %1103 : vector<8x128xi1>
    %cst_347 = arith.constant 0.000000e+00 : f32
    %1105 = vector.broadcast %cst_347 : f32 to vector<8x128xf32>
    %1106 = arith.subf %1105, %674 : vector<8x128xf32>
    %cst_348 = arith.constant 1.000000e+00 : f32
    %1107 = vector.broadcast %cst_348 : f32 to vector<8x128xf32>
    %1108 = arith.select %1101, %1107, %1099 : vector<8x128xi1>, vector<8x128xf32>
    %1109 = arith.divf %1106, %1108 : vector<8x128xf32>
    %cst_349 = arith.constant 0.000000e+00 : f32
    %1110 = vector.broadcast %cst_349 : f32 to vector<8x128xf32>
    %1111 = arith.cmpf ogt, %1099, %1110 : vector<8x128xf32>
    %cst_350 = arith.constant 0.000000e+00 : f32
    %1112 = vector.broadcast %cst_350 : f32 to vector<8x128xf32>
    %1113 = arith.select %1111, %1109, %1112 : vector<8x128xi1>, vector<8x128xf32>
    %cst_351 = arith.constant 2.000000e+00 : f32
    %1114 = vector.broadcast %cst_351 : f32 to vector<8x128xf32>
    %1115 = arith.select %1104, %1114, %1113 : vector<8x128xi1>, vector<8x128xf32>
    %cst_352 = arith.constant 0.000000e+00 : f32
    %1116 = vector.broadcast %cst_352 : f32 to vector<8x128xf32>
    %1117 = arith.cmpf olt, %1099, %1116 : vector<8x128xf32>
    %cst_353 = arith.constant 1.000000e+00 : f32
    %1118 = vector.broadcast %cst_353 : f32 to vector<8x128xf32>
    %1119 = arith.select %1117, %1109, %1118 : vector<8x128xi1>, vector<8x128xf32>
    %cst_354 = arith.constant -1.000000e+00 : f32
    %1120 = vector.broadcast %cst_354 : f32 to vector<8x128xf32>
    %1121 = arith.select %1104, %1120, %1119 : vector<8x128xi1>, vector<8x128xf32>
    %1122 = arith.subf %681, %696 : vector<8x128xf32>
    %cst_355 = arith.constant 0.000000e+00 : f32
    %1123 = vector.broadcast %cst_355 : f32 to vector<8x128xf32>
    %1124 = arith.cmpf oeq, %1122, %1123 : vector<8x128xf32>
    %cst_356 = arith.constant 0.000000e+00 : f32
    %1125 = vector.broadcast %cst_356 : f32 to vector<8x128xf32>
    %1126 = arith.cmpf olt, %696, %1125 : vector<8x128xf32>
    %1127 = arith.andi %1124, %1126 : vector<8x128xi1>
    %cst_357 = arith.constant 0.000000e+00 : f32
    %1128 = vector.broadcast %cst_357 : f32 to vector<8x128xf32>
    %1129 = arith.subf %1128, %696 : vector<8x128xf32>
    %cst_358 = arith.constant 1.000000e+00 : f32
    %1130 = vector.broadcast %cst_358 : f32 to vector<8x128xf32>
    %1131 = arith.select %1124, %1130, %1122 : vector<8x128xi1>, vector<8x128xf32>
    %1132 = arith.divf %1129, %1131 : vector<8x128xf32>
    %cst_359 = arith.constant 0.000000e+00 : f32
    %1133 = vector.broadcast %cst_359 : f32 to vector<8x128xf32>
    %1134 = arith.cmpf ogt, %1122, %1133 : vector<8x128xf32>
    %cst_360 = arith.constant 0.000000e+00 : f32
    %1135 = vector.broadcast %cst_360 : f32 to vector<8x128xf32>
    %1136 = arith.select %1134, %1132, %1135 : vector<8x128xi1>, vector<8x128xf32>
    %cst_361 = arith.constant 2.000000e+00 : f32
    %1137 = vector.broadcast %cst_361 : f32 to vector<8x128xf32>
    %1138 = arith.select %1127, %1137, %1136 : vector<8x128xi1>, vector<8x128xf32>
    %cst_362 = arith.constant 0.000000e+00 : f32
    %1139 = vector.broadcast %cst_362 : f32 to vector<8x128xf32>
    %1140 = arith.cmpf olt, %1122, %1139 : vector<8x128xf32>
    %cst_363 = arith.constant 1.000000e+00 : f32
    %1141 = vector.broadcast %cst_363 : f32 to vector<8x128xf32>
    %1142 = arith.select %1140, %1132, %1141 : vector<8x128xi1>, vector<8x128xf32>
    %cst_364 = arith.constant -1.000000e+00 : f32
    %1143 = vector.broadcast %cst_364 : f32 to vector<8x128xf32>
    %1144 = arith.select %1127, %1143, %1142 : vector<8x128xi1>, vector<8x128xf32>
    %1145 = arith.maximumf %1115, %1138 : vector<8x128xf32>
    %1146 = arith.minimumf %1121, %1144 : vector<8x128xf32>
    %1147 = arith.subf %703, %718 : vector<8x128xf32>
    %cst_365 = arith.constant 0.000000e+00 : f32
    %1148 = vector.broadcast %cst_365 : f32 to vector<8x128xf32>
    %1149 = arith.cmpf oeq, %1147, %1148 : vector<8x128xf32>
    %cst_366 = arith.constant 0.000000e+00 : f32
    %1150 = vector.broadcast %cst_366 : f32 to vector<8x128xf32>
    %1151 = arith.cmpf olt, %718, %1150 : vector<8x128xf32>
    %1152 = arith.andi %1149, %1151 : vector<8x128xi1>
    %cst_367 = arith.constant 0.000000e+00 : f32
    %1153 = vector.broadcast %cst_367 : f32 to vector<8x128xf32>
    %1154 = arith.subf %1153, %718 : vector<8x128xf32>
    %cst_368 = arith.constant 1.000000e+00 : f32
    %1155 = vector.broadcast %cst_368 : f32 to vector<8x128xf32>
    %1156 = arith.select %1149, %1155, %1147 : vector<8x128xi1>, vector<8x128xf32>
    %1157 = arith.divf %1154, %1156 : vector<8x128xf32>
    %cst_369 = arith.constant 0.000000e+00 : f32
    %1158 = vector.broadcast %cst_369 : f32 to vector<8x128xf32>
    %1159 = arith.cmpf ogt, %1147, %1158 : vector<8x128xf32>
    %cst_370 = arith.constant 0.000000e+00 : f32
    %1160 = vector.broadcast %cst_370 : f32 to vector<8x128xf32>
    %1161 = arith.select %1159, %1157, %1160 : vector<8x128xi1>, vector<8x128xf32>
    %cst_371 = arith.constant 2.000000e+00 : f32
    %1162 = vector.broadcast %cst_371 : f32 to vector<8x128xf32>
    %1163 = arith.select %1152, %1162, %1161 : vector<8x128xi1>, vector<8x128xf32>
    %cst_372 = arith.constant 0.000000e+00 : f32
    %1164 = vector.broadcast %cst_372 : f32 to vector<8x128xf32>
    %1165 = arith.cmpf olt, %1147, %1164 : vector<8x128xf32>
    %cst_373 = arith.constant 1.000000e+00 : f32
    %1166 = vector.broadcast %cst_373 : f32 to vector<8x128xf32>
    %1167 = arith.select %1165, %1157, %1166 : vector<8x128xi1>, vector<8x128xf32>
    %cst_374 = arith.constant -1.000000e+00 : f32
    %1168 = vector.broadcast %cst_374 : f32 to vector<8x128xf32>
    %1169 = arith.select %1152, %1168, %1167 : vector<8x128xi1>, vector<8x128xf32>
    %1170 = arith.maximumf %1145, %1163 : vector<8x128xf32>
    %1171 = arith.minimumf %1146, %1169 : vector<8x128xf32>
    %1172 = arith.subf %725, %740 : vector<8x128xf32>
    %cst_375 = arith.constant 0.000000e+00 : f32
    %1173 = vector.broadcast %cst_375 : f32 to vector<8x128xf32>
    %1174 = arith.cmpf oeq, %1172, %1173 : vector<8x128xf32>
    %cst_376 = arith.constant 0.000000e+00 : f32
    %1175 = vector.broadcast %cst_376 : f32 to vector<8x128xf32>
    %1176 = arith.cmpf olt, %740, %1175 : vector<8x128xf32>
    %1177 = arith.andi %1174, %1176 : vector<8x128xi1>
    %cst_377 = arith.constant 0.000000e+00 : f32
    %1178 = vector.broadcast %cst_377 : f32 to vector<8x128xf32>
    %1179 = arith.subf %1178, %740 : vector<8x128xf32>
    %cst_378 = arith.constant 1.000000e+00 : f32
    %1180 = vector.broadcast %cst_378 : f32 to vector<8x128xf32>
    %1181 = arith.select %1174, %1180, %1172 : vector<8x128xi1>, vector<8x128xf32>
    %1182 = arith.divf %1179, %1181 : vector<8x128xf32>
    %cst_379 = arith.constant 0.000000e+00 : f32
    %1183 = vector.broadcast %cst_379 : f32 to vector<8x128xf32>
    %1184 = arith.cmpf ogt, %1172, %1183 : vector<8x128xf32>
    %cst_380 = arith.constant 0.000000e+00 : f32
    %1185 = vector.broadcast %cst_380 : f32 to vector<8x128xf32>
    %1186 = arith.select %1184, %1182, %1185 : vector<8x128xi1>, vector<8x128xf32>
    %cst_381 = arith.constant 2.000000e+00 : f32
    %1187 = vector.broadcast %cst_381 : f32 to vector<8x128xf32>
    %1188 = arith.select %1177, %1187, %1186 : vector<8x128xi1>, vector<8x128xf32>
    %cst_382 = arith.constant 0.000000e+00 : f32
    %1189 = vector.broadcast %cst_382 : f32 to vector<8x128xf32>
    %1190 = arith.cmpf olt, %1172, %1189 : vector<8x128xf32>
    %cst_383 = arith.constant 1.000000e+00 : f32
    %1191 = vector.broadcast %cst_383 : f32 to vector<8x128xf32>
    %1192 = arith.select %1190, %1182, %1191 : vector<8x128xi1>, vector<8x128xf32>
    %cst_384 = arith.constant -1.000000e+00 : f32
    %1193 = vector.broadcast %cst_384 : f32 to vector<8x128xf32>
    %1194 = arith.select %1177, %1193, %1192 : vector<8x128xi1>, vector<8x128xf32>
    %1195 = arith.maximumf %1170, %1188 : vector<8x128xf32>
    %1196 = arith.minimumf %1171, %1194 : vector<8x128xf32>
    %cst_385 = arith.constant 0.000000e+00 : f32
    %1197 = vector.broadcast %cst_385 : f32 to vector<8x128xf32>
    %1198 = arith.maximumf %1195, %1197 : vector<8x128xf32>
    %cst_386 = arith.constant 1.000000e+00 : f32
    %1199 = vector.broadcast %cst_386 : f32 to vector<8x128xf32>
    %1200 = arith.minimumf %1196, %1199 : vector<8x128xf32>
    %1201 = arith.mulf %1198, %1097 : vector<8x128xf32>
    %1202 = arith.addf %81, %1201 : vector<8x128xf32>
    %1203 = arith.mulf %1198, %1098 : vector<8x128xf32>
    %1204 = arith.addf %89, %1203 : vector<8x128xf32>
    %1205 = arith.mulf %1200, %1097 : vector<8x128xf32>
    %1206 = arith.addf %81, %1205 : vector<8x128xf32>
    %1207 = arith.mulf %1200, %1098 : vector<8x128xf32>
    %1208 = arith.addf %89, %1207 : vector<8x128xf32>
    %1209 = arith.cmpf ogt, %1200, %1198 : vector<8x128xf32>
    %1210 = arith.mulf %1202, %1208 : vector<8x128xf32>
    %1211 = arith.mulf %1204, %1206 : vector<8x128xf32>
    %1212 = arith.subf %1210, %1211 : vector<8x128xf32>
    %cst_387 = arith.constant 0.000000e+00 : f32
    %1213 = vector.broadcast %cst_387 : f32 to vector<8x128xf32>
    %1214 = arith.select %1209, %1212, %1213 : vector<8x128xi1>, vector<8x128xf32>
    %1215 = arith.addf %1096, %1214 : vector<8x128xf32>
    %1216 = arith.addf %652, %1215 : vector<8x128xf32>
    %1217 = arith.mulf %5, %7 : vector<8x128xf32>
    %1218 = arith.mulf %15, %17 : vector<8x128xf32>
    %cst_388 = arith.constant 5.000000e-01 : f32
    %1219 = vector.broadcast %cst_388 : f32 to vector<8x128xf32>
    %1220 = arith.mulf %1219, %1216 : vector<8x128xf32>
    %1221 = arith.minimumf %1217, %1218 : vector<8x128xf32>
    %cst_389 = arith.constant 0.000000e+00 : f32
    %1222 = vector.broadcast %cst_389 : f32 to vector<8x128xf32>
    %1223 = arith.maximumf %1222, %1220 : vector<8x128xf32>
    %1224 = arith.minimumf %1221, %1223 : vector<8x128xf32>
    %c2 = arith.constant 2 : index
    %c0_390 = arith.constant 0 : index
    %c0_391 = arith.constant 0 : index
    %c0_392 = arith.constant 0 : index
    %1225 = vector.load %arg1[%c2, %c0_390, %c0_391, %c0_392] : memref<7x1x8x128xf32, #tpu.memory_space<vmem>>, vector<1x1x8x128xf32>
    %1226 = vector.shape_cast %1225 : vector<1x1x8x128xf32> to vector<8x128xf32>
    %c5 = arith.constant 5 : index
    %c0_393 = arith.constant 0 : index
    %c0_394 = arith.constant 0 : index
    %c0_395 = arith.constant 0 : index
    %1227 = vector.load %arg1[%c5, %c0_393, %c0_394, %c0_395] : memref<7x1x8x128xf32, #tpu.memory_space<vmem>>, vector<1x1x8x128xf32>
    %1228 = vector.shape_cast %1227 : vector<1x1x8x128xf32> to vector<8x128xf32>
    %c2_396 = arith.constant 2 : index
    %c0_397 = arith.constant 0 : index
    %c0_398 = arith.constant 0 : index
    %c0_399 = arith.constant 0 : index
    %1229 = vector.load %arg2[%c2_396, %c0_397, %c0_398, %c0_399] : memref<7x1x8x128xf32, #tpu.memory_space<vmem>>, vector<1x1x8x128xf32>
    %1230 = vector.shape_cast %1229 : vector<1x1x8x128xf32> to vector<8x128xf32>
    %c5_400 = arith.constant 5 : index
    %c0_401 = arith.constant 0 : index
    %c0_402 = arith.constant 0 : index
    %c0_403 = arith.constant 0 : index
    %1231 = vector.load %arg2[%c5_400, %c0_401, %c0_402, %c0_403] : memref<7x1x8x128xf32, #tpu.memory_space<vmem>>, vector<1x1x8x128xf32>
    %1232 = vector.shape_cast %1231 : vector<1x1x8x128xf32> to vector<8x128xf32>
    %cst_404 = arith.constant 5.000000e-01 : f32
    %1233 = vector.broadcast %cst_404 : f32 to vector<8x128xf32>
    %1234 = arith.mulf %1233, %1228 : vector<8x128xf32>
    %1235 = arith.addf %1226, %1234 : vector<8x128xf32>
    %cst_405 = arith.constant 5.000000e-01 : f32
    %1236 = vector.broadcast %cst_405 : f32 to vector<8x128xf32>
    %1237 = arith.mulf %1236, %1232 : vector<8x128xf32>
    %1238 = arith.addf %1230, %1237 : vector<8x128xf32>
    %1239 = arith.minimumf %1235, %1238 : vector<8x128xf32>
    %cst_406 = arith.constant 5.000000e-01 : f32
    %1240 = vector.broadcast %cst_406 : f32 to vector<8x128xf32>
    %1241 = arith.mulf %1240, %1228 : vector<8x128xf32>
    %1242 = arith.subf %1226, %1241 : vector<8x128xf32>
    %cst_407 = arith.constant 5.000000e-01 : f32
    %1243 = vector.broadcast %cst_407 : f32 to vector<8x128xf32>
    %1244 = arith.mulf %1243, %1232 : vector<8x128xf32>
    %1245 = arith.subf %1230, %1244 : vector<8x128xf32>
    %1246 = arith.maximumf %1242, %1245 : vector<8x128xf32>
    %1247 = arith.subf %1239, %1246 : vector<8x128xf32>
    %cst_408 = arith.constant 0.000000e+00 : f32
    %1248 = vector.broadcast %cst_408 : f32 to vector<8x128xf32>
    %1249 = arith.maximumf %1247, %1248 : vector<8x128xf32>
    %1250 = arith.mulf %1224, %1249 : vector<8x128xf32>
    %1251 = arith.mulf %1217, %1228 : vector<8x128xf32>
    %1252 = arith.mulf %1218, %1232 : vector<8x128xf32>
    %1253 = arith.addf %1251, %1252 : vector<8x128xf32>
    %1254 = arith.subf %1253, %1250 : vector<8x128xf32>
    %cst_409 = arith.constant 1.000000e+00 : f32
    %1255 = vector.broadcast %cst_409 : f32 to vector<8x128xf32>
    %1256 = arith.addf %1250, %1255 : vector<8x128xf32>
    %cst_410 = arith.constant 1.000000e+00 : f32
    %1257 = vector.broadcast %cst_410 : f32 to vector<8x128xf32>
    %1258 = arith.addf %1254, %1257 : vector<8x128xf32>
    %1259 = arith.divf %1256, %1258 : vector<8x128xf32>
    %c0_411 = arith.constant 0 : index
    %c0_412 = arith.constant 0 : index
    %c0_413 = arith.constant 0 : index
    %1260 = vector.load %arg3[%c0_411, %c0_412, %c0_413] : memref<1x8x128xf32, #tpu.memory_space<vmem>>, vector<1x8x128xf32>
    %1261 = vector.shape_cast %1260 : vector<1x8x128xf32> to vector<8x128xf32>
    %1262 = vector.shape_cast %1259 : vector<8x128xf32> to vector<1x8x128xf32>
    tpu.vector_store %arg3[%c0_411, %c0_412, %c0_413], %1262 {strides = array<i32>} : memref<1x8x128xf32, #tpu.memory_space<vmem>>, vector<1x8x128xf32>,
    return
  }
  func.func @transform_0(%arg0: i32) -> (i32, i32, i32, i32) {
    %c0_i32 = arith.constant 0 : i32
    %c0_i32_0 = arith.constant 0 : i32
    %c0_i32_1 = arith.constant 0 : i32
    %c0_i32_2 = arith.constant 0 : i32
    return %c0_i32, %arg0, %c0_i32_0, %c0_i32_1 : i32, i32, i32, i32
  }
  func.func @transform_1(%arg0: i32) -> (i32, i32, i32, i32) {
    %c0_i32 = arith.constant 0 : i32
    %c0_i32_0 = arith.constant 0 : i32
    %c0_i32_1 = arith.constant 0 : i32
    %c0_i32_2 = arith.constant 0 : i32
    return %c0_i32, %arg0, %c0_i32_0, %c0_i32_1 : i32, i32, i32, i32
  }
  func.func @transform_2(%arg0: i32) -> (i32, i32, i32) {
    %c0_i32 = arith.constant 0 : i32
    %c0_i32_0 = arith.constant 0 : i32
    %c0_i32_1 = arith.constant 0 : i32
    return %arg0, %c0_i32, %c0_i32_0 : i32, i32, i32
  }
}

</mosaic_0001>

<bundles_post_ra>
// kernel: tpu_custom_call.1
= control target key start
LH: loop header
LB: loop body
LE: loop exit
PB: predicated region body
PF: predicated region fallthrough
CT: control target
= control target key end

     0   :  { %7 = vsyncpa [#allocation3], 0  ;;  %s3084_s0 = inlined_call_operand.hbm [shape: f32[7,1,8,128], index: 0, kind: input, shape index: {}]   ;;  %s3085_s1 = inlined_call_operand.hbm [shape: f32[7,1,8,128], index: 1, kind: input, shape index: {}]   ;;  %s3086_s2 = inlined_call_operand.hbm [shape: f32[1,8,128], index: 2, kind: output, shape index: {}]  }
   0x1   :  { %8 = vsyncpa [#allocation6], 0 }
   0x2   :  { %9 = vsyncpa [#allocation4], 0  ;;  %s1544_s9 = smov [#allocation2]  }
   0x3   :  { %s15_s10 = sshll.u32 %s1544_s9, 4  ;;  %s16_s10 = int_to_ptr.vmem [resolvable:$true] %s15_s10 }
   0x4   :  { %s1486_s11 = scalar_lea.vmem %s16_s10, 896  ;;  %p1491_p1 = scmp.lt.s32.totalorder %s16_s10, %s16_s10 }
   0x5   :  { %p1487_p0 = scmp.ne.s32.totalorder %s16_s10, %s1486_s11  ;;  %p1492_p2 = scmp.lt.s32.totalorder %s1486_s11, %s1486_s11 }
   0x7   :  { %p1493_p3 = por %p1492_p2, %p1491_p1 }
   0x9   :  { %p1494_p4 = pnand %p1493_p3, %p1487_p0 }
   0xb   :  { %1497 = shalt.err (!%p1494_p4)
}
   0xc   :  { %s1545_s12 = smov 128   ;;  %s1546_s13 = smov 8  }
   0xd   :  { %21 = dma.hbm_to_vmem [thread:$0]  %s3084_s0, 896, %s16_s10, [#allocation3], %s1545_s12, %s1545_s12, %s1546_s13  }
   0xe   :  { %s1547_s16 = smov [#allocation5]  }
   0xf   :  { %s27_s17 = sshll.u32 %s1547_s16, 4  ;;  %s28_s17 = int_to_ptr.vmem [resolvable:$true] %s27_s17 }
  0x10   :  { %s1506_s18 = scalar_lea.vmem %s28_s17, 896  ;;  %p1511_p6 = scmp.lt.s32.totalorder %s28_s17, %s28_s17 }
  0x11   :  { %p1507_p5 = scmp.ne.s32.totalorder %s28_s17, %s1506_s18  ;;  %p1512_p7 = scmp.lt.s32.totalorder %s1506_s18, %s1506_s18 }
  0x13   :  { %p1513_p8 = por %p1512_p7, %p1511_p6 }
  0x15   :  { %p1514_p9 = pnand %p1513_p8, %p1507_p5 }
  0x17   :  { %1517 = shalt.err (!%p1514_p9)
}
  0x18   :  { %33 = dma.hbm_to_vmem [thread:$0]  %s3085_s1, 896, %s28_s17, [#allocation6], %s1545_s12, %s1545_s12, %s1546_s13  }
  0x19   :  { %1538 = dma.done.wait [#allocation3], 896  }
  0x1a   :  { %1539 = vsyncadd [#allocation3], 4294966400 }
  0x1b   :  { %1540 = dma.done.wait [#allocation6], 896  }
  0x1c   :  { %1541 = vsyncadd [#allocation6], 4294966400  ;;  %v1576_v0 = vld [vmem:[#allocation2 + $0x30] sm:$0xff]  ;;  %v1579_v2 = vld [vmem:[#allocation5 + $0x30] sm:$0xff]  ;;  %v1548_v21 = vmov 683565275  }
  0x1d   :  { %v64_v1 = vand.u32 2147483647, %v1576_v0  ;;  %v67_v3 = vand.u32 2139095040, %v1576_v0  ;;  %v294_v5 = vand.u32 2139095040, %v1579_v2  ;;  %v291_v7 = vand.u32 2147483647, %v1579_v2 }
  0x1e   :  { %v1549_v23 = vmov 2475754826   ;;  %v1550_v25 = vmov 2131351028   ;;  %v1551_v27 = vmov 2102212464  }
  0x1f   :  { %v68_v4 = vshrl.u32 %v67_v3, 23  ;;  %v71_v6 = vand.u32 8388607, %v64_v1  ;;  %v295_v9 = vshrl.u32 %v294_v5, 23  ;;  %v1588_v13 = vand.u32 8388607, %v291_v7 }
  0x20   :  { %v1552_v29 = vmov 920167782   ;;  %v1553_v36 = vmov 1326507024   ;;  %vm66_vm14 = vcmp.lt.s32.totalorder %v1576_v0, 0  ;;  %s1554_s0 = smov [#allocation7]  }
  0x21   :  { %v1365_v8 = vadd.s32 4294967169, %v68_v4  ;;  %v72_v11 = vor.u32 8388608, %v71_v6  ;;  %v1373_v12 = vadd.s32 4294967169, %v295_v9  ;;  %v299_v19 = vor.u32 8388608, %v1588_v13  ;;  %s1355_s1 = sshll.u32 %s1554_s0, 4  ;;  %s1356_s1 = int_to_ptr.vmem [resolvable:$true] %s1355_s1 }
  0x22   :  { %vm1637_vm15 = vcmp.le.f32.partialorder %v64_v1, 0.7853982  ;;  %s1518_s21 = scalar_lea.vmem %s1356_s1, 128  ;;  %p1523_p11 = scmp.lt.s32.totalorder %s1356_s1, %s1356_s1 }
  0x23   :  { %v74_v10 = vadd.s32 1, %v1365_v8  ;;  %v301_v15 = vadd.s32 1, %v1373_v12  ;;  %v1590_v18 = vshll.u32 %v72_v11, 8  ;;  %p1519_p10 = scmp.ne.s32.totalorder %s1356_s1, %s1518_s21  ;;  %p1524_p12 = scmp.lt.s32.totalorder %s1518_s21, %s1518_s21 }
  0x25   :  { %vm75_vm0 = vcmp.gt.s32.totalorder %v74_v10, 0  ;;  %vm302_vm1 = vcmp.gt.s32.totalorder %v301_v15, 0  ;;  %p1525_p13 = por %p1524_p12, %p1523_p11 }
  0x26   :  { %v76_v14 = vsel %vm75_vm0, %v74_v10, 0  ;;  %v303_v41 = vsel %vm302_vm1, %v301_v15, 0  ;;  %vm293_vm0 = vcmp.lt.s32.totalorder %v1579_v2, 0  ;;  %vm1653_vm1 = vcmp.le.f32.partialorder %v291_v7, 0.7853982 }
  0x27   :  { %v77_v16 = vshrl.u32 %v76_v14, 5  ;;  %v78_v17 = vand.u32 31, %v76_v14  ;;  %v304_v44 = vshrl.u32 %v303_v41, 5  ;;  %v305_v45 = vand.u32 31, %v303_v41  ;;  %p1526_p0 = pnand %p1525_p13, %p1519_p10 }
  0x29   :  { %v79_v20 = vsub.s32 32, %v78_v17  ;;  %v81_v22 = vshll.u32 %v1548_v21, %v78_v17  ;;  %v84_v24 = vshll.u32 %v1549_v23, %v78_v17  ;;  %v87_v26 = vshll.u32 %v1550_v25, %v78_v17 }
  0x2a   :  { %v90_v28 = vshll.u32 %v1551_v27, %v78_v17  ;;  %v93_v30 = vshll.u32 %v1552_v29, %v78_v17  ;;  %vm96_vm2 = vcmp.lt.s32.totalorder %v77_v16, 1  ;;  %vm97_vm3 = vcmp.lt.s32.totalorder %v77_v16, 2 }
  0x2b   :  { %v80_v31 = vshrl.u32 %v1548_v21, %v79_v20  ;;  %v82_v32 = vshrl.u32 %v1549_v23, %v79_v20  ;;  %v85_v33 = vshrl.u32 %v1550_v25, %v79_v20  ;;  %v88_v34 = vshrl.u32 %v1551_v27, %v79_v20 }
  0x2c   :  { %v91_v35 = vshrl.u32 %v1552_v29, %v79_v20  ;;  %v94_v37 = vshrl.u32 %v1553_v36, %v79_v20  ;;  %vm98_vm4 = vcmp.lt.s32.totalorder %v77_v16, 3  ;;  %vm99_vm5 = vcmp.lt.s32.totalorder %v77_v16, 4 }
  0x2d   :  { %v83_v38 = vor.u32 %v82_v32, %v81_v22  ;;  %v86_v39 = vor.u32 %v85_v33, %v84_v24  ;;  %v89_v40 = vor.u32 %v88_v34, %v87_v26  ;;  %v306_v53 = vsub.s32 32, %v305_v45 }
  0x2e   :  { %v92_v42 = vor.u32 %v91_v35, %v90_v28  ;;  %v95_v43 = vor.u32 %v94_v37, %v93_v30  ;;  %v308_v57 = vshll.u32 %v1548_v21, %v305_v45  ;;  %v311_v6 = vshll.u32 %v1549_v23, %v305_v45 }
  0x2f   :  { %v100_v46 = vsel %vm96_vm2, %v80_v31, %v83_v38  ;;  %v101_v47 = vsel %vm99_vm5, %v89_v40, 2102212464  ;;  %v104_v48 = vsel %vm96_vm2, %v83_v38, %v86_v39  ;;  %v108_v49 = vsel %vm96_vm2, %v86_v39, %v89_v40 }
  0x30   :  { %v102_v50 = vsel %vm98_vm4, %v86_v39, %v101_v47  ;;  %v105_v51 = vsel %vm99_vm5, %v92_v42, 920167782  ;;  %v109_v52 = vsel %vm99_vm5, %v95_v43, 1326507024  ;;  %v307_v61 = vshrl.u32 %v1548_v21, %v306_v53 }
  0x31   :  { %v103_v54 = vsel %vm97_vm3, %v100_v46, %v102_v50  ;;  %v106_v55 = vsel %vm98_vm4, %v89_v40, %v105_v51  ;;  %v110_v56 = vsel %vm98_vm4, %v92_v42, %v109_v52  ;;  %v309_v5 = vshrl.u32 %v1549_v23, %v306_v53 }
  0x32   :  { %v107_v58 = vsel %vm97_vm3, %v104_v48, %v106_v55  ;;  %v111_v59 = vsel %vm97_vm3, %v108_v49, %v110_v56  ;;  %v119_v60 = vmul.u32 %v1590_v18, %v103_v54  ;;  %v312_v8 = vshrl.u32 %v1550_v25, %v306_v53 }
  0x33   :  { %v1605_v62 = vmul.u32.u64.low %v1590_v18, %v111_v59  ;;  %v1606_v63 = vmul.u32.u64.high %v1590_v18, %v111_v59, %v1605_v62  ;;  %v1609_v3 = vmul.u32.u64.low %v1590_v18, %v107_v58  ;;  %v1610_v4 = vmul.u32.u64.high %v1590_v18, %v107_v58, %v1609_v3 }
  0x34   :  { %v314_v9 = vshll.u32 %v1550_v25, %v305_v45  ;;  %v315_v10 = vshrl.u32 %v1551_v27, %v306_v53  ;;  %v317_v11 = vshll.u32 %v1551_v27, %v305_v45  ;;  %v318_v12 = vshrl.u32 %v1552_v29, %v306_v53 }
  0x35   :  { %v320_v14 = vshll.u32 %v1552_v29, %v305_v45  ;;  %v310_v15 = vor.u32 %v309_v5, %v308_v57  ;;  %v313_v16 = vor.u32 %v312_v8, %v311_v6  ;;  %v321_v17 = vshrl.u32 %v1553_v36, %v306_v53 }
  0x36   :  { %vm323_vm6 = vcmp.lt.s32.totalorder %v304_v44, 1  ;;  %vm121_vm7 = vc.u32 %v1606_v63, %v1609_v3  ;;  %v122_v20 = vadd.s32 1, %v1610_v4  ;;  %v316_v21 = vor.u32 %v315_v10, %v314_v9 }
  0x37   :  { %v339_v18 = vshll.u32 %v299_v19, 8  ;;  %v319_v22 = vor.u32 %v318_v12, %v317_v11  ;;  %v322_v23 = vor.u32 %v321_v17, %v320_v14  ;;  %vm324_vm8 = vcmp.lt.s32.totalorder %v304_v44, 2 }
  0x38   :  { %vm325_vm9 = vcmp.lt.s32.totalorder %v304_v44, 3  ;;  %v123_v24 = vsel %vm121_vm7, %v122_v20, %v1610_v4  ;;  %vm326_vm10 = vcmp.lt.s32.totalorder %v304_v44, 4  ;;  %v327_v25 = vsel %vm323_vm6, %v307_v61, %v310_v15 }
  0x39   :  { %v331_v26 = vsel %vm323_vm6, %v310_v15, %v313_v16  ;;  %v124_v27 = vadd.s32 %v123_v24, %v119_v60  ;;  %v328_v28 = vsel %vm326_vm10, %v316_v21, 2102212464  ;;  %v332_v29 = vsel %vm326_vm10, %v319_v22, 920167782 }
  0x3a   :  { %v335_v30 = vsel %vm323_vm6, %v313_v16, %v316_v21  ;;  %v329_v31 = vsel %vm325_vm9, %v313_v16, %v328_v28  ;;  %v333_v32 = vsel %vm325_vm9, %v316_v21, %v332_v29  ;;  %v336_v13 = vsel %vm326_vm10, %v322_v23, 1326507024 }
  0x3b   :  { %v125_v19 = vadd.s32 536870912, %v124_v27  ;;  %v334_v33 = vsel %vm324_vm8, %v331_v26, %v333_v32  ;;  %v337_v34 = vsel %vm325_vm9, %v319_v22, %v336_v13  ;;  %v330_v35 = vsel %vm324_vm8, %v327_v25, %v329_v31 }
  0x3c   :  { %v338_v36 = vsel %vm324_vm8, %v335_v30, %v337_v34  ;;  %v1623_v37 = vmul.u32.u64.low %v339_v18, %v334_v33  ;;  %v1624_v38 = vmul.u32.u64.high %v339_v18, %v334_v33, %v1623_v37  ;;  %v346_v43 = vmul.u32 %v339_v18, %v330_v35 }
  0x3d   :  { %v126_v39 = vshrl.u32 %v125_v19, 30  ;;  %v1626_v40 = vmul.u32.u64.low %v339_v18, %v338_v36  ;;  %v1627_v41 = vmul.u32.u64.high %v339_v18, %v338_v36, %v1626_v40  ;;  %v120_v55 = vadd.s32 %v1609_v3, %v1606_v63 }
  0x3e   :  { %v349_v45 = vadd.s32 1, %v1624_v38  ;;  %v40_v40 = vld [vmem:[#allocation2] sm:$0xff]  ;;  %vm156_vm8 = vweird.f32 %v1576_v0 }
  0x3f   :  { %v127_v42 = vshll.u32 %v126_v39, 30  ;;  %vm348_vm11 = vc.u32 %v1627_v41, %v1623_v37  ;;  %v347_v15 = vadd.s32 %v1623_v37, %v1627_v41  ;;  %v150_v25 = vsub.s32 4, %v126_v39  ;;  %v49_v41 = vld [vmem:[#allocation5] sm:$0xff] }
  0x40   :  { %v350_v47 = vsel %vm348_vm11, %v349_v45, %v1624_v38 }
  0x41   :  { %v128_v46 = vsub.s32 %v124_v27, %v127_v42  ;;  %v351_v49 = vadd.s32 %v350_v47, %v346_v43  ;;  %v151_v30 = vsel %vm66_vm14, %v150_v25, %v126_v39  ;;  %v58_v47 = vadd.f32 %v49_v41, %v40_v40 }
  0x42   :  { %v153_v13 = vsel %vm1637_vm15, 0, %v151_v30 }
  0x43   :  { %v130_v48 = vsub.s32 0, %v128_v46  ;;  %v352_v50 = vadd.s32 536870912, %v351_v49  ;;  %v260_v35 = vadd.s32 3, %v153_v13  ;;  %v157_v38 = vand.u32 3, %v153_v13 }
  0x45   :  { %v1366_v44 = vmin.u32 %v130_v48, %v128_v46  ;;  %v353_v52 = vshrl.u32 %v352_v50, 30  ;;  %v261_v43 = vand.u32 3, %v260_v35  ;;  %vm159_vm2 = vcmp.eq.s32.totalorder %v157_v38, 0 }
  0x46   :  { %vm162_vm3 = vcmp.eq.s32.totalorder %v157_v38, 2  ;;  %vm158_vm6 = vcmp.lt.s32.totalorder %v157_v38, 2 }
  0x47   :  { %v132_v51 = vclz %v1366_v44  ;;  %v354_v54 = vshll.u32 %v353_v52, 30  ;;  %v377_v34 = vsub.s32 4, %v353_v52  ;;  %v51_v44 = vld [vmem:[#allocation5 + $0x8] sm:$0xff]  ;;  %vm263_vm4 = vcmp.eq.s32.totalorder %v261_v43, 0 }
  0x48   :  { %vm266_vm5 = vcmp.eq.s32.totalorder %v261_v43, 2  ;;  %vm262_vm7 = vcmp.lt.s32.totalorder %v261_v43, 2 }
  0x49   :  { %v1367_v53 = vadd.s32 4294967294, %v132_v51  ;;  %v355_v57 = vsub.s32 %v351_v49, %v354_v54  ;;  %v378_v39 = vsel %vm293_vm0, %v377_v34, %v353_v52  ;;  %v42_v49 = vld [vmem:[#allocation2 + $0x8] sm:$0xff] }
  0x4a   :  { %v60_v54 = vadd.f32 %v51_v44, %v42_v49 }
  0x4b   :  { %vm1368_vm12 = vcmp.lt.s32.totalorder %v1367_v53, 0  ;;  %v357_v61 = vsub.s32 0, %v355_v57 }
  0x4c   :  { %v135_v56 = vsel %vm1368_vm12, 0, %v1367_v53  ;;  %v59_v53 = vmul.f32 0.5, %v58_v47 }
  0x4d   :  { %v136_v58 = vsub.s32 32, %v135_v56  ;;  %v137_v59 = vshll.u32 %v128_v46, %v135_v56  ;;  %v140_v60 = vsub.s32 4294967266, %v135_v56  ;;  %v1374_v5 = vmin.u32 %v357_v61, %v355_v57  ;;  %v46_v56 = vld [vmem:[#allocation2 + $0x20] sm:$0xff] }
  0x4e   :  { %v380_v46 = vsel %vm1653_vm1, 0, %v378_v39  ;;  %v289_v21 = vsub.f32 %v49_v41, %v59_v53 }
  0x4f   :  { %v138_v62 = vshrl.u32 %v120_v55, %v136_v58  ;;  %v141_v4 = vadd.s32 127, %v140_v60  ;;  %v359_v9 = vclz %v1374_v5  ;;  %v487_v50 = vadd.s32 3, %v380_v46  ;;  %v44_v55 = vld [vmem:[#allocation2 + $0x18] sm:$0xff]  ;;  %v53_v60 = vld [vmem:[#allocation5 + $0x18] sm:$0xff] }
  0x51   :  { %v139_v6 = vor.u32 %v138_v62, %v137_v59  ;;  %v142_v8 = vshll.u32 %v141_v4, 23  ;;  %v1375_v12 = vadd.s32 4294967294, %v359_v9  ;;  %v384_v59 = vand.u32 3, %v380_v46 }
  0x52   :  { %v488_v62 = vand.u32 3, %v487_v50  ;;  %v61_v4 = vmul.f32 0.5, %v60_v54 }
  0x53   :  { %v143_v10 = vor.u32 4788187, %v142_v8  ;;  %v146_v11 = vcvt.s32.f32 %v139_v6  ;;  %vm1376_vm13 = vcmp.lt.s32.totalorder %v1375_v12, 0  ;;  %v271_v6 = vmul.f32 0.5, %v44_v55 }
  0x54   :  { %v362_v3 = vsel %vm1376_vm13, 0, %v1375_v12  ;;  %v274_v8 = vmul.f32 0.5, %v46_v56  ;;  %vm385_vm9 = vcmp.lt.s32.totalorder %v384_v59, 2  ;;  %v498_v12 = vmul.f32 0.5, %v53_v60 }
  0x55   :  { %v144_v14 = vand.u32 2147483647, %v143_v10  ;;  %v363_v16 = vsub.s32 32, %v362_v3  ;;  %v364_v17 = vshll.u32 %v355_v57, %v362_v3  ;;  %v367_v20 = vsub.s32 4294967266, %v362_v3 }
  0x56   :  { %v62_v10 = vsub.f32 %v40_v40, %v59_v53  ;;  %vm386_vm10 = vcmp.eq.s32.totalorder %v384_v59, 0  ;;  %vm389_vm11 = vcmp.eq.s32.totalorder %v384_v59, 2  ;;  %vm490_vm12 = vcmp.eq.s32.totalorder %v488_v62, 0 }
  0x57   :  { %v147_v63 = vmul.f32 %v146_v11, %v144_v14  ;;  %v365_v22 = vshrl.u32 %v347_v15, %v363_v16  ;;  %v368_v23 = vadd.s32 127, %v367_v20  ;;  %vm493_vm13 = vcmp.eq.s32.totalorder %v488_v62, 2  ;;  %v55_v15 = vld [vmem:[#allocation5 + $0x20] sm:$0xff] }
  0x59   :  { %v148_v18 = vxor.u32 2147483648, %v147_v63  ;;  %v366_v27 = vor.u32 %v365_v22, %v364_v17  ;;  %v369_v28 = vshll.u32 %v368_v23, 23  ;;  %v63_v17 = vsub.f32 %v42_v49, %v61_v4 }
  0x5b   :  { %v149_v24 = vsel %vm66_vm14, %v148_v18, %v147_v63  ;;  %v370_v29 = vor.u32 4788187, %v369_v28  ;;  %v373_v1 = vcvt.s32.f32 %v366_v27  ;;  %vm489_vm14 = vcmp.lt.s32.totalorder %v488_v62, 2 }
  0x5c   :  { %v152_v26 = vsel %vm1637_vm15, %v1576_v0, %v149_v24  ;;  %vm383_vm15 = vweird.f32 %v1579_v2  ;;  %v501_v28 = vmul.f32 0.5, %v55_v15 }
  0x5d   :  { %1400 = vcosq.f32 %v152_v26  ;;  %v371_v31 = vand.u32 2147483647, %v370_v29  ;;  %v290_v29 = vsub.f32 %v51_v44, %v61_v4 }
  0x5e   :  { %1402 = vsinq.f32 %v152_v26 }
  0x5f   :  { %v374_v32 = vmul.f32 %v373_v1, %v371_v31 }
  0x61   :  { %v375_v33 = vxor.u32 2147483648, %v374_v32 }
  0x63   :  { %v376_v36 = vsel %vm293_vm0, %v375_v33, %v374_v32 }
  0x64   :  { %v379_v37 = vsel %vm1653_vm1, %v1579_v2, %v376_v36 }
  0x65   :  { %1404 = vcosq.f32 %v379_v37 }
  0x66   :  { %1406 = vsinq.f32 %v379_v37 }
  0x6a   :  { %v1401_v42 = vpop.eup %1400 }
  0x6b   :  { %v1403_v7 = vpop.eup %1402  ;;  %v163_v45 = vxor.u32 2147483648, %v1401_v42 }
  0x6c   :  { %v160_v48 = vxor.u32 2147483648, %v1403_v7 }
  0x6d   :  { %v164_v52 = vsel %vm162_vm3, %v163_v45, %v1403_v7  ;;  %v268_v58 = vsel %vm266_vm5, %v163_v45, %v1403_v7 }
  0x6e   :  { %v161_v51 = vsel %vm159_vm2, %v1401_v42, %v160_v48  ;;  %v265_v57 = vsel %vm263_vm4, %v1401_v42, %v160_v48 }
  0x6f   :  { %v165_v61 = vsel %vm158_vm6, %v161_v51, %v164_v52  ;;  %v269_v5 = vsel %vm262_vm7, %v265_v57, %v268_v58 }
  0x70   :  { %v166_v11 = vsel %vm156_vm8, nan, %v165_v61  ;;  %v270_v63 = vsel %vm156_vm8, nan, %v269_v5 }
  0x71   :  { %v272_v20 = vmul.f32 %v271_v6, %v166_v11  ;;  %v273_v25 = vmul.f32 %v271_v6, %v270_v63  ;;  %v275_v32 = vmul.f32 %v274_v8, %v166_v11  ;;  %v276_v13 = vmul.f32 %v274_v8, %v270_v63 }
  0x72   :  { %v1405_v9 = vpop.eup %1404 }
  0x73   :  { %v1407_v14 = vpop.eup %1406  ;;  %v390_v16 = vxor.u32 2147483648, %v1405_v9  ;;  %v277_v19 = vadd.f32 %v272_v20, %v62_v10  ;;  %v279_v33 = vsub.f32 %v62_v10, %v272_v20  ;;  %v283_v34 = vadd.f32 %v273_v25, %v63_v17 }
  0x74   :  { %v387_v3 = vxor.u32 2147483648, %v1407_v14  ;;  %v285_v37 = vsub.f32 %v63_v17, %v273_v25 }
  0x75   :  { %v391_v22 = vsel %vm389_vm11, %v390_v16, %v1407_v14  ;;  %v495_v24 = vsel %vm493_vm13, %v390_v16, %v1407_v14  ;;  %v1669_v41 = vsub.f32 %v277_v19, %v276_v13  ;;  %v1671_v42 = vsub.f32 %v279_v33, %v276_v13 }
  0x76   :  { %v388_v18 = vsel %vm386_vm10, %v1405_v9, %v387_v3  ;;  %v492_v23 = vsel %vm490_vm12, %v1405_v9, %v387_v3  ;;  %v1677_v45 = vadd.f32 %v283_v34, %v275_v32  ;;  %v1679_v46 = vadd.f32 %v285_v37, %v275_v32 }
  0x77   :  { %v392_v26 = vsel %vm385_vm9, %v388_v18, %v391_v22  ;;  %v496_v27 = vsel %vm489_vm14, %v492_v23, %v495_v24  ;;  %v1685_v49 = vsub.f32 %v285_v37, %v275_v32  ;;  %v1707_v57 = vadd.f32 %v279_v33, %v276_v13 }
  0x78   :  { %v393_v0 = vsel %vm383_vm15, nan, %v392_v26  ;;  %v497_v1 = vsel %vm383_vm15, nan, %v496_v27  ;;  %v1735_v14 = vadd.f32 %v277_v19, %v276_v13  ;;  %v1737_v15 = vsub.f32 %v283_v34, %v275_v32 }
  0x79   :  { %v499_v30 = vmul.f32 %v498_v12, %v393_v0  ;;  %v500_v31 = vmul.f32 %v498_v12, %v497_v1  ;;  %v503_v2 = vmul.f32 %v501_v28, %v497_v1  ;;  %v502_v38 = vmul.f32 %v501_v28, %v393_v0 }
  0x7b   :  { %v504_v35 = vadd.f32 %v499_v30, %v289_v21  ;;  %v506_v36 = vsub.f32 %v289_v21, %v499_v30  ;;  %v510_v39 = vadd.f32 %v500_v31, %v290_v29  ;;  %v512_v40 = vsub.f32 %v290_v29, %v500_v31 }
  0x7d   :  { %v1673_v43 = vsub.f32 %v504_v35, %v503_v2  ;;  %v1675_v7 = vsub.f32 %v506_v36, %v503_v2  ;;  %v1681_v47 = vadd.f32 %v510_v39, %v502_v38  ;;  %v1683_v48 = vadd.f32 %v512_v40, %v502_v38 }
  0x7e   :  { %v1687_v44 = vadd.f32 %v506_v36, %v503_v2  ;;  %v1689_v50 = vsub.f32 %v512_v40, %v502_v38  ;;  %v1709_v58 = vadd.f32 %v504_v35, %v503_v2  ;;  %v1711_v59 = vsub.f32 %v510_v39, %v502_v38 }
  0x7f   :  { %v1693_v51 = vsub.f32 %v1675_v7, %v1673_v43  ;;  %v520_v52 = vsub.f32 %v1669_v41, %v1673_v43  ;;  %v1699_v53 = vsub.f32 %v1683_v48, %v1681_v47  ;;  %v518_v54 = vsub.f32 %v1677_v45, %v1681_v47 }
  0x80   :  { %3117 = vst [vmem:[#allocation11_spill] sm:$0xff] %v1689_v50  ;;  %v523_v55 = vsub.f32 %v1679_v46, %v1681_v47  ;;  %v525_v56 = vsub.f32 %v1671_v42, %v1673_v43  ;;  %3118 = vst [vmem:[#allocation12_spill] sm:$0xff] %v1709_v58  ;;  %v528_v60 = vsub.f32 %v1685_v49, %v1681_v47 }
  0x81   :  { %3119 = vst [vmem:[#allocation13_spill] sm:$0xff] %v1711_v59  ;;  %v1717_v61 = vsub.f32 %v1687_v44, %v1675_v7  ;;  %v1721_v62 = vsub.f32 %v1689_v50, %v1683_v48  ;;  %v519_v4 = vmul.f32 %v518_v54, %v1693_v51  ;;  %v521_v5 = vmul.f32 %v520_v52, %v1699_v53 }
  0x82   :  { %v524_v6 = vmul.f32 %v523_v55, %v1693_v51  ;;  %v526_v8 = vmul.f32 %v525_v56, %v1699_v53  ;;  %v540_v9 = vsub.f32 %v1677_v45, %v1683_v48  ;;  %v542_v10 = vsub.f32 %v1669_v41, %v1675_v7 }
  0x83   :  { %3120 = vst [vmem:[#allocation14_spill] sm:$0xff] %v1721_v62  ;;  %v545_v11 = vsub.f32 %v1679_v46, %v1683_v48  ;;  %v547_v12 = vsub.f32 %v1671_v42, %v1675_v7  ;;  %v1741_v63 = vsub.f32 %v1709_v58, %v1687_v44  ;;  %v562_v3 = vsub.f32 %v1677_v45, %v1689_v50 }
  0x84   :  { %v1747_v16 = vsub.f32 %v1711_v59, %v1689_v50  ;;  %v564_v17 = vsub.f32 %v1669_v41, %v1687_v44  ;;  %v567_v20 = vsub.f32 %v1679_v46, %v1689_v50  ;;  %v569_v21 = vsub.f32 %v1671_v42, %v1687_v44 }
  0x85   :  { %3121 = vst [vmem:[#allocation15_spill] sm:$0xff] %v1741_v63  ;;  %v1755_v18 = vsub.f32 %v519_v4, %v521_v5  ;;  %v1757_v22 = vsub.f32 %v524_v6, %v526_v8  ;;  %v529_v23 = vmul.f32 %v528_v60, %v1693_v51  ;;  %v530_v24 = vsub.f32 %v1707_v57, %v1673_v43 }
  0x86   :  { %3122 = vst [vmem:[#allocation16_spill] sm:$0xff] %v1747_v16  ;;  %v541_v25 = vmul.f32 %v540_v9, %v1717_v61  ;;  %v543_v26 = vmul.f32 %v542_v10, %v1721_v62  ;;  %v546_v27 = vmul.f32 %v545_v11, %v1717_v61  ;;  %v548_v28 = vmul.f32 %v547_v12, %v1721_v62 }
  0x87   :  { %v550_v29 = vsub.f32 %v1685_v49, %v1683_v48  ;;  %v563_v0 = vmul.f32 %v562_v3, %v1741_v63  ;;  %v1771_v1 = vsub.f32 %v1673_v43, %v1709_v58  ;;  %v1775_v30 = vsub.f32 %v1681_v47, %v1711_v59 }
  0x88   :  { %v565_v31 = vmul.f32 %v564_v17, %v1747_v16  ;;  %v568_v32 = vmul.f32 %v567_v20, %v1741_v63  ;;  %v570_v13 = vmul.f32 %v569_v21, %v1747_v16  ;;  %v584_v19 = vsub.f32 %v1677_v45, %v1711_v59 }
  0x89   :  { %3123 = vst [vmem:[#allocation17_spill] sm:$0xff] %v1771_v1  ;;  %3124 = vst [vmem:[#allocation18_spill] sm:$0xff] %v1775_v30  ;;  %v552_v33 = vsub.f32 %v1707_v57, %v1675_v7  ;;  %v586_v34 = vsub.f32 %v1669_v41, %v1709_v58  ;;  %v589_v2 = vsub.f32 %v1679_v46, %v1711_v59  ;;  %vm608_vm7 = vcmp.lt.f32.partialorder %v1755_v18, 0.0 }
  0x8a   :  { %v591_v35 = vsub.f32 %v1671_v42, %v1709_v58  ;;  %v531_v36 = vmul.f32 %v530_v24, %v1699_v53  ;;  %v1791_v37 = vsub.f32 %v541_v25, %v543_v26  ;;  %v1793_v38 = vsub.f32 %v546_v27, %v548_v28 }
  0x8b   :  { %v572_v39 = vsub.f32 %v1685_v49, %v1689_v50  ;;  %v585_v40 = vmul.f32 %v584_v19, %v1771_v1  ;;  %v587_v52 = vmul.f32 %v586_v34, %v1775_v30  ;;  %v590_v54 = vmul.f32 %v589_v2, %v1771_v1 }
  0x8c   :  { %v592_v55 = vmul.f32 %v591_v35, %v1775_v30  ;;  %v1801_v56 = vsub.f32 %v563_v0, %v565_v31  ;;  %v1803_v60 = vsub.f32 %v568_v32, %v570_v13  ;;  %v574_v4 = vsub.f32 %v1707_v57, %v1687_v44 }
  0x8d   :  { %v1809_v5 = vsub.f32 %v1757_v22, %v1755_v18  ;;  %v533_v6 = vsub.f32 %v1737_v15, %v1681_v47  ;;  %v535_v8 = vsub.f32 %v1735_v14, %v1673_v43  ;;  %v551_v9 = vmul.f32 %v550_v29, %v1717_v61 }
  0x8e   :  { %v553_v10 = vmul.f32 %v552_v33, %v1721_v62  ;;  %v1817_v11 = vsub.f32 %v529_v23, %v531_v36  ;;  %v594_v12 = vsub.f32 %v1685_v49, %v1711_v59  ;;  %v596_v3 = vsub.f32 %v1707_v57, %v1709_v58 }
  0x8f   :  { %vm607_vm0 = vcmp.eq.f32.partialorder %v1809_v5, 0.0  ;;  %v1824_v17 = vsub.f32 %v585_v40, %v587_v52  ;;  %v1826_v20 = vsub.f32 %v590_v54, %v592_v55  ;;  %v1833_v23 = vsub.f32 %v1793_v38, %v1791_v37 }
  0x90   :  { %v611_v21 = vsel %vm607_vm0, 1.0, %v1809_v5  ;;  %v573_v24 = vmul.f32 %v572_v39, %v1741_v63  ;;  %v575_v25 = vmul.f32 %v574_v4, %v1747_v16  ;;  %v1839_v26 = vsub.f32 %v1803_v60, %v1801_v56 }
  0x91   :  { %1408 = vrcp.f32 %v611_v21  ;;  %v1841_v27 = vsub.f32 %v551_v9, %v553_v10  ;;  %v555_v28 = vsub.f32 %v1737_v15, %v1683_v48  ;;  %v557_v29 = vsub.f32 %v1735_v14, %v1675_v7 }
  0x92   :  { %vm621_vm1 = vcmp.eq.f32.partialorder %v1833_v23, 0.0  ;;  %v577_v0 = vsub.f32 %v1737_v15, %v1689_v50  ;;  %v595_v31 = vmul.f32 %v594_v12, %v1771_v1  ;;  %vm637_vm2 = vcmp.eq.f32.partialorder %v1839_v26, 0.0 }
  0x93   :  { %v625_v32 = vsel %vm621_vm1, 1.0, %v1833_v23  ;;  %v597_v13 = vmul.f32 %v596_v3, %v1775_v30  ;;  %v641_v19 = vsel %vm637_vm2, 1.0, %v1839_v26  ;;  %v1861_v33 = vsub.f32 %v1826_v20, %v1824_v17 }
  0x94   :  { %1410 = vrcp.f32 %v625_v32  ;;  %v1863_v34 = vsub.f32 %v573_v24, %v575_v25  ;;  %v579_v2 = vsub.f32 %v1735_v14, %v1687_v44  ;;  %v1869_v35 = vsub.f32 %v1817_v11, %v1757_v22 }
  0x95   :  { %1412 = vrcp.f32 %v641_v19  ;;  %v534_v36 = vmul.f32 %v533_v6, %v1693_v51  ;;  %v536_v39 = vmul.f32 %v535_v8, %v1699_v53  ;;  %v556_v40 = vmul.f32 %v555_v28, %v1717_v61 }
  0x96   :  { %vm653_vm3 = vcmp.eq.f32.partialorder %v1861_v33, 0.0  ;;  %v558_v52 = vmul.f32 %v557_v29, %v1721_v62  ;;  %v578_v54 = vmul.f32 %v577_v0, %v1741_v63  ;;  %vm3090_vm4 = vcmp.eq.f32.partialorder %v1869_v35, 0.0 }
  0x97   :  { %v657_v55 = vsel %vm653_vm3, 1.0, %v1861_v33  ;;  %v1881_v4 = vsub.f32 %v595_v31, %v597_v13  ;;  %v690_v6 = vsel %vm3090_vm4, 1.0, %v1869_v35  ;;  %v1888_v8 = vsub.f32 %v1841_v27, %v1793_v38 }
  0x98   :  { %1414 = vrcp.f32 %v657_v55  ;;  %v580_v9 = vmul.f32 %v579_v2, %v1747_v16  ;;  %v599_v10 = vsub.f32 %v1737_v15, %v1711_v59  ;;  %v1895_v12 = vsub.f32 %v1863_v34, %v1803_v60 }
  0x99   :  { %1416 = vrcp.f32 %v690_v6  ;;  %v601_v3 = vsub.f32 %v1735_v14, %v1709_v58  ;;  %vm3089_vm5 = vcmp.eq.f32.partialorder %v1888_v8, 0.0  ;;  %v610_v21 = vsub.f32 0.0, %v1755_v18 }
  0x9a   :  { %v704_v24 = vsel %vm3089_vm5, 1.0, %v1888_v8  ;;  %vm3087_vm6 = vcmp.eq.f32.partialorder %v1895_v12, 0.0  ;;  %v1905_v25 = vsub.f32 %v534_v36, %v536_v39  ;;  %v1912_v29 = vsub.f32 %v1881_v4, %v1826_v20 }
  0x9b   :  { %1418 = vrcp.f32 %v704_v24  ;;  %v720_v28 = vsel %vm3087_vm6, 1.0, %v1895_v12  ;;  %v1914_v0 = vsub.f32 %v556_v40, %v558_v52  ;;  %v1916_v31 = vsub.f32 %v578_v54, %v580_v9 }
  0x9c   :  { %v1919_v32 = vmul.f32 %v599_v10, %v1771_v1  ;;  %1420 = vrcp.f32 %v720_v28  ;;  %v1922_v19 = vmul.f32 %v601_v3, %v1775_v30  ;;  %v624_v2 = vsub.f32 0.0, %v1791_v37 }
  0x9d   :  { %vm3088_vm8 = vcmp.eq.f32.partialorder %v1912_v29, 0.0  ;;  %vm614_vm9 = vcmp.gt.f32.partialorder %v1809_v5, 0.0  ;;  %v640_v39 = vsub.f32 0.0, %v1801_v56  ;;  %vm617_vm10 = vcmp.lt.f32.partialorder %v1809_v5, 0.0 }
  0x9e   :  { %v1409_v13 = vpop.eup %1408  ;;  %v736_v40 = vsel %vm3088_vm8, 1.0, %v1912_v29  ;;  %vm622_vm11 = vcmp.lt.f32.partialorder %v1791_v37, 0.0  ;;  %vm628_vm12 = vcmp.gt.f32.partialorder %v1833_v23, 0.0  ;;  %vm631_vm13 = vcmp.lt.f32.partialorder %v1833_v23, 0.0  ;;  %vm1947_vm8 = vmand %vm607_vm0, %vm608_vm7 }
  0x9f   :  { %v613_v36 = vmul.f32 %v1409_v13, %v610_v21  ;;  %vm638_vm14 = vcmp.lt.f32.partialorder %v1801_v56, 0.0  ;;  %vm644_vm15 = vcmp.gt.f32.partialorder %v1839_v26, 0.0  ;;  %vm647_vm6 = vcmp.lt.f32.partialorder %v1839_v26, 0.0  ;;  %vm1962_vm4 = vmand %vm621_vm1, %vm622_vm11 }
  0xa0   :  { %v1941_v54 = vsub.f32 %v1905_v25, %v1817_v11  ;;  %vm654_vm5 = vcmp.lt.f32.partialorder %v1824_v17, 0.0  ;;  %1422 = vrcp.f32 %v736_v40  ;;  %v1954_v10 = vsub.f32 %v1914_v0, %v1841_v27 }
  0xa1   :  { %v1411_v52 = vpop.eup %1410  ;;  %v615_v3 = vsel %vm614_vm9, %v613_v36, 0.0  ;;  %v656_v28 = vsub.f32 0.0, %v1824_v17  ;;  %vm660_vm0 = vcmp.gt.f32.partialorder %v1861_v33, 0.0  ;;  %v618_v13 = vsel %vm617_vm10, %v613_v36, 1.0 }
  0xa2   :  { %v1413_v55 = vpop.eup %1412  ;;  %v627_v9 = vmul.f32 %v1411_v52, %v624_v2  ;;  %vm663_vm7 = vcmp.lt.f32.partialorder %v1861_v33, 0.0  ;;  %vm687_vm1 = vcmp.lt.f32.partialorder %v1757_v22, 0.0  ;;  %vm693_vm9 = vcmp.gt.f32.partialorder %v1869_v35, 0.0 }
  0xa3   :  { %v643_v24 = vmul.f32 %v1413_v55, %v640_v39  ;;  %v689_v39 = vsub.f32 0.0, %v1757_v22  ;;  %vm766_vm11 = vcmp.eq.f32.partialorder %v1941_v54, 0.0  ;;  %v616_v5 = vsel %vm1947_vm8, 2.0, %v615_v3 }
  0xa4   :  { %v629_v2 = vsel %vm628_vm12, %v627_v9, 0.0  ;;  %v632_v40 = vsel %vm631_vm13, %v627_v9, 1.0  ;;  %v703_v23 = vsub.f32 0.0, %v1793_v38  ;;  %vm780_vm10 = vcmp.eq.f32.partialorder %v1954_v10, 0.0  ;;  %vm1993_vm12 = vmand %vm637_vm2, %vm638_vm14 }
  0xa5   :  { %v1415_v52 = vpop.eup %1414  ;;  %v630_v36 = vsel %vm1962_vm4, 2.0, %v629_v2  ;;  %v619_v9 = vsel %vm1947_vm8, -1.0, %v618_v13  ;;  %v633_v30 = vsel %vm1962_vm4, -1.0, %v632_v40  ;;  %v645_v3 = vsel %vm644_vm15, %v643_v24, 0.0 }
  0xa6   :  { %v1417_v55 = vpop.eup %1416  ;;  %v659_v2 = vmul.f32 %v1415_v52, %v656_v28  ;;  %v648_v16 = vsel %vm647_vm6, %v643_v24, 1.0  ;;  %vm696_vm8 = vcmp.lt.f32.partialorder %v1869_v35, 0.0  ;;  %vm701_vm13 = vcmp.lt.f32.partialorder %v1793_v38, 0.0  ;;  %vm2020_vm6 = vmand %vm653_vm3, %vm654_vm5 }
  0xa7   :  { %v770_v6 = vsel %vm766_vm11, 1.0, %v1941_v54  ;;  %v634_v13 = vmax.f32 %v616_v5, %v630_v36  ;;  %v692_v40 = vmul.f32 %v1417_v55, %v689_v39  ;;  %v719_v63 = vsub.f32 0.0, %v1803_v60 }
  0xa8   :  { %v1419_v21 = vpop.eup %1418  ;;  %v784_v28 = vsel %vm780_vm10, 1.0, %v1954_v10  ;;  %v635_v26 = vmin.f32 %v619_v9, %v633_v30  ;;  %v646_v24 = vsel %vm1993_vm12, 2.0, %v645_v3  ;;  %vm707_vm2 = vcmp.gt.f32.partialorder %v1888_v8, 0.0 }
  0xa9   :  { %v1421_v52 = vpop.eup %1420  ;;  %vm710_vm4 = vcmp.lt.f32.partialorder %v1888_v8, 0.0  ;;  %v649_v62 = vsel %vm1993_vm12, -1.0, %v648_v16  ;;  %v661_v30 = vsel %vm660_vm0, %v659_v2, 0.0  ;;  %v706_v55 = vmul.f32 %v1419_v21, %v703_v23 }
  0xaa   :  { %1424 = vrcp.f32 %v770_v6  ;;  %v664_v5 = vsel %vm663_vm7, %v659_v2, 1.0  ;;  %vm3133_vm14 = vcmp.eq.f32.partialorder %v1869_v35, 0.0  ;;  %vm717_vm3 = vcmp.lt.f32.partialorder %v1803_v60, 0.0 }
  0xab   :  { %vm2032_vm15 = vmand %vm3133_vm14, %vm687_vm1  ;;  %1426 = vrcp.f32 %v784_v28  ;;  %v2039_v1 = vsub.f32 %v1916_v31, %v1863_v34  ;;  %v650_v36 = vmax.f32 %v634_v13, %v646_v24  ;;  %v694_v33 = vsel %vm693_vm9, %v692_v40, 0.0 }
  0xac   :  { %vm3136_vm5 = vcmp.eq.f32.partialorder %v1888_v8, 0.0  ;;  %v708_v23 = vsel %vm707_vm2, %v706_v55, 0.0  ;;  %v722_v9 = vmul.f32 %v1421_v52, %v719_v63  ;;  %v651_v3 = vmin.f32 %v635_v26, %v649_v62 }
  0xad   :  { %vm2047_vm0 = vmand %vm3136_vm5, %vm701_vm13  ;;  %v662_v2 = vsel %vm2020_vm6, 2.0, %v661_v30  ;;  %vm723_vm7 = vcmp.gt.f32.partialorder %v1895_v12, 0.0  ;;  %v735_v6 = vsub.f32 0.0, %v1826_v20  ;;  %v1423_v21 = vpop.eup %1422  ;;  %v2059_v38 = vsub.f32 %v1919_v32, %v1922_v19 }
  0xae   :  { %v665_v13 = vsel %vm2020_vm6, -1.0, %v664_v5  ;;  %v695_v28 = vsel %vm2032_vm15, 2.0, %v694_v33  ;;  %v697_v62 = vsel %vm696_vm8, %v692_v40, 1.0  ;;  %v709_v63 = vsel %vm2047_vm0, 2.0, %v708_v23 }
  0xaf   :  { %v711_v52 = vsel %vm710_vm4, %v706_v55, 1.0  ;;  %v666_v26 = vmax.f32 %v650_v36, %v662_v2  ;;  %vm3139_vm1 = vcmp.eq.f32.partialorder %v1895_v12, 0.0  ;;  %v724_v19 = vsel %vm723_vm7, %v722_v9, 0.0 }
  0xb0   :  { %vm2075_vm9 = vmand %vm3139_vm1, %vm717_vm3  ;;  %vm726_vm12 = vcmp.lt.f32.partialorder %v1895_v12, 0.0  ;;  %vm796_vm8 = vcmp.eq.f32.partialorder %v2039_v1, 0.0  ;;  %v667_v35 = vmin.f32 %v651_v3, %v665_v13  ;;  %vm733_vm13 = vcmp.lt.f32.partialorder %v1826_v20, 0.0 }
  0xb1   :  { %v738_v40 = vmul.f32 %v1423_v21, %v735_v6  ;;  %vm739_vm2 = vcmp.gt.f32.partialorder %v1912_v29, 0.0  ;;  %v698_v60 = vsel %vm2032_vm15, -1.0, %v697_v62  ;;  %v712_v8 = vsel %vm2047_vm0, -1.0, %v711_v52 }
  0xb2   :  { %v713_v24 = vmax.f32 %v695_v28, %v709_v63  ;;  %v2089_v39 = vsub.f32 %v2059_v38, %v1881_v4  ;;  %v725_v12 = vsel %vm2075_vm9, 2.0, %v724_v19  ;;  %v727_v30 = vsel %vm726_vm12, %v722_v9, 1.0 }
  0xb3   :  { %v800_v20 = vsel %vm796_vm8, 1.0, %v2039_v1  ;;  %v2096_v55 = vmax.f32 %v666_v26, 0.0  ;;  %vm3142_vm4 = vcmp.eq.f32.partialorder %v1912_v29, 0.0  ;;  %v740_v16 = vsel %vm739_vm2, %v738_v40, 0.0 }
  0xb4   :  { %vm2100_vm6 = vmand %vm3142_vm4, %vm733_vm13  ;;  %vm742_vm14 = vcmp.lt.f32.partialorder %v1912_v29, 0.0  ;;  %v2107_v36 = vsub.f32 %v1671_v42, %v1669_v41  ;;  %v2111_v33 = vsub.f32 %v1679_v46, %v1677_v45  ;;  %v2113_v22 = vmin.f32 %v667_v35, 1.0 }
  0xb5   :  { %v714_v23 = vmin.f32 %v698_v60, %v712_v8  ;;  %v728_v9 = vsel %vm2075_vm9, -1.0, %v727_v30  ;;  %v729_v3 = vmax.f32 %v713_v24, %v725_v12  ;;  %1428 = vrcp.f32 %v800_v20 }
  0xb6   :  { %vm812_vm15 = vcmp.eq.f32.partialorder %v2089_v39, 0.0  ;;  %v741_v29 = vsel %vm2100_vm6, 2.0, %v740_v16  ;;  %v743_v6 = vsel %vm742_vm14, %v738_v40, 1.0  ;;  %v769_v21 = vsub.f32 0.0, %v1817_v11 }
  0xb7   :  { %v1425_v2 = vpop.eup %1424  ;;  %v670_v28 = vmul.f32 %v2096_v55, %v2107_v36  ;;  %v672_v62 = vmul.f32 %v2096_v55, %v2111_v33  ;;  %v783_v63 = vsub.f32 0.0, %v1841_v27  ;;  %v816_v52 = vsel %vm812_vm15, 1.0, %v2089_v39 }
  0xb8   :  { %v1427_v13 = vpop.eup %1426  ;;  %v674_v26 = vmul.f32 %v2113_v22, %v2107_v36  ;;  %v676_v32 = vmul.f32 %v2113_v22, %v2111_v33  ;;  %v730_v19 = vmin.f32 %v714_v23, %v728_v9  ;;  %vm767_vm3 = vcmp.lt.f32.partialorder %v1817_v11, 0.0 }
  0xb9   :  { %v744_v35 = vsel %vm2100_vm6, -1.0, %v743_v6  ;;  %v745_v40 = vmax.f32 %v729_v3, %v741_v29  ;;  %vm773_vm5 = vcmp.gt.f32.partialorder %v1941_v54, 0.0  ;;  %1430 = vrcp.f32 %v816_v52  ;;  %vm2167_vm12 = vmand %vm766_vm11, %vm767_vm3 }
  0xba   :  { %v772_v60 = vmul.f32 %v1425_v2, %v769_v21  ;;  %vm776_vm0 = vcmp.lt.f32.partialorder %v1941_v54, 0.0  ;;  %vm781_vm7 = vcmp.lt.f32.partialorder %v1841_v27, 0.0  ;;  %vm787_vm1 = vcmp.gt.f32.partialorder %v1954_v10, 0.0 }
  0xbb   :  { %v671_v8 = vadd.f32 %v670_v28, %v1669_v41  ;;  %v673_v24 = vadd.f32 %v672_v62, %v1677_v45  ;;  %v786_v12 = vmul.f32 %v1427_v13, %v783_v63  ;;  %vm790_vm9 = vcmp.lt.f32.partialorder %v1954_v10, 0.0  ;;  %vm2182_vm11 = vmand %vm780_vm10, %vm781_vm7 }
  0xbc   :  { %v675_v30 = vadd.f32 %v674_v26, %v1669_v41  ;;  %v677_v20 = vadd.f32 %v676_v32, %v1677_v45  ;;  %v746_v5 = vmin.f32 %v730_v19, %v744_v35  ;;  %v2147_v16 = vsub.f32 %v1755_v18, %v1905_v25 }
  0xbd   :  { %v2151_v23 = vsub.f32 %v1707_v57, %v1671_v42  ;;  %v2155_v9 = vsub.f32 %v1685_v49, %v1679_v46  ;;  %v2157_v3 = vmax.f32 %v745_v40, 0.0  ;;  %v2161_v2 = vsub.f32 %v1791_v37, %v1914_v0 }
  0xbe   :  { %v774_v29 = vsel %vm773_vm5, %v772_v60, 0.0  ;;  %vm797_vm13 = vcmp.lt.f32.partialorder %v1863_v34, 0.0  ;;  %v799_v6 = vsub.f32 0.0, %v1863_v34  ;;  %vm803_vm2 = vcmp.gt.f32.partialorder %v2039_v1, 0.0 }
  0xbf   :  { %v777_v37 = vsel %vm776_vm0, %v772_v60, 1.0  ;;  %v788_v21 = vsel %vm787_vm1, %v786_v12, 0.0  ;;  %v791_v13 = vsel %vm790_vm9, %v786_v12, 1.0  ;;  %vm806_vm4 = vcmp.lt.f32.partialorder %v2039_v1, 0.0  ;;  %vm2234_vm5 = vmand %vm796_vm8, %vm797_vm13 }
  0xc0   :  { %v679_v28 = vmul.f32 %v677_v20, %v671_v8  ;;  %v680_v62 = vmul.f32 %v675_v30, %v673_v24  ;;  %v2191_v54 = vmin.f32 %v746_v5, 1.0  ;;  %vm846_vm6 = vcmp.eq.f32.partialorder %v2147_v16, 0.0 }
  0xc1   :  { %v749_v27 = vmul.f32 %v2157_v3, %v2151_v23  ;;  %v775_v63 = vsel %vm2167_vm12, 2.0, %v774_v29  ;;  %vm860_vm10 = vcmp.eq.f32.partialorder %v2161_v2, 0.0  ;;  %v2201_v10 = vsub.f32 %v1801_v56, %v1916_v31 }
  0xc2   :  { %v1429_v52 = vpop.eup %1428  ;;  %v751_v26 = vmul.f32 %v2157_v3, %v2155_v9  ;;  %v778_v32 = vsel %vm2167_vm12, -1.0, %v777_v37  ;;  %v789_v19 = vsel %vm2182_vm11, 2.0, %v788_v21  ;;  %v792_v35 = vsel %vm2182_vm11, -1.0, %v791_v13 }
  0xc3   :  { %v802_v40 = vmul.f32 %v1429_v52, %v799_v6  ;;  %vm813_vm14 = vcmp.lt.f32.partialorder %v1881_v4, 0.0  ;;  %v815_v60 = vsub.f32 0.0, %v1881_v4  ;;  %v850_v56 = vsel %vm846_vm6, 1.0, %v2147_v16 }
  0xc4   :  { %v753_v8 = vmul.f32 %v2191_v54, %v2151_v23  ;;  %v755_v24 = vmul.f32 %v2191_v54, %v2155_v9  ;;  %v864_v12 = vsel %vm860_vm10, 1.0, %v2161_v2  ;;  %v2225_v30 = vsub.f32 %v1824_v17, %v2059_v38  ;;  %vm2258_vm1 = vmand %vm812_vm15, %vm813_vm14 }
  0xc5   :  { %v750_v20 = vadd.f32 %v749_v27, %v1671_v42  ;;  %v793_v5 = vmax.f32 %v775_v63, %v789_v19  ;;  %v794_v18 = vmin.f32 %v778_v32, %v792_v35  ;;  %vm876_vm3 = vcmp.eq.f32.partialorder %v2201_v10, 0.0 }
  0xc6   :  { %v1431_v29 = vpop.eup %1430  ;;  %v752_v6 = vadd.f32 %v751_v26, %v1679_v46  ;;  %v804_v17 = vsel %vm803_vm2, %v802_v40, 0.0  ;;  %v807_v11 = vsel %vm806_vm4, %v802_v40, 1.0  ;;  %1432 = vrcp.f32 %v850_v56 }
  0xc7   :  { %v818_v21 = vmul.f32 %v1431_v29, %v815_v60  ;;  %vm819_vm0 = vcmp.gt.f32.partialorder %v2089_v39, 0.0  ;;  %vm822_vm7 = vcmp.lt.f32.partialorder %v2089_v39, 0.0  ;;  %1434 = vrcp.f32 %v864_v12 }
  0xc8   :  { %v754_v34 = vadd.f32 %v753_v8, %v1671_v42  ;;  %v756_v13 = vadd.f32 %v755_v24, %v1679_v46  ;;  %v880_v27 = vsel %vm876_vm3, 1.0, %v2201_v10  ;;  %vm892_vm8 = vcmp.eq.f32.partialorder %v2225_v30, 0.0 }
  0xc9   :  { %v805_v1 = vsel %vm2234_vm5, 2.0, %v804_v17  ;;  %v808_v63 = vsel %vm2234_vm5, -1.0, %v807_v11  ;;  %v820_v26 = vsel %vm819_vm0, %v818_v21, 0.0  ;;  %v823_v32 = vsel %vm822_vm7, %v818_v21, 1.0 }
  0xca   :  { %vm678_vm9 = vcmp.gt.f32.partialorder %v2113_v22, %v2096_v55  ;;  %v681_v19 = vsub.f32 %v679_v28, %v680_v62  ;;  %1436 = vrcp.f32 %v880_v27  ;;  %v896_v35 = vsel %vm892_vm8, 1.0, %v2225_v30 }
  0xcb   :  { %v758_v40 = vmul.f32 %v756_v13, %v750_v20  ;;  %v759_v60 = vmul.f32 %v754_v34, %v752_v6  ;;  %v809_v4 = vmax.f32 %v793_v5, %v805_v1  ;;  %v810_v56 = vmin.f32 %v794_v18, %v808_v63 }
  0xcc   :  { %v821_v39 = vsel %vm2258_vm1, 2.0, %v820_v26  ;;  %v824_v8 = vsel %vm2258_vm1, -1.0, %v823_v32  ;;  %v2273_v24 = vsub.f32 %v1735_v14, %v1707_v57  ;;  %v2277_v55 = vsub.f32 %v1737_v15, %v1685_v49 }
  0xcd   :  { %v2281_v22 = vsub.f32 %v1669_v41, %v1735_v14  ;;  %1438 = vrcp.f32 %v896_v35  ;;  %v2283_v28 = vsel %vm678_vm9, %v681_v19, 0.0  ;;  %v2287_v62 = vsub.f32 %v1677_v45, %v1737_v15 }
  0xce   :  { %3153 = vst [vmem:[#allocation19_spill] sm:$0xff] %v2283_v28  ;;  %v923_v12 = vsub.f32 %v1681_v47, %v1677_v45  ;;  %v925_v20 = vsub.f32 %v1673_v43, %v1669_v41  ;;  %vm757_vm15 = vcmp.gt.f32.partialorder %v2191_v54, %v2157_v3  ;;  %v760_v5 = vsub.f32 %v758_v40, %v759_v60 }
  0xcf   :  { %v825_v18 = vmax.f32 %v809_v4, %v821_v39  ;;  %v826_v29 = vmin.f32 %v810_v56, %v824_v8  ;;  %vm847_vm12 = vcmp.lt.f32.partialorder %v1905_v25, 0.0  ;;  %v849_v6 = vsub.f32 0.0, %v1905_v25 }
  0xd0   :  { %vm853_vm13 = vcmp.gt.f32.partialorder %v2147_v16, 0.0  ;;  %vm856_vm2 = vcmp.lt.f32.partialorder %v2147_v16, 0.0  ;;  %vm861_vm11 = vcmp.lt.f32.partialorder %v1914_v0, 0.0  ;;  %v863_v37 = vsub.f32 0.0, %v1914_v0  ;;  %vm2354_vm9 = vmand %vm846_vm6, %vm847_vm12 }
  0xd1   :  { %v928_v17 = vsub.f32 %v1683_v48, %v1677_v45  ;;  %v930_v11 = vsub.f32 %v1675_v7, %v1669_v41  ;;  %vm867_vm4 = vcmp.gt.f32.partialorder %v2161_v2, 0.0  ;;  %vm870_vm14 = vcmp.lt.f32.partialorder %v2161_v2, 0.0  ;;  %vm2371_vm6 = vmand %vm860_vm10, %vm861_vm11 }
  0xd2   :  { %v924_v34 = vmul.f32 %v923_v12, %v2107_v36  ;;  %v926_v13 = vmul.f32 %v925_v20, %v2111_v33  ;;  %v2312_v1 = vsel %vm757_vm15, %v760_v5, 0.0  ;;  %v2314_v63 = vmax.f32 %v825_v18, 0.0 }
  0xd3   :  { %v1433_v21 = vpop.eup %1432  ;;  %3154 = vst [vmem:[#allocation20_spill] sm:$0xff] %v2312_v1  ;;  %v2316_v52 = vmin.f32 %v826_v29, 1.0  ;;  %vm877_vm5 = vcmp.lt.f32.partialorder %v1916_v31, 0.0  ;;  %v879_v26 = vsub.f32 0.0, %v1916_v31  ;;  %vm883_vm0 = vcmp.gt.f32.partialorder %v2201_v10, 0.0 }
  0xd4   :  { %v1435_v27 = vpop.eup %1434  ;;  %v933_v32 = vsub.f32 %v1689_v50, %v1677_v45  ;;  %v935_v19 = vsub.f32 %v1687_v44, %v1669_v41  ;;  %v852_v35 = vmul.f32 %v1433_v21, %v849_v6  ;;  %vm886_vm7 = vcmp.lt.f32.partialorder %v2201_v10, 0.0  ;;  %vm2401_vm10 = vmand %vm876_vm3, %vm877_vm5 }
  0xd5   :  { %v929_v3 = vmul.f32 %v928_v17, %v2107_v36  ;;  %v931_v54 = vmul.f32 %v930_v11, %v2111_v33  ;;  %v938_v40 = vsub.f32 %v1711_v59, %v1677_v45  ;;  %v866_v60 = vmul.f32 %v1435_v27, %v863_v37 }
  0xd6   :  { %vm893_vm1 = vcmp.lt.f32.partialorder %v2059_v38, 0.0  ;;  %v895_v4 = vsub.f32 0.0, %v2059_v38  ;;  %v2333_v56 = vsub.f32 %v924_v34, %v926_v13  ;;  %v829_v8 = vmul.f32 %v2314_v63, %v2273_v24 }
  0xd7   :  { %v1437_v39 = vpop.eup %1436  ;;  %v831_v12 = vmul.f32 %v2314_v63, %v2277_v55  ;;  %v833_v20 = vmul.f32 %v2316_v52, %v2273_v24  ;;  %v835_v45 = vmul.f32 %v2316_v52, %v2277_v55  ;;  %vm902_vm15 = vcmp.lt.f32.partialorder %v2225_v30, 0.0  ;;  %vm2432_vm3 = vmand %vm892_vm8, %vm893_vm1 }
  0xd8   :  { %v934_v5 = vmul.f32 %v933_v32, %v2107_v36  ;;  %v936_v18 = vmul.f32 %v935_v19, %v2111_v33  ;;  %v943_v29 = vsub.f32 %v1681_v47, %v1679_v46  ;;  %v945_v6 = vsub.f32 %v1673_v43, %v1671_v42 }
  0xd9   :  { %v854_v17 = vsel %vm853_vm13, %v852_v35, 0.0  ;;  %v857_v11 = vsel %vm856_vm2, %v852_v35, 1.0  ;;  %v2362_v21 = vsub.f32 %v929_v3, %v931_v54  ;;  %v2365_v34 = vmul.f32 %v938_v40, %v2107_v36 }
  0xda   :  { %v1439_v13 = vpop.eup %1438  ;;  %v868_v27 = vsel %vm867_vm4, %v866_v60, 0.0  ;;  %v871_v16 = vsel %vm870_vm14, %v866_v60, 1.0  ;;  %v882_v32 = vmul.f32 %v1437_v39, %v879_v26  ;;  %v940_v36 = vsub.f32 %v1709_v58, %v1669_v41 }
  0xdb   :  { %v830_v19 = vadd.f32 %v829_v8, %v1707_v57  ;;  %v832_v0 = vadd.f32 %v831_v12, %v1685_v49  ;;  %v834_v35 = vadd.f32 %v833_v20, %v1707_v57  ;;  %v836_v3 = vadd.f32 %v835_v45, %v1685_v49 }
  0xdc   :  { %v855_v54 = vsel %vm2354_vm9, 2.0, %v854_v17  ;;  %v858_v40 = vsel %vm2354_vm9, -1.0, %v857_v11  ;;  %v944_v2 = vmul.f32 %v943_v29, %v2151_v23  ;;  %v946_v26 = vmul.f32 %v945_v6, %v2155_v9 }
  0xdd   :  { %v869_v41 = vsel %vm2371_vm6, 2.0, %v868_v27  ;;  %v872_v60 = vsel %vm2371_vm6, -1.0, %v871_v16  ;;  %v898_v39 = vmul.f32 %v1439_v13, %v895_v4  ;;  %v948_v8 = vsub.f32 %v1683_v48, %v1679_v46 }
  0xde   :  { %v884_v20 = vsel %vm883_vm0, %v882_v32, 0.0  ;;  %v950_v45 = vsub.f32 %v1675_v7, %v1671_v42  ;;  %v963_v4 = vsub.f32 %v1681_v47, %v1685_v49  ;;  %v965_v29 = vsub.f32 %v1673_v43, %v1707_v57 }
  0xdf   :  { %v2413_v6 = vmul.f32 %v836_v3, %v830_v19  ;;  %v2415_v31 = vmul.f32 %v834_v35, %v832_v0  ;;  %v2417_v37 = vsub.f32 %v934_v5, %v936_v18  ;;  %v941_v17 = vmul.f32 %v940_v36, %v2111_v33 }
  0xe0   :  { %v873_v11 = vmax.f32 %v855_v54, %v869_v41  ;;  %v887_v13 = vsel %vm886_vm7, %v882_v32, 1.0  ;;  %v968_v25 = vsub.f32 %v1683_v48, %v1685_v49  ;;  %v970_v27 = vsub.f32 %v1675_v7, %v1707_v57 }
  0xe1   :  { %3161 = vst [vmem:[#allocation21_spill] sm:$0xff] %v2413_v6  ;;  %3162 = vst [vmem:[#allocation22_spill] sm:$0xff] %v2415_v31  ;;  %v874_v16 = vmin.f32 %v858_v40, %v872_v60  ;;  %v885_v19 = vsel %vm2401_vm10, 2.0, %v884_v20  ;;  %vm3165_vm12 = vcmp.gt.f32.partialorder %v2225_v30, 0.0  ;;  %v2438_v5 = vsub.f32 %v944_v2, %v946_v26 }
  0xe2   :  { %v900_v10 = vsel %vm3165_vm12, %v898_v39, 0.0  ;;  %v949_v18 = vmul.f32 %v948_v8, %v2151_v23  ;;  %v951_v32 = vmul.f32 %v950_v45, %v2155_v9  ;;  %v964_v36 = vmul.f32 %v963_v4, %v2273_v24 }
  0xe3   :  { %v966_v0 = vmul.f32 %v965_v29, %v2277_v55  ;;  %v888_v38 = vsel %vm2401_vm10, -1.0, %v887_v13  ;;  %v903_v35 = vsel %vm902_vm15, %v898_v39, 1.0  ;;  %v983_v3 = vsub.f32 %v1681_v47, %v1737_v15 }
  0xe4   :  { %v985_v54 = vsub.f32 %v1673_v43, %v1735_v14  ;;  %v901_v40 = vsel %vm2432_vm3, 2.0, %v900_v10  ;;  %v969_v2 = vmul.f32 %v968_v25, %v2273_v24  ;;  %v971_v26 = vmul.f32 %v970_v27, %v2277_v55 }
  0xe5   :  { %v988_v41 = vsub.f32 %v1683_v48, %v1737_v15  ;;  %v889_v60 = vmax.f32 %v873_v11, %v885_v19  ;;  %v953_v30 = vsub.f32 %v1689_v50, %v1679_v46  ;;  %v955_v39 = vsub.f32 %v1687_v44, %v1671_v42 }
  0xe6   :  { %v990_v8 = vsub.f32 %v1675_v7, %v1735_v14  ;;  %v890_v12 = vmin.f32 %v874_v16, %v888_v38  ;;  %v904_v20 = vsel %vm2432_vm3, -1.0, %v903_v35  ;;  %v2466_v45 = vsub.f32 %v949_v18, %v951_v32 }
  0xe7   :  { %v2468_v4 = vsub.f32 %v964_v36, %v966_v0  ;;  %v984_v29 = vmul.f32 %v983_v3, %v2281_v22  ;;  %v986_v11 = vmul.f32 %v985_v54, %v2287_v62  ;;  %v989_v13 = vmul.f32 %v988_v41, %v2281_v22 }
  0xe8   :  { %v991_v25 = vmul.f32 %v990_v8, %v2287_v62  ;;  %v2474_v27 = vsub.f32 %v969_v2, %v971_v26  ;;  %v973_v16 = vsub.f32 %v1689_v50, %v1685_v49  ;;  %v975_v19 = vsub.f32 %v1687_v44, %v1707_v57 }
  0xe9   :  { %v2482_v33 = vsub.f32 %v2362_v21, %v2333_v56  ;;  %v905_v10 = vmax.f32 %v889_v60, %v901_v40  ;;  %v2485_v18 = vsub.f32 %v2365_v34, %v941_v17  ;;  %v954_v32 = vmul.f32 %v953_v30, %v2151_v23 }
  0xea   :  { %v956_v36 = vmul.f32 %v955_v39, %v2155_v9  ;;  %v906_v0 = vmin.f32 %v890_v12, %v904_v20  ;;  %v993_v38 = vsub.f32 %v1689_v50, %v1737_v15  ;;  %v995_v35 = vsub.f32 %v1687_v44, %v1735_v14 }
  0xeb   :  { %vm1004_vm8 = vcmp.eq.f32.partialorder %v2482_v33, 0.0  ;;  %v2494_v3 = vsub.f32 %v984_v29, %v986_v11  ;;  %v2496_v54 = vsub.f32 %v989_v13, %v991_v25  ;;  %v2503_v17 = vsub.f32 %v2466_v45, %v2438_v5 }
  0xec   :  { %v1008_v34 = vsel %vm1004_vm8, 1.0, %v2482_v33  ;;  %v974_v40 = vmul.f32 %v973_v16, %v2273_v24  ;;  %v976_v2 = vmul.f32 %v975_v19, %v2277_v55  ;;  %v2509_v26 = vsub.f32 %v2474_v27, %v2468_v4 }
  0xed   :  { %1440 = vrcp.f32 %v1008_v34  ;;  %v2511_v41 = vsub.f32 %v954_v32, %v956_v36  ;;  %v958_v60 = vsub.f32 %v1711_v59, %v1679_v46  ;;  %v960_v30 = vsub.f32 %v1709_v58, %v1671_v42 }
  0xee   :  { %vm1018_vm13 = vcmp.eq.f32.partialorder %v2503_v17, 0.0  ;;  %v978_v39 = vsub.f32 %v1711_v59, %v1685_v49  ;;  %v994_v8 = vmul.f32 %v993_v38, %v2281_v22  ;;  %vm1034_vm2 = vcmp.eq.f32.partialorder %v2509_v26, 0.0 }
  0xef   :  { %v1022_v12 = vsel %vm1018_vm13, 1.0, %v2503_v17  ;;  %v996_v20 = vmul.f32 %v995_v35, %v2287_v62  ;;  %v1038_v42 = vsel %vm1034_vm2, 1.0, %v2509_v26  ;;  %v2531_v46 = vsub.f32 %v2496_v54, %v2494_v3 }
  0xf0   :  { %1442 = vrcp.f32 %v1022_v12  ;;  %v2533_v49 = vsub.f32 %v974_v40, %v976_v2  ;;  %v980_v29 = vsub.f32 %v1709_v58, %v1707_v57  ;;  %v2539_v11 = vsub.f32 %v2417_v37, %v2362_v21 }
  0xf1   :  { %1444 = vrcp.f32 %v1038_v42  ;;  %v2541_v13 = vmax.f32 %v905_v10, 0.0  ;;  %v2543_v25 = vmin.f32 %v906_v0, 1.0  ;;  %v959_v16 = vmul.f32 %v958_v60, %v2151_v23 }
  0xf2   :  { %vm1050_vm11 = vcmp.eq.f32.partialorder %v2531_v46, 0.0  ;;  %v961_v19 = vmul.f32 %v960_v30, %v2155_v9  ;;  %v979_v32 = vmul.f32 %v978_v39, %v2273_v24  ;;  %vm3104_vm4 = vcmp.eq.f32.partialorder %v2539_v11, 0.0 }
  0xf3   :  { %3166 = vst [vmem:[#allocation23_spill] sm:$0xff] %v2541_v13  ;;  %v1054_v57 = vsel %vm1050_vm11, 1.0, %v2531_v46  ;;  %v2553_v36 = vsub.f32 %v994_v8, %v996_v20  ;;  %v1085_v10 = vsel %vm3104_vm4, 1.0, %v2539_v11  ;;  %v2560_v23 = vsub.f32 %v2511_v41, %v2466_v45 }
  0xf4   :  { %1446 = vrcp.f32 %v1054_v57  ;;  %v981_v9 = vmul.f32 %v980_v29, %v2277_v55  ;;  %v998_v24 = vsub.f32 %v1711_v59, %v1737_v15  ;;  %v2567_v0 = vsub.f32 %v2533_v49, %v2474_v27 }
  0xf5   :  { %1448 = vrcp.f32 %v1085_v10  ;;  %v2571_v38 = vmul.f32 %v2541_v13, %v2281_v22  ;;  %v2575_v35 = vmul.f32 %v2541_v13, %v2287_v62  ;;  %v1000_v34 = vsub.f32 %v1709_v58, %v1735_v14 }
  0xf6   :  { %vm3103_vm14 = vcmp.eq.f32.partialorder %v2560_v23, 0.0  ;;  %v2582_v55 = vmul.f32 %v2543_v25, %v2281_v22  ;;  %v1007_v40 = vsub.f32 0.0, %v2333_v56  ;;  %vm3102_vm5 = vcmp.eq.f32.partialorder %v2567_v0, 0.0 }
  0xf7   :  { %v1099_v2 = vsel %vm3103_vm14, 1.0, %v2560_v23  ;;  %v2589_v60 = vsub.f32 %v959_v16, %v961_v19  ;;  %v1115_v30 = vsel %vm3102_vm5, 1.0, %v2567_v0  ;;  %v2596_v39 = vsub.f32 %v2553_v36, %v2496_v54 }
  0xf8   :  { %1450 = vrcp.f32 %v1099_v2  ;;  %v2598_v8 = vsub.f32 %v979_v32, %v981_v9  ;;  %v2601_v12 = vmul.f32 %v998_v24, %v2281_v22  ;;  %vm1005_vm0 = vcmp.lt.f32.partialorder %v2333_v56, 0.0 }
  0xf9   :  { %1452 = vrcp.f32 %v1115_v30  ;;  %v2605_v42 = vmul.f32 %v1000_v34, %v2287_v62  ;;  %vm1011_vm7 = vcmp.gt.f32.partialorder %v2482_v33, 0.0  ;;  %v1021_v29 = vsub.f32 0.0, %v2438_v5  ;;  %vm2626_vm3 = vmand %vm1004_vm8, %vm1005_vm0 }
  0xfa   :  { %v1441_v20 = vpop.eup %1440  ;;  %vm3101_vm1 = vcmp.eq.f32.partialorder %v2596_v39, 0.0  ;;  %vm1019_vm9 = vcmp.lt.f32.partialorder %v2438_v5, 0.0  ;;  %v1037_v19 = vsub.f32 0.0, %v2468_v4  ;;  %vm1014_vm15 = vcmp.lt.f32.partialorder %v2482_v33, 0.0 }
  0xfb   :  { %v1010_v16 = vmul.f32 %v1441_v20, %v1007_v40  ;;  %v1131_v22 = vsel %vm3101_vm1, 1.0, %v2596_v39  ;;  %vm1025_vm6 = vcmp.gt.f32.partialorder %v2503_v17, 0.0  ;;  %vm1035_vm10 = vcmp.lt.f32.partialorder %v2468_v4, 0.0  ;;  %vm2643_vm8 = vmand %vm1018_vm13, %vm1019_vm9 }
  0xfc   :  { %v2620_v32 = vsub.f32 %v2485_v18, %v2417_v37  ;;  %vm1028_vm12 = vcmp.lt.f32.partialorder %v2503_v17, 0.0  ;;  %vm1041_vm1 = vcmp.gt.f32.partialorder %v2509_v26, 0.0  ;;  %vm1044_vm5 = vcmp.lt.f32.partialorder %v2509_v26, 0.0  ;;  %vm2668_vm9 = vmand %vm1034_vm2, %vm1035_vm10 }
  0xfd   :  { %v1443_v57 = vpop.eup %1442  ;;  %v2635_v9 = vsub.f32 %v2589_v60, %v2511_v41  ;;  %v1012_v34 = vsel %vm1011_vm7, %v1010_v16, 0.0  ;;  %vm1051_vm0 = vcmp.lt.f32.partialorder %v2494_v3, 0.0  ;;  %1454 = vrcp.f32 %v1131_v22 }
  0xfe   :  { %v1445_v24 = vpop.eup %1444  ;;  %v1024_v2 = vmul.f32 %v1443_v57, %v1021_v29  ;;  %v1053_v20 = vsub.f32 0.0, %v2494_v3  ;;  %vm1057_vm14 = vcmp.gt.f32.partialorder %v2531_v46, 0.0  ;;  %vm1082_vm4 = vcmp.lt.f32.partialorder %v2362_v21, 0.0 }
  0xff   :  { %v1040_v30 = vmul.f32 %v1445_v24, %v1037_v19  ;;  %v1015_v59 = vsel %vm1014_vm15, %v1010_v16, 1.0  ;;  %v1084_v13 = vsub.f32 0.0, %v2362_v21  ;;  %vm1159_vm13 = vcmp.eq.f32.partialorder %v2620_v32, 0.0 }
 0x100   :  { %v1026_v58 = vsel %vm1025_vm6, %v1024_v2, 0.0  ;;  %v1013_v19 = vsel %vm2626_vm3, 2.0, %v1012_v34  ;;  %v1029_v57 = vsel %vm1028_vm12, %v1024_v2, 1.0  ;;  %vm3112_vm7 = vcmp.eq.f32.partialorder %v2635_v9, 0.0 }
 0x101   :  { %v1447_v29 = vpop.eup %1446  ;;  %v1027_v22 = vsel %vm2643_vm8, 2.0, %v1026_v58  ;;  %v1042_v24 = vsel %vm1041_vm1, %v1040_v30, 0.0  ;;  %vm1060_vm15 = vcmp.lt.f32.partialorder %v2531_v46, 0.0  ;;  %vm1088_vm6 = vcmp.gt.f32.partialorder %v2539_v11, 0.0 }
 0x102   :  { %v1449_v33 = vpop.eup %1448  ;;  %vm1091_vm12 = vcmp.lt.f32.partialorder %v2539_v11, 0.0  ;;  %v1016_v58 = vsel %vm2626_vm3, -1.0, %v1015_v59  ;;  %v1056_v17 = vmul.f32 %v1447_v29, %v1053_v20  ;;  %v1098_v34 = vsub.f32 0.0, %v2466_v45 }
 0x103   :  { %v1163_v2 = vsel %vm1159_vm13, 1.0, %v2620_v32  ;;  %v1030_v1 = vsel %vm2643_vm8, -1.0, %v1029_v57  ;;  %v1031_v28 = vmax.f32 %v1013_v19, %v1027_v22  ;;  %v1087_v6 = vmul.f32 %v1449_v33, %v1084_v13  ;;  %vm2701_vm8 = vmand %vm1050_vm11, %vm1051_vm0 }
 0x104   :  { %v1177_v31 = vsel %vm3112_vm7, 1.0, %v2635_v9  ;;  %v1043_v59 = vsel %vm2668_vm9, 2.0, %v1042_v24  ;;  %v1045_v10 = vsel %vm1044_vm5, %v1040_v30, 1.0  ;;  %vm1096_vm2 = vcmp.lt.f32.partialorder %v2466_v45, 0.0 }
 0x105   :  { %v1451_v50 = vpop.eup %1450  ;;  %v1114_v20 = vsub.f32 0.0, %v2474_v27  ;;  %vm1102_vm1 = vcmp.gt.f32.partialorder %v2560_v23, 0.0  ;;  %vm1105_vm10 = vcmp.lt.f32.partialorder %v2560_v23, 0.0  ;;  %vm1112_vm3 = vcmp.lt.f32.partialorder %v2474_v27, 0.0 }
 0x106   :  { %v1453_v29 = vpop.eup %1452  ;;  %1456 = vrcp.f32 %v1163_v2  ;;  %v1032_v13 = vmin.f32 %v1016_v58, %v1030_v1  ;;  %v1058_v40 = vsel %vm1057_vm14, %v1056_v17, 0.0  ;;  %v1101_v30 = vmul.f32 %v1451_v50, %v1098_v34 }
 0x107   :  { %1458 = vrcp.f32 %v1177_v31  ;;  %v1046_v19 = vsel %vm2668_vm9, -1.0, %v1045_v10  ;;  %v1047_v22 = vmax.f32 %v1031_v28, %v1043_v59  ;;  %vm3175_vm5 = vcmp.eq.f32.partialorder %v2539_v11, 0.0 }
 0x108   :  { %vm2713_vm7 = vmand %vm3175_vm5, %vm1082_vm4  ;;  %v1089_v57 = vsel %vm1088_vm6, %v1087_v6, 0.0  ;;  %vm1118_vm11 = vcmp.gt.f32.partialorder %v2567_v0, 0.0  ;;  %v1092_v50 = vsel %vm1091_vm12, %v1087_v6, 1.0  ;;  %vm3178_vm14 = vcmp.eq.f32.partialorder %v2560_v23, 0.0 }
 0x109   :  { %vm2726_vm0 = vmand %vm3178_vm14, %vm1096_vm2  ;;  %v1103_v21 = vsel %vm1102_vm1, %v1101_v30, 0.0  ;;  %v1106_v31 = vsel %vm1105_vm10, %v1101_v30, 1.0  ;;  %v1117_v33 = vmul.f32 %v1453_v29, %v1114_v20  ;;  %v1059_v16 = vsel %vm2701_vm8, 2.0, %v1058_v40 }
 0x10a   :  { %v1061_v6 = vsel %vm1060_vm15, %v1056_v17, 1.0  ;;  %vm1121_vm4 = vcmp.lt.f32.partialorder %v2567_v0, 0.0  ;;  %v1130_v45 = vsub.f32 0.0, %v2496_v54  ;;  %v1455_v11 = vpop.eup %1454  ;;  %v915_v24 = vmul.f32 %v2543_v25, %v2287_v62 }
 0x10b   :  { %v2744_v58 = vsub.f32 %v2601_v12, %v2605_v42  ;;  %v1048_v23 = vmin.f32 %v1032_v13, %v1046_v19  ;;  %v2748_v34 = vsub.f32 %v2598_v8, %v2533_v49  ;;  %v1090_v46 = vsel %vm2713_vm7, 2.0, %v1089_v57 }
 0x10c   :  { %v1093_v17 = vsel %vm2713_vm7, -1.0, %v1092_v50  ;;  %v1104_v2 = vsel %vm2726_vm0, 2.0, %v1103_v21  ;;  %v1107_v62 = vsel %vm2726_vm0, -1.0, %v1106_v31  ;;  %v1062_v12 = vsel %vm2701_vm8, -1.0, %v1061_v6 }
 0x10d   :  { %v1063_v42 = vmax.f32 %v1047_v22, %v1059_v16  ;;  %vm3181_vm9 = vcmp.eq.f32.partialorder %v2567_v0, 0.0  ;;  %v1119_v10 = vsel %vm1118_vm11, %v1117_v33, 0.0  ;;  %v1122_v20 = vsel %vm1121_vm4, %v1117_v33, 1.0 }
 0x10e   :  { %vm2764_vm15 = vmand %vm3181_vm9, %vm1112_vm3  ;;  %vm1128_vm7 = vcmp.lt.f32.partialorder %v2496_v54, 0.0  ;;  %v1133_v29 = vmul.f32 %v1455_v11, %v1130_v45  ;;  %vm1134_vm6 = vcmp.gt.f32.partialorder %v2596_v39, 0.0  ;;  %vm1137_vm12 = vcmp.lt.f32.partialorder %v2596_v39, 0.0 }
 0x10f   :  { %v2775_v27 = vadd.f32 %v2571_v38, %v1735_v14  ;;  %v1108_v13 = vmax.f32 %v1090_v46, %v1104_v2  ;;  %v1109_v26 = vmin.f32 %v1093_v17, %v1107_v62  ;;  %v2779_v40 = vsub.f32 %v2744_v58, %v2553_v36 }
 0x110   :  { %v1064_v0 = vmin.f32 %v1048_v23, %v1062_v12  ;;  %v1120_v30 = vsel %vm2764_vm15, 2.0, %v1119_v10  ;;  %v1123_v54 = vsel %vm2764_vm15, -1.0, %v1122_v20  ;;  %vm1189_vm2 = vcmp.eq.f32.partialorder %v2748_v34, 0.0 }
 0x111   :  { %v2788_v19 = vadd.f32 %v2575_v35, %v1737_v15  ;;  %v2790_v38 = vmax.f32 %v1063_v42, 0.0  ;;  %vm3184_vm1 = vcmp.eq.f32.partialorder %v2596_v39, 0.0  ;;  %v1135_v1 = vsel %vm1134_vm6, %v1133_v29, 0.0 }
 0x112   :  { %vm2794_vm10 = vmand %vm3184_vm1, %vm1128_vm7  ;;  %v1138_v57 = vsel %vm1137_vm12, %v1133_v29, 1.0  ;;  %v2800_v50 = vadd.f32 %v2582_v55, %v1735_v14  ;;  %v2803_v28 = vadd.f32 %v915_v24, %v1737_v15  ;;  %vm1160_vm3 = vcmp.lt.f32.partialorder %v2417_v37, 0.0 }
 0x113   :  { %v1162_v35 = vsub.f32 0.0, %v2417_v37  ;;  %v1457_v21 = vpop.eup %1456  ;;  %v1124_v31 = vmax.f32 %v1108_v13, %v1120_v30  ;;  %v1125_v39 = vmin.f32 %v1109_v26, %v1123_v54  ;;  %v1176_v33 = vsub.f32 0.0, %v2511_v41  ;;  %vm2846_vm15 = vmand %vm1159_vm13, %vm1160_vm3 }
 0x114   :  { %v1193_v16 = vsel %vm1189_vm2, 1.0, %v2748_v34  ;;  %v1459_v6 = vpop.eup %1458  ;;  %v2811_v45 = vmin.f32 %v1064_v0, 1.0  ;;  %v1136_v14 = vsel %vm2794_vm10, 2.0, %v1135_v1  ;;  %v1139_v15 = vsel %vm2794_vm10, -1.0, %v1138_v57  ;;  %v3192_v57 = vld [vmem:[#allocation14_spill] sm:$0xff] }
 0x115   :  { %vm1205_vm8 = vcmp.eq.f32.partialorder %v2779_v40, 0.0  ;;  %v1067_v55 = vmul.f32 %v2790_v38, %v1693_v51  ;;  %vm1166_vm5 = vcmp.gt.f32.partialorder %v2620_v32, 0.0  ;;  %vm1169_vm11 = vcmp.lt.f32.partialorder %v2620_v32, 0.0 }
 0x116   :  { %1460 = vrcp.f32 %v1193_v16  ;;  %v1069_v11 = vmul.f32 %v2790_v38, %v1699_v53  ;;  %v1165_v24 = vmul.f32 %v1457_v21, %v1162_v35  ;;  %vm1174_vm14 = vcmp.lt.f32.partialorder %v2511_v41, 0.0 }
 0x117   :  { %vm1180_vm0 = vcmp.gt.f32.partialorder %v2635_v9, 0.0  ;;  %v1140_v23 = vmax.f32 %v1124_v31, %v1136_v14  ;;  %v1141_v46 = vmin.f32 %v1125_v39, %v1139_v15  ;;  %v1179_v17 = vmul.f32 %v1459_v6, %v1176_v33 }
 0x118   :  { %v1209_v2 = vsel %vm1205_vm8, 1.0, %v2779_v40  ;;  %v1071_v62 = vmul.f32 %v2811_v45, %v1693_v51  ;;  %vm1183_vm4 = vcmp.lt.f32.partialorder %v2635_v9, 0.0  ;;  %vm1190_vm9 = vcmp.lt.f32.partialorder %v2533_v49, 0.0 }
 0x119   :  { %v1192_v12 = vsub.f32 0.0, %v2533_v49  ;;  %v1068_v42 = vadd.f32 %v1067_v55, %v1673_v43  ;;  %v1073_v59 = vmul.f32 %v2811_v45, %v1699_v53  ;;  %1462 = vrcp.f32 %v1209_v2 }
 0x11a   :  { %v2839_v10 = vsub.f32 %v2333_v56, %v2485_v18  ;;  %v1070_v20 = vadd.f32 %v1069_v11, %v1681_v47  ;;  %v1167_v29 = vsel %vm1166_vm5, %v1165_v24, 0.0  ;;  %v1170_v53 = vsel %vm1169_vm11, %v1165_v24, 1.0  ;;  %vm2926_vm11 = vmand %vm1189_vm2, %vm1190_vm9 }
 0x11b   :  { %vm1196_vm7 = vcmp.gt.f32.partialorder %v2748_v34, 0.0  ;;  %v2857_v56 = vsub.f32 %v2438_v5, %v2589_v60  ;;  %v2859_v13 = vmax.f32 %v1140_v23, 0.0  ;;  %v2861_v37 = vmin.f32 %v1141_v46, 1.0 }
 0x11c   :  { %vm3189_vm13 = vcmp.eq.f32.partialorder %v2635_v9, 0.0  ;;  %v1181_v32 = vsel %vm1180_vm0, %v1179_v17, 0.0  ;;  %vm1237_vm12 = vcmp.eq.f32.partialorder %v2839_v10, 0.0  ;;  %v1072_v5 = vadd.f32 %v1071_v62, %v1673_v43 }
 0x11d   :  { %vm2867_vm6 = vmand %vm3189_vm13, %vm1174_vm14  ;;  %v1184_v0 = vsel %vm1183_vm4, %v1179_v17, 1.0  ;;  %v1241_v41 = vsel %vm1237_vm12, 1.0, %v2839_v10  ;;  %vm1251_vm1 = vcmp.eq.f32.partialorder %v2857_v56, 0.0  ;;  %v1074_v30 = vadd.f32 %v1073_v59, %v1681_v47 }
 0x11e   :  { %1464 = vrcp.f32 %v1241_v41  ;;  %v1255_v54 = vsel %vm1251_vm1, 1.0, %v2857_v56  ;;  %v2887_v22 = vsub.f32 %v2468_v4, %v2598_v8  ;;  %v1168_v43 = vsel %vm2846_vm15, 2.0, %v1167_v29 }
 0x11f   :  { %v1171_v9 = vsel %vm2846_vm15, -1.0, %v1170_v53  ;;  %v1182_v1 = vsel %vm2867_vm6, 2.0, %v1181_v32  ;;  %1466 = vrcp.f32 %v1255_v54  ;;  %v1144_v47 = vmul.f32 %v2859_v13, %v1717_v61 }
 0x120   :  { %v1150_v35 = vmul.f32 %v2861_v37, %v3192_v57  ;;  %v1185_v4 = vsel %vm2867_vm6, -1.0, %v1184_v0  ;;  %vm1267_vm10 = vcmp.eq.f32.partialorder %v2887_v22, 0.0  ;;  %v1146_v21 = vmul.f32 %v2859_v13, %v3192_v57 }
 0x121   :  { %v1148_v31 = vmul.f32 %v2861_v37, %v1717_v61  ;;  %v1271_v39 = vsel %vm1267_vm10, 1.0, %v2887_v22  ;;  %v2911_v33 = vsub.f32 %v2494_v3, %v2744_v58  ;;  %v2913_v16 = vmul.f32 %v1074_v30, %v1068_v42 }
 0x122   :  { %v2915_v6 = vmul.f32 %v1072_v5, %v1070_v20  ;;  %vm1199_vm3 = vcmp.lt.f32.partialorder %v2748_v34, 0.0  ;;  %1468 = vrcp.f32 %v1271_v39  ;;  %v1186_v15 = vmax.f32 %v1168_v43, %v1182_v1 }
 0x123   :  { %v1461_v14 = vpop.eup %1460  ;;  %v1187_v55 = vmin.f32 %v1171_v9, %v1185_v4  ;;  %v1208_v61 = vsub.f32 0.0, %v2553_v36  ;;  %vm1283_vm5 = vcmp.eq.f32.partialorder %v2911_v33, 0.0  ;;  %v1145_v11 = vadd.f32 %v1144_v47, %v1675_v7 }
 0x124   :  { %v1151_v24 = vadd.f32 %v1150_v35, %v1683_v48  ;;  %v1195_v23 = vmul.f32 %v1461_v14, %v1192_v12  ;;  %v1287_v46 = vsel %vm1283_vm5, 1.0, %v2911_v33  ;;  %v1147_v17 = vadd.f32 %v1146_v21, %v1683_v48 }
 0x125   :  { %v1149_v2 = vadd.f32 %v1148_v31, %v1675_v7  ;;  %vm1206_vm14 = vcmp.lt.f32.partialorder %v2553_v36, 0.0  ;;  %1470 = vrcp.f32 %v1287_v46  ;;  %vm1212_vm2 = vcmp.gt.f32.partialorder %v2779_v40, 0.0 }
 0x126   :  { %v1197_v49 = vsel %vm1196_vm7, %v1195_v23, 0.0  ;;  %v1200_v62 = vsel %vm1199_vm3, %v1195_v23, 1.0  ;;  %vm1215_vm0 = vcmp.lt.f32.partialorder %v2779_v40, 0.0  ;;  %v1463_v12 = vpop.eup %1462  ;;  %vm1238_vm4 = vcmp.lt.f32.partialorder %v2485_v18, 0.0  ;;  %vm2952_vm9 = vmand %vm1205_vm8, %vm1206_vm14 }
 0x127   :  { %v1198_v42 = vsel %vm2926_vm11, 2.0, %v1197_v49  ;;  %v1201_v7 = vsel %vm2926_vm11, -1.0, %v1200_v62  ;;  %v1240_v48 = vsub.f32 0.0, %v2485_v18  ;;  %v2948_v36 = vmul.f32 %v1151_v24, %v1145_v11  ;;  %vm2977_vm11 = vmand %vm1237_vm12, %vm1238_vm4 }
 0x128   :  { %v1202_v59 = vmax.f32 %v1186_v15, %v1198_v42  ;;  %v1203_v34 = vmin.f32 %v1187_v55, %v1201_v7  ;;  %v1211_v51 = vmul.f32 %v1463_v12, %v1208_v61  ;;  %v2956_v29 = vmul.f32 %v1149_v2, %v1147_v17  ;;  %v3201_v15 = vld [vmem:[#allocation15_spill] sm:$0xff]  ;;  %v3202_v61 = vld [vmem:[#allocation16_spill] sm:$0xff] }
 0x129   :  { %vm1244_vm15 = vcmp.gt.f32.partialorder %v2839_v10, 0.0  ;;  %vm1252_vm7 = vcmp.lt.f32.partialorder %v2589_v60, 0.0  ;;  %v1254_v53 = vsub.f32 0.0, %v2589_v60  ;;  %vm1247_vm8 = vcmp.lt.f32.partialorder %v2839_v10, 0.0  ;;  %v3205_v12 = vld [vmem:[#allocation11_spill] sm:$0xff] }
 0x12a   :  { %v1213_v26 = vsel %vm1212_vm2, %v1211_v51, 0.0  ;;  %v1216_v32 = vsel %vm1215_vm0, %v1211_v51, 1.0  ;;  %vm1258_vm13 = vcmp.gt.f32.partialorder %v2857_v56, 0.0  ;;  %vm1261_vm6 = vcmp.lt.f32.partialorder %v2857_v56, 0.0  ;;  %vm2997_vm12 = vmand %vm1251_vm1, %vm1252_vm7 }
 0x12b   :  { %v1465_v5 = vpop.eup %1464  ;;  %v1214_v0 = vsel %vm2952_vm9, 2.0, %v1213_v26  ;;  %v1217_v41 = vsel %vm2952_vm9, -1.0, %v1216_v32  ;;  %vm1268_vm3 = vcmp.lt.f32.partialorder %v2598_v8, 0.0  ;;  %v1270_v1 = vsub.f32 0.0, %v2598_v8  ;;  %v3207_v26 = vld [vmem:[#allocation21_spill] sm:$0xff] }
 0x12c   :  { %v1467_v30 = vpop.eup %1466  ;;  %v1218_v54 = vmax.f32 %v1202_v59, %v1214_v0  ;;  %v1219_v43 = vmin.f32 %v1203_v34, %v1217_v41  ;;  %v1243_v9 = vmul.f32 %v1465_v5, %v1240_v48  ;;  %vm1274_vm14 = vcmp.gt.f32.partialorder %v2887_v22, 0.0  ;;  %vm3027_vm1 = vmand %vm1267_vm10, %vm1268_vm3 }
 0x12d   :  { %v1257_v47 = vmul.f32 %v1467_v30, %v1254_v53  ;;  %vm1277_vm2 = vcmp.lt.f32.partialorder %v2887_v22, 0.0  ;;  %vm1284_vm0 = vcmp.lt.f32.partialorder %v2744_v58, 0.0  ;;  %vm837_vm4 = vcmp.gt.f32.partialorder %v2316_v52, %v2314_v63  ;;  %v1322_v52 = vld [vmem:[#allocation2 + $0x10] sm:$0xff] }
 0x12e   :  { %v2985_v57 = vmax.f32 %v1218_v54, 0.0  ;;  %v2987_v35 = vmin.f32 %v1219_v43, 1.0  ;;  %v1245_v18 = vsel %vm1244_vm15, %v1243_v9, 0.0  ;;  %v1248_v4 = vsel %vm1247_vm8, %v1243_v9, 1.0  ;;  %vm1285_vm15 = vmand %vm1283_vm5, %vm1284_vm0 }
 0x12f   :  { %v1469_v31 = vpop.eup %1468  ;;  %v1246_v39 = vsel %vm2977_vm11, 2.0, %v1245_v18  ;;  %v1249_v14 = vsel %vm2977_vm11, -1.0, %v1248_v4  ;;  %v1259_v10 = vsel %vm1258_vm13, %v1257_v47, 0.0  ;;  %v1262_v60 = vsel %vm1261_vm6, %v1257_v47, 1.0  ;;  %v1328_v47 = vld [vmem:[#allocation5 + $0x28] sm:$0xff]  ;;  %v3208_v18 = vld [vmem:[#allocation19_spill] sm:$0xff] }
 0x130   :  { %v1222_v55 = vmul.f32 %v2985_v57, %v3201_v15  ;;  %v1224_v11 = vmul.f32 %v2985_v57, %v3202_v61  ;;  %v1226_v24 = vmul.f32 %v2987_v35, %v3201_v15  ;;  %v1228_v3 = vmul.f32 %v2987_v35, %v3202_v61  ;;  %v3209_v4 = vld [vmem:[#allocation20_spill] sm:$0xff] }
 0x131   :  { %v1260_v23 = vsel %vm2997_vm12, 2.0, %v1259_v10  ;;  %v1263_v46 = vsel %vm2997_vm12, -1.0, %v1262_v60  ;;  %v1273_v17 = vmul.f32 %v1469_v31, %v1270_v1  ;;  %v1286_v2 = vsub.f32 0.0, %v2744_v58  ;;  %v3211_v10 = vld [vmem:[#allocation18_spill] sm:$0xff] }
 0x132   :  { %v1471_v49 = vpop.eup %1470  ;;  %v1223_v62 = vadd.f32 %v1222_v55, %v1687_v44  ;;  %v1225_v42 = vadd.f32 %v1224_v11, %v3205_v12  ;;  %v1227_v7 = vadd.f32 %v1226_v24, %v1687_v44  ;;  %v1229_v48 = vadd.f32 %v1228_v3, %v3205_v12  ;;  %v3206_v44 = vld [vmem:[#allocation22_spill] sm:$0xff]  ;;  %v1326_v55 = vld [vmem:[#allocation5 + $0x10] sm:$0xff]  ;;  %v3212_v11 = vld [vmem:[#allocation23_spill] sm:$0xff] }
 0x133   :  { %v1264_v59 = vmax.f32 %v1246_v39, %v1260_v23  ;;  %v1265_v8 = vmin.f32 %v1249_v14, %v1263_v46  ;;  %v1275_v34 = vsel %vm1274_vm14, %v1273_v17, 0.0  ;;  %v1278_v20 = vsel %vm1277_vm2, %v1273_v17, 1.0  ;;  %v3210_v39 = vld [vmem:[#allocation17_spill] sm:$0xff]  ;;  %v3213_v24 = vld [vmem:[#allocation12_spill] sm:$0xff] }
 0x134   :  { %v1276_v51 = vsel %vm3027_vm1, 2.0, %v1275_v34  ;;  %v1279_v53 = vsel %vm3027_vm1, -1.0, %v1278_v20  ;;  %vm1290_vm10 = vcmp.gt.f32.partialorder %v2911_v33, 0.0  ;;  %vm1293_vm9 = vcmp.lt.f32.partialorder %v2911_v33, 0.0  ;;  %v3214_v23 = vld [vmem:[#allocation13_spill] sm:$0xff] }
 0x135   :  { %v840_v32 = vsub.f32 %v3207_v26, %v3206_v44  ;;  %v1280_v5 = vmax.f32 %v1264_v59, %v1276_v51  ;;  %v1281_v0 = vmin.f32 %v1265_v8, %v1279_v53  ;;  %v1289_v22 = vmul.f32 %v1471_v49, %v1286_v2  ;;  %v1474_v44 = vld [vmem:[#allocation2 + $0x18] sm:$0xff]  ;;  %v1475_v26 = vld [vmem:[#allocation2 + $0x20] sm:$0xff] }
 0x136   :  { %v918_v41 = vmul.f32 %v2803_v28, %v2775_v27  ;;  %v1078_v30 = vsub.f32 %v2913_v16, %v2915_v6  ;;  %v1231_v54 = vmul.f32 %v1229_v48, %v1223_v62  ;;  %v1232_v43 = vmul.f32 %v1227_v7, %v1225_v42  ;;  %v1324_v6 = vld [vmem:[#allocation2 + $0x28] sm:$0xff] }
 0x137   :  { %vm1075_vm7 = vcmp.gt.f32.partialorder %v2811_v45, %v2790_v38  ;;  %v1155_v40 = vsub.f32 %v2948_v36, %v2956_v29  ;;  %v1291_v9 = vsel %vm1290_vm10, %v1289_v22, 0.0  ;;  %v1294_v58 = vsel %vm1293_vm9, %v1289_v22, 1.0 }
 0x138   :  { %v919_v33 = vmul.f32 %v2800_v50, %v2788_v19  ;;  %vm1152_vm5 = vcmp.gt.f32.partialorder %v2861_v37, %v2859_v13  ;;  %v1292_v27 = vsel %vm1285_vm15, 2.0, %v1291_v9  ;;  %v1295_v28 = vsel %vm1285_vm15, -1.0, %v1294_v58 }
 0x139   :  { %v1296_v1 = vmax.f32 %v1280_v5, %v1292_v27  ;;  %v1297_v16 = vmin.f32 %v1281_v0, %v1295_v28  ;;  %v762_v38 = vadd.f32 %v3209_v4, %v3208_v18  ;;  %v841_v45 = vsel %vm837_vm4, %v840_v32, 0.0  ;;  %v1476_v5 = vld [vmem:[#allocation5 + $0x18] sm:$0xff]  ;;  %v1477_v0 = vld [vmem:[#allocation5 + $0x20] sm:$0xff] }
 0x13a   :  { %v1079_v36 = vsel %vm1075_vm7, %v1078_v30, 0.0  ;;  %v1233_v29 = vsub.f32 %v1231_v54, %v1232_v43  ;;  %v1156_v21 = vsel %vm1152_vm5, %v1155_v40, 0.0  ;;  %vm1230_vm8 = vcmp.gt.f32.partialorder %v2987_v35, %v2985_v57 }
 0x13b   :  { %v1298_v19 = vmax.f32 %v1296_v1, 0.0  ;;  %v1299_v50 = vmin.f32 %v1297_v16, 1.0  ;;  %v920_v13 = vsub.f32 %v918_v41, %v919_v33  ;;  %v1329_v37 = vmul.f32 0.5, %v1324_v6 }
 0x13c   :  { %v1331_v31 = vmul.f32 0.5, %v1328_v47  ;;  %v842_v61 = vadd.f32 %v841_v45, %v762_v38  ;;  %vm917_vm13 = vcmp.gt.f32.partialorder %v2543_v25, %v3212_v11  ;;  %v1157_v57 = vadd.f32 %v1156_v21, %v1079_v36 }
 0x13d   :  { %v1300_v14 = vmul.f32 %v1298_v19, %v3210_v39  ;;  %v1302_v60 = vmul.f32 %v1298_v19, %v3211_v10  ;;  %v1304_v15 = vmul.f32 %v1299_v50, %v3210_v39  ;;  %v1306_v63 = vmul.f32 %v1299_v50, %v3211_v10 }
 0x13e   :  { %v1234_v35 = vsel %vm1230_vm8, %v1233_v29, 0.0  ;;  %v1330_v2 = vadd.f32 %v1329_v37, %v1322_v52  ;;  %v1332_v49 = vadd.f32 %v1331_v31, %v1326_v55  ;;  %v1334_v62 = vsub.f32 %v1322_v52, %v1329_v37 }
 0x13f   :  { %v1301_v3 = vadd.f32 %v1300_v14, %v3213_v24  ;;  %v1303_v46 = vadd.f32 %v1302_v60, %v3214_v23  ;;  %v1305_v56 = vadd.f32 %v1304_v15, %v3213_v24  ;;  %v1307_v17 = vadd.f32 %v1306_v63, %v3214_v23 }
 0x140   :  { %v1335_v12 = vsub.f32 %v1326_v55, %v1331_v31  ;;  %v921_v42 = vsel %vm917_vm13, %v920_v13, 0.0  ;;  %v1235_v59 = vadd.f32 %v1234_v35, %v1157_v57  ;;  %vm1308_vm6 = vcmp.gt.f32.partialorder %v1299_v50, %v1298_v19 }
 0x141   :  { %v1309_v7 = vmul.f32 %v1307_v17, %v1301_v3  ;;  %v1310_v48 = vmul.f32 %v1305_v56, %v1303_v46  ;;  %v922_v8 = vadd.f32 %v921_v42, %v842_v61  ;;  %v1333_v34 = vmin.f32 %v1330_v2, %v1332_v49 }
 0x142   :  { %v1336_v20 = vmax.f32 %v1334_v62, %v1335_v12  ;;  %v1315_v32 = vmul.f32 %v1475_v26, %v1474_v44  ;;  %v1316_v22 = vmul.f32 %v1477_v0, %v1476_v5 }
 0x143   :  { %v1311_v25 = vsub.f32 %v1309_v7, %v1310_v48 }
 0x144   :  { %v1337_v30 = vsub.f32 %v1333_v34, %v1336_v20  ;;  %v1318_v43 = vmin.f32 %v1315_v32, %v1316_v22  ;;  %v1340_v40 = vmul.f32 %v1324_v6, %v1315_v32  ;;  %v1341_v9 = vmul.f32 %v1328_v47, %v1316_v22 }
 0x145   :  { %v1312_v51 = vsel %vm1308_vm6, %v1311_v25, 0.0 }
 0x146   :  { %v1313_v53 = vadd.f32 %v1312_v51, %v1235_v59  ;;  %v1338_v33 = vmax.f32 %v1337_v30, 0.0  ;;  %v1342_v28 = vadd.f32 %v1341_v9, %v1340_v40 }
 0x148   :  { %v1314_v41 = vadd.f32 %v1313_v53, %v922_v8 }
 0x14a   :  { %v1317_v54 = vmul.f32 0.5, %v1314_v41 }
 0x14c   :  { %v1319_v58 = vmax.f32 %v1317_v54, 0.0 }
 0x14e   :  { %v1320_v27 = vmin.f32 %v1318_v43, %v1319_v58 }
 0x150   :  { %v1339_v1 = vmul.f32 %v1338_v33, %v1320_v27 }
 0x152   :  { %v1343_v16 = vsub.f32 %v1342_v28, %v1339_v1  ;;  %v1344_v4 = vadd.f32 1.0, %v1339_v1 }
 0x154   :  { %v1345_v18 = vadd.f32 1.0, %v1343_v16 }
 0x156   :  { %1472 = vrcp.f32 %v1345_v18 }
 0x163   :  { %v1473_v38 = vpop.eup %1472 }
 0x164   :  { %v1347_v45 = vmul.f32 %v1473_v38, %v1344_v4 }
 0x166   :  { %1348 = vst [vmem:[#allocation7] sm:$0xff] %v1347_v45 }
 0x167   :  { %1529 = shalt.err (!%p1526_p0)
}
 0x168   :  { %1358 = dma.vmem_to_hbm [thread:$0]  %s1356_s1, 128, %s3086_s2, [#allocation4]  }
 0x169   :  { %1542 = dma.done.wait [#allocation4], 128  }
 0x16a   :  { %1543 = vsyncadd [#allocation4], 4294967168 }
 0x16b   :  { %1362 = vsyncpa [#allocation3], 1 }
 0x16c   :  { %1363 = vsyncpa [#allocation6], 1 }
 0x16d   :  { %1364 = vsyncpa [#allocation4], 1 }

</bundles_post_ra>
